<compile_context>
chip_gen: v6e
topology: v6e:2x2x1
jax: 0.10.0
libtpu: 0.0.40
codegen_flags: <defaults>
</compile_context>

<pallas_src>
import math

import jax
import jax.numpy as jnp
from jax.experimental import pallas as pl
from jax.experimental.pallas import tpu as pltpu

# ----------------------------------------------------------------------------
# Config
# ----------------------------------------------------------------------------
B = 2
N_HIS = 8
N_VERTEX = 16
KT = 3
KS = 3
BLOCKS = [[4], [8, 4, 8], [8, 8], [1]]
KO = N_HIS - (len(BLOCKS) - 3) * 2 * (KT - 1)          # = 4
C0 = BLOCKS[0][-1]                                      # 4  (input features)
C1, C2, C3 = BLOCKS[1]                                  # 8, 4, 8
F1, F2 = BLOCKS[2]                                      # 8, 8
END_C = BLOCKS[3][0]                                    # 1
T1 = N_HIS - (KT - 1)                                   # 6  (after tmp_conv1)
T2 = T1 - (KT - 1)                                      # 4  (after tmp_conv2)
T_OUT = T2 - (KO - 1)                                   # 1  (after output conv)
LN_EPS = 1e-12

# Lane widths of the (time, n_vertex*channels) working slabs.
L0 = N_VERTEX * C0                                      # 64
L1 = N_VERTEX * C1                                      # 128
L2 = N_VERTEX * C2                                      # 64
L3 = N_VERTEX * C3                                      # 128
LF1 = N_VERTEX * F1                                     # 128
LF2 = N_VERTEX * F2                                     # 128
LE = N_VERTEX * END_C                                   # 16


# ----------------------------------------------------------------------------
# The single fused kernel (no grid; whole working set < 1.1 MiB in VMEM)
# ----------------------------------------------------------------------------
def _stgcn_fused_kernel(x_ref,
                        w1_ref, b1_ref,
                        gw_ref, gb_ref,
                        w2_ref, b2_ref,
                        g1_ref, be1_ref,
                        w3_ref, b3_ref,
                        g2_ref, be2_ref,
                        f1w_ref, f1b_ref,
                        f2w_ref, f2b_ref,
                        o_ref):
    f32 = jnp.float32

    def temporal_glu(h, w_ref, b_ref, Kt, l_out):
        # h: (T, n_vertex*c_in) lane-dense.  Causal temporal conv + GLU.
        # The Align residual is pre-folded into the last tap of w_ref; the
        # taps are accumulated with independent matmuls (no lane-offset
        # concat), and the p/q GLU halves split at a 128-aligned lane offset.
        T = h.shape[0]
        To = T - Kt + 1
        acc = jnp.dot(h[0:To, :], w_ref[0], preferred_element_type=f32)
        for k in range(1, Kt):
            acc = acc + jnp.dot(h[k:k + To, :], w_ref[k],
                                preferred_element_type=f32)
        conv = acc + b_ref[...]
        p = conv[:, :l_out]
        q = conv[:, l_out:]
        return p * jax.nn.sigmoid(q)                     # (To, l_out)

    def layernorm(h, g, b):
        # LayerNorm over the flattened (n_vertex*C) lane axis, eps = 1e-12.
        inv = 1.0 / h.shape[1]
        m = jnp.sum(h, axis=1, keepdims=True) * inv
        d = h - m
        v = jnp.sum(d * d, axis=1, keepdims=True) * inv
        return d * jax.lax.rsqrt(v + LN_EPS) * g + b

    outs = []
    for b in range(x_ref.shape[0]):                      # static batch unroll
        h = x_ref[b]                                     # (N_HIS, L0)

        # ---------------- STConvBlock ----------------
        h = temporal_glu(h, w1_ref, b1_ref, KT, L1)      # (T1, L1)
        # GraphConvLayer (align 1x1 conv + Chebyshev conv + bias + residual)
        # pre-composed into one (L1, L2) matrix; then the STConvBlock ReLU.
        h = jnp.maximum(
            jnp.dot(h, gw_ref[...], preferred_element_type=f32) + gb_ref[...],
            0.0)                                         # (T1, L2)
        # TODO(synk): nn.Dropout treated as identity (inference semantics).
        h = temporal_glu(h, w2_ref, b2_ref, KT, L3)      # (T2, L3)
        h = layernorm(h, g1_ref[...], be1_ref[...])

        # ---------------- OutputBlock (Ko > 1) ----------------
        h = temporal_glu(h, w3_ref, b3_ref, KO, LF1)     # (T_OUT, LF1)
        h = layernorm(h, g2_ref[...], be2_ref[...])
        h = jnp.maximum(
            jnp.dot(h, f1w_ref[...], preferred_element_type=f32)
            + f1b_ref[...], 0.0)                         # (T_OUT, LF2)
        h = jnp.dot(h, f2w_ref[...], preferred_element_type=f32) + f2b_ref[...]
        outs.append(h)                                   # (T_OUT, LE)

    o_ref[...] = jnp.concatenate(outs, axis=0)           # (B*T_OUT, LE)


# ----------------------------------------------------------------------------
# Host-side (KB-sized, one-time) parameter preprocessing
# ----------------------------------------------------------------------------
def _expand_temporal(w, bias, c_in, c_out, Kt, res_mat):
    """(Kt, c_in, 2*c_out) temporal-conv weight -> per-tap kron(I_N, .) with
    the GLU output reordered to [p-block | q-block] along the lane axis and
    the Align residual (res_mat) folded into the last tap's p-block."""
    # TODO(synk): the c_in > c_out Align branch (1x1 conv) would fold its conv
    # weight/bias here instead of the identity; this config never exercises it.
    eye_n = jnp.eye(N_VERTEX, dtype=w.dtype)
    wp = w[:, :, :c_out]
    wq = w[:, :, c_out:]
    wp = wp.at[Kt - 1].add(res_mat)
    w_exp = jnp.stack(
        [jnp.concatenate([jnp.kron(eye_n, wp[k]), jnp.kron(eye_n, wq[k])],
                         axis=1) for k in range(Kt)], axis=0)
    bias = bias.reshape(-1)
    b_exp = jnp.concatenate([jnp.tile(bias[:c_out], N_VERTEX),
                             jnp.tile(bias[c_out:], N_VERTEX)]).reshape(1, -1)
    return w_exp, b_exp


def _build_graph_conv(ga_w, ga_b, cheb_w, cheb_b, gso):
    """GraphConvLayer = align (1x1 conv, c_in > c_out) + Chebyshev graph conv
    + bias + residual, pre-composed into ONE (N*C1, N*C2) matrix and one
    (N*C2,) bias.  Chebyshev polynomial matrices T_k(gso) are precomputed
    (no in-kernel recurrence)."""
    Ks = cheb_w.shape[0]
    eye_v = jnp.eye(N_VERTEX, dtype=gso.dtype)
    gs = [eye_v]
    if Ks > 1:
        gs.append(gso)
    for _ in range(2, Ks):
        gs.append(2.0 * gso @ gs[-1] - gs[-2])
    c = cheb_w.shape[2]
    # M[(i,c_in),(h,j)] = sum_k G_k[h,i] * W_k[c_in,j]
    m_cheb = sum(jnp.kron(gs[k].T, cheb_w[k]) for k in range(Ks))
    m_tot = m_cheb + jnp.eye(N_VERTEX * c, dtype=m_cheb.dtype)   # + residual
    a_exp = jnp.kron(eye_v, ga_w)                                # (N*C1, N*C2)
    a_bias = jnp.tile(ga_b.reshape(-1), N_VERTEX)                # (N*C2,)
    w_total = a_exp @ m_tot
    b_total = a_bias @ m_tot + jnp.tile(cheb_b.reshape(-1), N_VERTEX)
    return w_total, b_total.reshape(1, -1)


def _expand_pointwise(w, bias):
    """Per-vertex Linear -> kron(I_N, W) over the (n, c) lane axis."""
    eye_n = jnp.eye(N_VERTEX, dtype=w.dtype)
    return (jnp.kron(eye_n, w),
            jnp.tile(bias.reshape(-1), N_VERTEX).reshape(1, -1))


def stgcn_forward(x, p):
    """Full STGCNChebGraphConv forward as a single grid-less pallas_call."""
    Bx = x.shape[0]
    w1, b1 = _expand_temporal(p['tmp1_w'], p['tmp1_b'], C0, C1, KT,
                              jnp.eye(C0, C1, dtype=jnp.float32))
    gw, gb = _build_graph_conv(p['ga_w'], p['ga_b'],
                               p['cheb_w'], p['cheb_b'], p['gso'])
    w2, b2 = _expand_temporal(p['tmp2_w'], p['tmp2_b'], C2, C3, KT,
                              jnp.eye(C2, C3, dtype=jnp.float32))
    w3, b3 = _expand_temporal(p['tmp3_w'], p['tmp3_b'], C3, F1, KO,
                              jnp.eye(C3, F1, dtype=jnp.float32))
    f1w, f1b = _expand_pointwise(p['fc1_w'], p['fc1_b'])
    f2w, f2b = _expand_pointwise(p['fc2_w'], p['fc2_b'])
    g1 = p['ln1_g'].reshape(1, L3)
    be1 = p['ln1_b'].reshape(1, L3)
    g2 = p['ln2_g'].reshape(1, LF1)
    be2 = p['ln2_b'].reshape(1, LF1)

    # Lane-dense input slab: (B, T, n_vertex*C0); host reshape is free.
    x_flat = x.reshape(Bx, N_HIS, L0)

    inputs = (x_flat, w1, b1, gw, gb, w2, b2, g1, be1,
              w3, b3, g2, be2, f1w, f1b, f2w, f2b)

    out = pl.pallas_call(
        _stgcn_fused_kernel,
        out_shape=jax.ShapeDtypeStruct((Bx * T_OUT, LE), jnp.float32),
        in_specs=[pl.BlockSpec(memory_space=pltpu.MemorySpace.VMEM)
                  for _ in inputs],
        out_specs=pl.BlockSpec(memory_space=pltpu.MemorySpace.VMEM),
    )(*inputs)
    # Module's external output layout: (B, T_out, n_vertex, end_c).
    return out.reshape(Bx, T_OUT, N_VERTEX, END_C)


# ----------------------------------------------------------------------------
# Pure-JAX reference (same math, no Pallas) used to validate the fused kernel
# ----------------------------------------------------------------------------
def reference_forward(x, p):
    def temporal_ref(x, w, b, Kt, c_in, c_out):
        Bx, T, Nv, _ = x.shape
        if c_in < c_out:
            x_al = jnp.concatenate(
                [x, jnp.zeros((Bx, T, Nv, c_out - c_in), x.dtype)], axis=-1)
        else:
            x_al = x
        x_in = x_al[:, Kt - 1:]
        To = T - Kt + 1
        conv = sum(jnp.einsum('btnc,co->btno', x[:, k:k + To], w[k])
                   for k in range(Kt)) + b
        return (conv[..., :c_out] + x_in) * jax.nn.sigmoid(conv[..., c_out:])

    def cheb_ref(x0, gso, w, b):
        Ks = w.shape[0]
        xs = [x0]
        if Ks > 1:
            xs.append(jnp.einsum('hi,btic->bthc', gso, x0))
        for k in range(2, Ks):
            xs.append(jnp.einsum('hi,btic->bthc', 2.0 * gso, xs[-1]) - xs[-2])
        return sum(jnp.einsum('btnc,co->btno', xs[k], w[k])
                   for k in range(Ks)) + b

    def ln_ref(x, g, b2):
        m = jnp.mean(x, axis=(2, 3), keepdims=True)
        v = jnp.mean((x - m) ** 2, axis=(2, 3), keepdims=True)
        return (x - m) / jnp.sqrt(v + LN_EPS) * g + b2

    h = temporal_ref(x, p['tmp1_w'], p['tmp1_b'], KT, C0, C1)
    # GraphConvLayer align: c_in (C1=8) > c_out (C2=4) -> 1x1 conv branch.
    h_al = h @ p['ga_w'] + p['ga_b']
    h = jnp.maximum(
        cheb_ref(h_al, p['gso'], p['cheb_w'], p['cheb_b']) + h_al, 0.0)
    h = temporal_ref(h, p['tmp2_w'], p['tmp2_b'], KT, C2, C3)
    h = ln_ref(h, p['ln1_g'], p['ln1_b'])
    h = temporal_ref(h, p['tmp3_w'], p['tmp3_b'], KO, C3, F1)
    h = ln_ref(h, p['ln2_g'], p['ln2_b'])
    h = jnp.maximum(h @ p['fc1_w'] + p['fc1_b'], 0.0)
    h = h @ p['fc2_w'] + p['fc2_b']
    return h


# ----------------------------------------------------------------------------
# Deterministic synthetic parameter init (shapes follow the module __init__)
# ----------------------------------------------------------------------------
def init_params(key):
    ks = jax.random.split(key, 16)

    def uni(k, shape, fan_in):
        bound = 1.0 / math.sqrt(fan_in)
        return jax.random.uniform(k, shape, jnp.float32, -bound, bound)

    p = {}
    # STConvBlock.tmp_conv1: CausalConv2d(C0 -> 2*C1, (Kt,1))
    p['tmp1_w'] = uni(ks[0], (KT, C0, 2 * C1), C0 * KT)
    p['tmp1_b'] = uni(ks[1], (1, 2 * C1), C0 * KT)
    # GraphConvLayer.align: Conv2d(C1 -> C2, 1x1)
    p['ga_w'] = uni(ks[2], (C1, C2), C1)
    p['ga_b'] = uni(ks[3], (1, C2), C1)
    # ChebGraphConv: weight (Ks, C2, C2), bias (C2,)
    p['cheb_w'] = uni(ks[4], (KS, C2, C2), C2)
    p['cheb_b'] = uni(ks[5], (1, C2), C2)
    # STConvBlock.tmp_conv2: CausalConv2d(C2 -> 2*C3, (Kt,1))
    p['tmp2_w'] = uni(ks[6], (KT, C2, 2 * C3), C2 * KT)
    p['tmp2_b'] = uni(ks[7], (1, 2 * C3), C2 * KT)
    # STConvBlock.tc2_ln: LayerNorm([n_vertex, C3])
    p['ln1_g'] = jnp.ones((N_VERTEX, C3), jnp.float32)
    p['ln1_b'] = jnp.zeros((N_VERTEX, C3), jnp.float32)
    # OutputBlock.tmp_conv1: CausalConv2d(C3 -> 2*F1, (Ko,1))
    p['tmp3_w'] = uni(ks[8], (KO, C3, 2 * F1), C3 * KO)
    p['tmp3_b'] = uni(ks[9], (1, 2 * F1), C3 * KO)
    # OutputBlock.tc1_ln: LayerNorm([n_vertex, F1])
    p['ln2_g'] = jnp.ones((N_VERTEX, F1), jnp.float32)
    p['ln2_b'] = jnp.zeros((N_VERTEX, F1), jnp.float32)
    # OutputBlock.fc1 / fc2
    p['fc1_w'] = uni(ks[10], (F1, F2), F1)
    p['fc1_b'] = uni(ks[11], (1, F2), F1)
    p['fc2_w'] = uni(ks[12], (F2, END_C), F2)
    p['fc2_b'] = uni(ks[13], (1, END_C), F2)
    # graph shift operator (args.gso): deterministic symmetric matrix
    m = jax.random.normal(ks[14], (N_VERTEX, N_VERTEX), jnp.float32)
    p['gso'] = (m + m.T) / (2.0 * N_VERTEX)
    return p


if __name__ == "__main__":
    key = jax.random.PRNGKey(0)
    pkey, xkey = jax.random.split(key)
    params = init_params(pkey)
    # module external input layout: (B, n_his, n_vertex, C0)
    x = jax.random.normal(xkey, (B, N_HIS, N_VERTEX, C0), jnp.float32)

    out = jax.jit(stgcn_forward)(x, params)
    out = jax.block_until_ready(out)

    assert out.shape == (B, T_OUT, N_VERTEX, END_C), out.shape
    ref = reference_forward(x, params)
    err = float(jnp.max(jnp.abs(out - ref)))
    if err > 1e-4:
        raise AssertionError(f"kernel mismatch vs reference, max abs err = {err}")
    print("KERNEL_OK")
</pallas_src>

<mosaic_0001>
module attributes {stable_mosaic.version = 11 : i64} {
  func.func @_stgcn_fused_kernel(%arg0: memref<2x8x64xf32, #tpu.memory_space<vmem>>, %arg1: memref<3x64x256xf32, #tpu.memory_space<vmem>>, %arg2: memref<1x256xf32, #tpu.memory_space<vmem>>, %arg3: memref<128x64xf32, #tpu.memory_space<vmem>>, %arg4: memref<1x64xf32, #tpu.memory_space<vmem>>, %arg5: memref<3x64x256xf32, #tpu.memory_space<vmem>>, %arg6: memref<1x256xf32, #tpu.memory_space<vmem>>, %arg7: memref<1x128xf32, #tpu.memory_space<vmem>>, %arg8: memref<1x128xf32, #tpu.memory_space<vmem>>, %arg9: memref<4x128x256xf32, #tpu.memory_space<vmem>>, %arg10: memref<1x256xf32, #tpu.memory_space<vmem>>, %arg11: memref<1x128xf32, #tpu.memory_space<vmem>>, %arg12: memref<1x128xf32, #tpu.memory_space<vmem>>, %arg13: memref<128x128xf32, #tpu.memory_space<vmem>>, %arg14: memref<1x128xf32, #tpu.memory_space<vmem>>, %arg15: memref<128x16xf32, #tpu.memory_space<vmem>>, %arg16: memref<1x16xf32, #tpu.memory_space<vmem>>, %arg17: memref<2x16xf32, #tpu.memory_space<vmem>>) attributes {dimension_semantics = [], scalar_prefetch = 0 : i64, scratch_operands = 0 : i64, tpu.core_type = #tpu.core_type<tc>} {
    %c0 = arith.constant 0 : index
    %c0_0 = arith.constant 0 : index
    %c0_1 = arith.constant 0 : index
    %0 = vector.load %arg0[%c0, %c0_0, %c0_1] : memref<2x8x64xf32, #tpu.memory_space<vmem>>, vector<1x8x64xf32>
    %1 = vector.shape_cast %0 : vector<1x8x64xf32> to vector<8x64xf32>
    %2 = vector.extract_strided_slice %1 {offsets = [0, 0], sizes = [6, 64], strides = [1, 1]} : vector<8x64xf32> to vector<6x64xf32>
    %c0_2 = arith.constant 0 : index
    %c0_3 = arith.constant 0 : index
    %c0_4 = arith.constant 0 : index
    %3 = vector.load %arg1[%c0_2, %c0_3, %c0_4] : memref<3x64x256xf32, #tpu.memory_space<vmem>>, vector<1x64x256xf32>
    %4 = vector.shape_cast %3 : vector<1x64x256xf32> to vector<64x256xf32>
    %cst = arith.constant dense<0.000000e+00> : vector<6x256xf32>
    %5 = tpu.matmul %2, %4, %cst {dimension_numbers = #tpu.dot_dimension_numbers<[1], [0], [0], [1], [0, 0, 1, 1], [], []>} : vector<6x64xf32>, vector<64x256xf32>, vector<6x256xf32> -> vector<6x256xf32>
    %6 = vector.extract_strided_slice %1 {offsets = [1, 0], sizes = [6, 64], strides = [1, 1]} : vector<8x64xf32> to vector<6x64xf32>
    %c1 = arith.constant 1 : index
    %c0_5 = arith.constant 0 : index
    %c0_6 = arith.constant 0 : index
    %7 = vector.load %arg1[%c1, %c0_5, %c0_6] : memref<3x64x256xf32, #tpu.memory_space<vmem>>, vector<1x64x256xf32>
    %8 = vector.shape_cast %7 : vector<1x64x256xf32> to vector<64x256xf32>
    %cst_7 = arith.constant dense<0.000000e+00> : vector<6x256xf32>
    %9 = tpu.matmul %6, %8, %cst_7 {dimension_numbers = #tpu.dot_dimension_numbers<[1], [0], [0], [1], [0, 0, 1, 1], [], []>} : vector<6x64xf32>, vector<64x256xf32>, vector<6x256xf32> -> vector<6x256xf32>
    %10 = arith.addf %5, %9 : vector<6x256xf32>
    %11 = vector.extract_strided_slice %1 {offsets = [2, 0], sizes = [6, 64], strides = [1, 1]} : vector<8x64xf32> to vector<6x64xf32>
    %c2 = arith.constant 2 : index
    %c0_8 = arith.constant 0 : index
    %c0_9 = arith.constant 0 : index
    %12 = vector.load %arg1[%c2, %c0_8, %c0_9] : memref<3x64x256xf32, #tpu.memory_space<vmem>>, vector<1x64x256xf32>
    %13 = vector.shape_cast %12 : vector<1x64x256xf32> to vector<64x256xf32>
    %cst_10 = arith.constant dense<0.000000e+00> : vector<6x256xf32>
    %14 = tpu.matmul %11, %13, %cst_10 {dimension_numbers = #tpu.dot_dimension_numbers<[1], [0], [0], [1], [0, 0, 1, 1], [], []>} : vector<6x64xf32>, vector<64x256xf32>, vector<6x256xf32> -> vector<6x256xf32>
    %15 = arith.addf %10, %14 : vector<6x256xf32>
    %c0_11 = arith.constant 0 : index
    %c0_12 = arith.constant 0 : index
    %16 = vector.load %arg2[%c0_11, %c0_12] : memref<1x256xf32, #tpu.memory_space<vmem>>, vector<1x256xf32>
    %17 = vector.broadcast %16 : vector<1x256xf32> to vector<6x256xf32>
    %18 = arith.addf %15, %17 : vector<6x256xf32>
    %19 = vector.extract_strided_slice %18 {offsets = [0, 0], sizes = [6, 128], strides = [1, 1]} : vector<6x256xf32> to vector<6x128xf32>
    %20 = vector.extract_strided_slice %18 {offsets = [0, 128], sizes = [6, 128], strides = [1, 1]} : vector<6x256xf32> to vector<6x128xf32>
    %21 = arith.negf %20 : vector<6x128xf32>
    %22 = math.exp %21 : vector<6x128xf32>
    %cst_13 = arith.constant 1.000000e+00 : f32
    %23 = vector.broadcast %cst_13 : f32 to vector<6x128xf32>
    %24 = arith.addf %23, %22 : vector<6x128xf32>
    %25 = arith.divf %23, %24 : vector<6x128xf32>
    %26 = arith.mulf %19, %25 : vector<6x128xf32>
    %c0_14 = arith.constant 0 : index
    %c0_15 = arith.constant 0 : index
    %27 = vector.load %arg3[%c0_14, %c0_15] : memref<128x64xf32, #tpu.memory_space<vmem>>, vector<128x64xf32>
    %cst_16 = arith.constant dense<0.000000e+00> : vector<6x64xf32>
    %28 = tpu.matmul %26, %27, %cst_16 {dimension_numbers = #tpu.dot_dimension_numbers<[1], [0], [0], [1], [0, 0, 1, 1], [], []>} : vector<6x128xf32>, vector<128x64xf32>, vector<6x64xf32> -> vector<6x64xf32>
    %c0_17 = arith.constant 0 : index
    %c0_18 = arith.constant 0 : index
    %29 = vector.load %arg4[%c0_17, %c0_18] : memref<1x64xf32, #tpu.memory_space<vmem>>, vector<1x64xf32>
    %30 = vector.broadcast %29 : vector<1x64xf32> to vector<6x64xf32>
    %31 = arith.addf %28, %30 : vector<6x64xf32>
    %cst_19 = arith.constant 0.000000e+00 : f32
    %32 = vector.broadcast %cst_19 : f32 to vector<6x64xf32>
    %33 = arith.maximumf %31, %32 : vector<6x64xf32>
    %34 = vector.extract_strided_slice %33 {offsets = [0, 0], sizes = [4, 64], strides = [1, 1]} : vector<6x64xf32> to vector<4x64xf32>
    %c0_20 = arith.constant 0 : index
    %c0_21 = arith.constant 0 : index
    %c0_22 = arith.constant 0 : index
    %35 = vector.load %arg5[%c0_20, %c0_21, %c0_22] : memref<3x64x256xf32, #tpu.memory_space<vmem>>, vector<1x64x256xf32>
    %36 = vector.shape_cast %35 : vector<1x64x256xf32> to vector<64x256xf32>
    %cst_23 = arith.constant dense<0.000000e+00> : vector<4x256xf32>
    %37 = tpu.matmul %34, %36, %cst_23 {dimension_numbers = #tpu.dot_dimension_numbers<[1], [0], [0], [1], [0, 0, 1, 1], [], []>} : vector<4x64xf32>, vector<64x256xf32>, vector<4x256xf32> -> vector<4x256xf32>
    %38 = vector.extract_strided_slice %33 {offsets = [1, 0], sizes = [4, 64], strides = [1, 1]} : vector<6x64xf32> to vector<4x64xf32>
    %c1_24 = arith.constant 1 : index
    %c0_25 = arith.constant 0 : index
    %c0_26 = arith.constant 0 : index
    %39 = vector.load %arg5[%c1_24, %c0_25, %c0_26] : memref<3x64x256xf32, #tpu.memory_space<vmem>>, vector<1x64x256xf32>
    %40 = vector.shape_cast %39 : vector<1x64x256xf32> to vector<64x256xf32>
    %cst_27 = arith.constant dense<0.000000e+00> : vector<4x256xf32>
    %41 = tpu.matmul %38, %40, %cst_27 {dimension_numbers = #tpu.dot_dimension_numbers<[1], [0], [0], [1], [0, 0, 1, 1], [], []>} : vector<4x64xf32>, vector<64x256xf32>, vector<4x256xf32> -> vector<4x256xf32>
    %42 = arith.addf %37, %41 : vector<4x256xf32>
    %43 = vector.extract_strided_slice %33 {offsets = [2, 0], sizes = [4, 64], strides = [1, 1]} : vector<6x64xf32> to vector<4x64xf32>
    %c2_28 = arith.constant 2 : index
    %c0_29 = arith.constant 0 : index
    %c0_30 = arith.constant 0 : index
    %44 = vector.load %arg5[%c2_28, %c0_29, %c0_30] : memref<3x64x256xf32, #tpu.memory_space<vmem>>, vector<1x64x256xf32>
    %45 = vector.shape_cast %44 : vector<1x64x256xf32> to vector<64x256xf32>
    %cst_31 = arith.constant dense<0.000000e+00> : vector<4x256xf32>
    %46 = tpu.matmul %43, %45, %cst_31 {dimension_numbers = #tpu.dot_dimension_numbers<[1], [0], [0], [1], [0, 0, 1, 1], [], []>} : vector<4x64xf32>, vector<64x256xf32>, vector<4x256xf32> -> vector<4x256xf32>
    %47 = arith.addf %42, %46 : vector<4x256xf32>
    %c0_32 = arith.constant 0 : index
    %c0_33 = arith.constant 0 : index
    %48 = vector.load %arg6[%c0_32, %c0_33] : memref<1x256xf32, #tpu.memory_space<vmem>>, vector<1x256xf32>
    %49 = vector.broadcast %48 : vector<1x256xf32> to vector<4x256xf32>
    %50 = arith.addf %47, %49 : vector<4x256xf32>
    %51 = vector.extract_strided_slice %50 {offsets = [0, 0], sizes = [4, 128], strides = [1, 1]} : vector<4x256xf32> to vector<4x128xf32>
    %52 = vector.extract_strided_slice %50 {offsets = [0, 128], sizes = [4, 128], strides = [1, 1]} : vector<4x256xf32> to vector<4x128xf32>
    %53 = arith.negf %52 : vector<4x128xf32>
    %54 = math.exp %53 : vector<4x128xf32>
    %cst_34 = arith.constant 1.000000e+00 : f32
    %55 = vector.broadcast %cst_34 : f32 to vector<4x128xf32>
    %56 = arith.addf %55, %54 : vector<4x128xf32>
    %57 = arith.divf %55, %56 : vector<4x128xf32>
    %58 = arith.mulf %51, %57 : vector<4x128xf32>
    %c0_35 = arith.constant 0 : index
    %c0_36 = arith.constant 0 : index
    %59 = vector.load %arg7[%c0_35, %c0_36] : memref<1x128xf32, #tpu.memory_space<vmem>>, vector<1x128xf32>
    %c0_37 = arith.constant 0 : index
    %c0_38 = arith.constant 0 : index
    %60 = vector.load %arg8[%c0_37, %c0_38] : memref<1x128xf32, #tpu.memory_space<vmem>>, vector<1x128xf32>
    %cst_39 = arith.constant dense<0.000000e+00> : vector<4xf32>
    %61 = vector.multi_reduction <add>, %58, %cst_39 [1] : vector<4x128xf32> to vector<4xf32>
    %62 = vector.shape_cast %61 : vector<4xf32> to vector<4x1xf32>
    %cst_40 = arith.constant 7.812500e-03 : f32
    %63 = vector.broadcast %cst_40 : f32 to vector<4x1xf32>
    %64 = arith.mulf %62, %63 : vector<4x1xf32>
    %65 = vector.broadcast %64 : vector<4x1xf32> to vector<4x128xf32>
    %66 = arith.subf %58, %65 : vector<4x128xf32>
    %67 = arith.mulf %66, %66 : vector<4x128xf32>
    %cst_41 = arith.constant dense<0.000000e+00> : vector<4xf32>
    %68 = vector.multi_reduction <add>, %67, %cst_41 [1] : vector<4x128xf32> to vector<4xf32>
    %69 = vector.shape_cast %68 : vector<4xf32> to vector<4x1xf32>
    %cst_42 = arith.constant 7.812500e-03 : f32
    %70 = vector.broadcast %cst_42 : f32 to vector<4x1xf32>
    %71 = arith.mulf %69, %70 : vector<4x1xf32>
    %cst_43 = arith.constant 9.99999996E-13 : f32
    %72 = vector.broadcast %cst_43 : f32 to vector<4x1xf32>
    %73 = arith.addf %71, %72 : vector<4x1xf32>
    %74 = math.rsqrt %73 : vector<4x1xf32>
    %75 = vector.broadcast %74 : vector<4x1xf32> to vector<4x128xf32>
    %76 = arith.mulf %66, %75 : vector<4x128xf32>
    %77 = vector.broadcast %59 : vector<1x128xf32> to vector<4x128xf32>
    %78 = arith.mulf %76, %77 : vector<4x128xf32>
    %79 = vector.broadcast %60 : vector<1x128xf32> to vector<4x128xf32>
    %80 = arith.addf %78, %79 : vector<4x128xf32>
    %81 = vector.extract_strided_slice %80 {offsets = [0, 0], sizes = [1, 128], strides = [1, 1]} : vector<4x128xf32> to vector<1x128xf32>
    %c0_44 = arith.constant 0 : index
    %c0_45 = arith.constant 0 : index
    %c0_46 = arith.constant 0 : index
    %82 = vector.load %arg9[%c0_44, %c0_45, %c0_46] : memref<4x128x256xf32, #tpu.memory_space<vmem>>, vector<1x128x256xf32>
    %83 = vector.shape_cast %82 : vector<1x128x256xf32> to vector<128x256xf32>
    %cst_47 = arith.constant dense<0.000000e+00> : vector<1x256xf32>
    %84 = tpu.matmul %81, %83, %cst_47 {dimension_numbers = #tpu.dot_dimension_numbers<[1], [0], [0], [1], [0, 0, 1, 1], [], []>} : vector<1x128xf32>, vector<128x256xf32>, vector<1x256xf32> -> vector<1x256xf32>
    %85 = vector.extract_strided_slice %80 {offsets = [1, 0], sizes = [1, 128], strides = [1, 1]} : vector<4x128xf32> to vector<1x128xf32>
    %c1_48 = arith.constant 1 : index
    %c0_49 = arith.constant 0 : index
    %c0_50 = arith.constant 0 : index
    %86 = vector.load %arg9[%c1_48, %c0_49, %c0_50] : memref<4x128x256xf32, #tpu.memory_space<vmem>>, vector<1x128x256xf32>
    %87 = vector.shape_cast %86 : vector<1x128x256xf32> to vector<128x256xf32>
    %cst_51 = arith.constant dense<0.000000e+00> : vector<1x256xf32>
    %88 = tpu.matmul %85, %87, %cst_51 {dimension_numbers = #tpu.dot_dimension_numbers<[1], [0], [0], [1], [0, 0, 1, 1], [], []>} : vector<1x128xf32>, vector<128x256xf32>, vector<1x256xf32> -> vector<1x256xf32>
    %89 = arith.addf %84, %88 : vector<1x256xf32>
    %90 = vector.extract_strided_slice %80 {offsets = [2, 0], sizes = [1, 128], strides = [1, 1]} : vector<4x128xf32> to vector<1x128xf32>
    %c2_52 = arith.constant 2 : index
    %c0_53 = arith.constant 0 : index
    %c0_54 = arith.constant 0 : index
    %91 = vector.load %arg9[%c2_52, %c0_53, %c0_54] : memref<4x128x256xf32, #tpu.memory_space<vmem>>, vector<1x128x256xf32>
    %92 = vector.shape_cast %91 : vector<1x128x256xf32> to vector<128x256xf32>
    %cst_55 = arith.constant dense<0.000000e+00> : vector<1x256xf32>
    %93 = tpu.matmul %90, %92, %cst_55 {dimension_numbers = #tpu.dot_dimension_numbers<[1], [0], [0], [1], [0, 0, 1, 1], [], []>} : vector<1x128xf32>, vector<128x256xf32>, vector<1x256xf32> -> vector<1x256xf32>
    %94 = arith.addf %89, %93 : vector<1x256xf32>
    %95 = vector.extract_strided_slice %80 {offsets = [3, 0], sizes = [1, 128], strides = [1, 1]} : vector<4x128xf32> to vector<1x128xf32>
    %c3 = arith.constant 3 : index
    %c0_56 = arith.constant 0 : index
    %c0_57 = arith.constant 0 : index
    %96 = vector.load %arg9[%c3, %c0_56, %c0_57] : memref<4x128x256xf32, #tpu.memory_space<vmem>>, vector<1x128x256xf32>
    %97 = vector.shape_cast %96 : vector<1x128x256xf32> to vector<128x256xf32>
    %cst_58 = arith.constant dense<0.000000e+00> : vector<1x256xf32>
    %98 = tpu.matmul %95, %97, %cst_58 {dimension_numbers = #tpu.dot_dimension_numbers<[1], [0], [0], [1], [0, 0, 1, 1], [], []>} : vector<1x128xf32>, vector<128x256xf32>, vector<1x256xf32> -> vector<1x256xf32>
    %99 = arith.addf %94, %98 : vector<1x256xf32>
    %c0_59 = arith.constant 0 : index
    %c0_60 = arith.constant 0 : index
    %100 = vector.load %arg10[%c0_59, %c0_60] : memref<1x256xf32, #tpu.memory_space<vmem>>, vector<1x256xf32>
    %101 = arith.addf %99, %100 : vector<1x256xf32>
    %102 = vector.extract_strided_slice %101 {offsets = [0, 0], sizes = [1, 128], strides = [1, 1]} : vector<1x256xf32> to vector<1x128xf32>
    %103 = vector.extract_strided_slice %101 {offsets = [0, 128], sizes = [1, 128], strides = [1, 1]} : vector<1x256xf32> to vector<1x128xf32>
    %104 = arith.negf %103 : vector<1x128xf32>
    %105 = math.exp %104 : vector<1x128xf32>
    %cst_61 = arith.constant 1.000000e+00 : f32
    %106 = vector.broadcast %cst_61 : f32 to vector<1x128xf32>
    %107 = arith.addf %106, %105 : vector<1x128xf32>
    %108 = arith.divf %106, %107 : vector<1x128xf32>
    %109 = arith.mulf %102, %108 : vector<1x128xf32>
    %c0_62 = arith.constant 0 : index
    %c0_63 = arith.constant 0 : index
    %110 = vector.load %arg11[%c0_62, %c0_63] : memref<1x128xf32, #tpu.memory_space<vmem>>, vector<1x128xf32>
    %c0_64 = arith.constant 0 : index
    %c0_65 = arith.constant 0 : index
    %111 = vector.load %arg12[%c0_64, %c0_65] : memref<1x128xf32, #tpu.memory_space<vmem>>, vector<1x128xf32>
    %cst_66 = arith.constant dense<0.000000e+00> : vector<1xf32>
    %112 = vector.multi_reduction <add>, %109, %cst_66 [1] : vector<1x128xf32> to vector<1xf32>
    %113 = vector.shape_cast %112 : vector<1xf32> to vector<1x1xf32>
    %cst_67 = arith.constant 7.812500e-03 : f32
    %114 = vector.broadcast %cst_67 : f32 to vector<1x1xf32>
    %115 = arith.mulf %113, %114 : vector<1x1xf32>
    %116 = vector.broadcast %115 : vector<1x1xf32> to vector<1x128xf32>
    %117 = arith.subf %109, %116 : vector<1x128xf32>
    %118 = arith.mulf %117, %117 : vector<1x128xf32>
    %cst_68 = arith.constant dense<0.000000e+00> : vector<1xf32>
    %119 = vector.multi_reduction <add>, %118, %cst_68 [1] : vector<1x128xf32> to vector<1xf32>
    %120 = vector.shape_cast %119 : vector<1xf32> to vector<1x1xf32>
    %cst_69 = arith.constant 7.812500e-03 : f32
    %121 = vector.broadcast %cst_69 : f32 to vector<1x1xf32>
    %122 = arith.mulf %120, %121 : vector<1x1xf32>
    %cst_70 = arith.constant 9.99999996E-13 : f32
    %123 = vector.broadcast %cst_70 : f32 to vector<1x1xf32>
    %124 = arith.addf %122, %123 : vector<1x1xf32>
    %125 = math.rsqrt %124 : vector<1x1xf32>
    %126 = vector.broadcast %125 : vector<1x1xf32> to vector<1x128xf32>
    %127 = arith.mulf %117, %126 : vector<1x128xf32>
    %128 = arith.mulf %127, %110 : vector<1x128xf32>
    %129 = arith.addf %128, %111 : vector<1x128xf32>
    %c0_71 = arith.constant 0 : index
    %c0_72 = arith.constant 0 : index
    %130 = vector.load %arg13[%c0_71, %c0_72] : memref<128x128xf32, #tpu.memory_space<vmem>>, vector<128x128xf32>
    %cst_73 = arith.constant dense<0.000000e+00> : vector<1x128xf32>
    %131 = tpu.matmul %129, %130, %cst_73 {dimension_numbers = #tpu.dot_dimension_numbers<[1], [0], [0], [1], [0, 0, 1, 1], [], []>} : vector<1x128xf32>, vector<128x128xf32>, vector<1x128xf32> -> vector<1x128xf32>
    %c0_74 = arith.constant 0 : index
    %c0_75 = arith.constant 0 : index
    %132 = vector.load %arg14[%c0_74, %c0_75] : memref<1x128xf32, #tpu.memory_space<vmem>>, vector<1x128xf32>
    %133 = arith.addf %131, %132 : vector<1x128xf32>
    %cst_76 = arith.constant 0.000000e+00 : f32
    %134 = vector.broadcast %cst_76 : f32 to vector<1x128xf32>
    %135 = arith.maximumf %133, %134 : vector<1x128xf32>
    %c0_77 = arith.constant 0 : index
    %c0_78 = arith.constant 0 : index
    %136 = vector.load %arg15[%c0_77, %c0_78] : memref<128x16xf32, #tpu.memory_space<vmem>>, vector<128x16xf32>
    %cst_79 = arith.constant dense<0.000000e+00> : vector<1x16xf32>
    %137 = tpu.matmul %135, %136, %cst_79 {dimension_numbers = #tpu.dot_dimension_numbers<[1], [0], [0], [1], [0, 0, 1, 1], [], []>} : vector<1x128xf32>, vector<128x16xf32>, vector<1x16xf32> -> vector<1x16xf32>
    %c0_80 = arith.constant 0 : index
    %c0_81 = arith.constant 0 : index
    %138 = vector.load %arg16[%c0_80, %c0_81] : memref<1x16xf32, #tpu.memory_space<vmem>>, vector<1x16xf32>
    %139 = arith.addf %137, %138 : vector<1x16xf32>
    %c1_82 = arith.constant 1 : index
    %c0_83 = arith.constant 0 : index
    %c0_84 = arith.constant 0 : index
    %140 = vector.load %arg0[%c1_82, %c0_83, %c0_84] : memref<2x8x64xf32, #tpu.memory_space<vmem>>, vector<1x8x64xf32>
    %141 = vector.shape_cast %140 : vector<1x8x64xf32> to vector<8x64xf32>
    %142 = vector.extract_strided_slice %141 {offsets = [0, 0], sizes = [6, 64], strides = [1, 1]} : vector<8x64xf32> to vector<6x64xf32>
    %c0_85 = arith.constant 0 : index
    %c0_86 = arith.constant 0 : index
    %c0_87 = arith.constant 0 : index
    %143 = vector.load %arg1[%c0_85, %c0_86, %c0_87] : memref<3x64x256xf32, #tpu.memory_space<vmem>>, vector<1x64x256xf32>
    %144 = vector.shape_cast %143 : vector<1x64x256xf32> to vector<64x256xf32>
    %cst_88 = arith.constant dense<0.000000e+00> : vector<6x256xf32>
    %145 = tpu.matmul %142, %144, %cst_88 {dimension_numbers = #tpu.dot_dimension_numbers<[1], [0], [0], [1], [0, 0, 1, 1], [], []>} : vector<6x64xf32>, vector<64x256xf32>, vector<6x256xf32> -> vector<6x256xf32>
    %146 = vector.extract_strided_slice %141 {offsets = [1, 0], sizes = [6, 64], strides = [1, 1]} : vector<8x64xf32> to vector<6x64xf32>
    %c1_89 = arith.constant 1 : index
    %c0_90 = arith.constant 0 : index
    %c0_91 = arith.constant 0 : index
    %147 = vector.load %arg1[%c1_89, %c0_90, %c0_91] : memref<3x64x256xf32, #tpu.memory_space<vmem>>, vector<1x64x256xf32>
    %148 = vector.shape_cast %147 : vector<1x64x256xf32> to vector<64x256xf32>
    %cst_92 = arith.constant dense<0.000000e+00> : vector<6x256xf32>
    %149 = tpu.matmul %146, %148, %cst_92 {dimension_numbers = #tpu.dot_dimension_numbers<[1], [0], [0], [1], [0, 0, 1, 1], [], []>} : vector<6x64xf32>, vector<64x256xf32>, vector<6x256xf32> -> vector<6x256xf32>
    %150 = arith.addf %145, %149 : vector<6x256xf32>
    %151 = vector.extract_strided_slice %141 {offsets = [2, 0], sizes = [6, 64], strides = [1, 1]} : vector<8x64xf32> to vector<6x64xf32>
    %c2_93 = arith.constant 2 : index
    %c0_94 = arith.constant 0 : index
    %c0_95 = arith.constant 0 : index
    %152 = vector.load %arg1[%c2_93, %c0_94, %c0_95] : memref<3x64x256xf32, #tpu.memory_space<vmem>>, vector<1x64x256xf32>
    %153 = vector.shape_cast %152 : vector<1x64x256xf32> to vector<64x256xf32>
    %cst_96 = arith.constant dense<0.000000e+00> : vector<6x256xf32>
    %154 = tpu.matmul %151, %153, %cst_96 {dimension_numbers = #tpu.dot_dimension_numbers<[1], [0], [0], [1], [0, 0, 1, 1], [], []>} : vector<6x64xf32>, vector<64x256xf32>, vector<6x256xf32> -> vector<6x256xf32>
    %155 = arith.addf %150, %154 : vector<6x256xf32>
    %c0_97 = arith.constant 0 : index
    %c0_98 = arith.constant 0 : index
    %156 = vector.load %arg2[%c0_97, %c0_98] : memref<1x256xf32, #tpu.memory_space<vmem>>, vector<1x256xf32>
    %157 = vector.broadcast %156 : vector<1x256xf32> to vector<6x256xf32>
    %158 = arith.addf %155, %157 : vector<6x256xf32>
    %159 = vector.extract_strided_slice %158 {offsets = [0, 0], sizes = [6, 128], strides = [1, 1]} : vector<6x256xf32> to vector<6x128xf32>
    %160 = vector.extract_strided_slice %158 {offsets = [0, 128], sizes = [6, 128], strides = [1, 1]} : vector<6x256xf32> to vector<6x128xf32>
    %161 = arith.negf %160 : vector<6x128xf32>
    %162 = math.exp %161 : vector<6x128xf32>
    %cst_99 = arith.constant 1.000000e+00 : f32
    %163 = vector.broadcast %cst_99 : f32 to vector<6x128xf32>
    %164 = arith.addf %163, %162 : vector<6x128xf32>
    %165 = arith.divf %163, %164 : vector<6x128xf32>
    %166 = arith.mulf %159, %165 : vector<6x128xf32>
    %c0_100 = arith.constant 0 : index
    %c0_101 = arith.constant 0 : index
    %167 = vector.load %arg3[%c0_100, %c0_101] : memref<128x64xf32, #tpu.memory_space<vmem>>, vector<128x64xf32>
    %cst_102 = arith.constant dense<0.000000e+00> : vector<6x64xf32>
    %168 = tpu.matmul %166, %167, %cst_102 {dimension_numbers = #tpu.dot_dimension_numbers<[1], [0], [0], [1], [0, 0, 1, 1], [], []>} : vector<6x128xf32>, vector<128x64xf32>, vector<6x64xf32> -> vector<6x64xf32>
    %c0_103 = arith.constant 0 : index
    %c0_104 = arith.constant 0 : index
    %169 = vector.load %arg4[%c0_103, %c0_104] : memref<1x64xf32, #tpu.memory_space<vmem>>, vector<1x64xf32>
    %170 = vector.broadcast %169 : vector<1x64xf32> to vector<6x64xf32>
    %171 = arith.addf %168, %170 : vector<6x64xf32>
    %cst_105 = arith.constant 0.000000e+00 : f32
    %172 = vector.broadcast %cst_105 : f32 to vector<6x64xf32>
    %173 = arith.maximumf %171, %172 : vector<6x64xf32>
    %174 = vector.extract_strided_slice %173 {offsets = [0, 0], sizes = [4, 64], strides = [1, 1]} : vector<6x64xf32> to vector<4x64xf32>
    %c0_106 = arith.constant 0 : index
    %c0_107 = arith.constant 0 : index
    %c0_108 = arith.constant 0 : index
    %175 = vector.load %arg5[%c0_106, %c0_107, %c0_108] : memref<3x64x256xf32, #tpu.memory_space<vmem>>, vector<1x64x256xf32>
    %176 = vector.shape_cast %175 : vector<1x64x256xf32> to vector<64x256xf32>
    %cst_109 = arith.constant dense<0.000000e+00> : vector<4x256xf32>
    %177 = tpu.matmul %174, %176, %cst_109 {dimension_numbers = #tpu.dot_dimension_numbers<[1], [0], [0], [1], [0, 0, 1, 1], [], []>} : vector<4x64xf32>, vector<64x256xf32>, vector<4x256xf32> -> vector<4x256xf32>
    %178 = vector.extract_strided_slice %173 {offsets = [1, 0], sizes = [4, 64], strides = [1, 1]} : vector<6x64xf32> to vector<4x64xf32>
    %c1_110 = arith.constant 1 : index
    %c0_111 = arith.constant 0 : index
    %c0_112 = arith.constant 0 : index
    %179 = vector.load %arg5[%c1_110, %c0_111, %c0_112] : memref<3x64x256xf32, #tpu.memory_space<vmem>>, vector<1x64x256xf32>
    %180 = vector.shape_cast %179 : vector<1x64x256xf32> to vector<64x256xf32>
    %cst_113 = arith.constant dense<0.000000e+00> : vector<4x256xf32>
    %181 = tpu.matmul %178, %180, %cst_113 {dimension_numbers = #tpu.dot_dimension_numbers<[1], [0], [0], [1], [0, 0, 1, 1], [], []>} : vector<4x64xf32>, vector<64x256xf32>, vector<4x256xf32> -> vector<4x256xf32>
    %182 = arith.addf %177, %181 : vector<4x256xf32>
    %183 = vector.extract_strided_slice %173 {offsets = [2, 0], sizes = [4, 64], strides = [1, 1]} : vector<6x64xf32> to vector<4x64xf32>
    %c2_114 = arith.constant 2 : index
    %c0_115 = arith.constant 0 : index
    %c0_116 = arith.constant 0 : index
    %184 = vector.load %arg5[%c2_114, %c0_115, %c0_116] : memref<3x64x256xf32, #tpu.memory_space<vmem>>, vector<1x64x256xf32>
    %185 = vector.shape_cast %184 : vector<1x64x256xf32> to vector<64x256xf32>
    %cst_117 = arith.constant dense<0.000000e+00> : vector<4x256xf32>
    %186 = tpu.matmul %183, %185, %cst_117 {dimension_numbers = #tpu.dot_dimension_numbers<[1], [0], [0], [1], [0, 0, 1, 1], [], []>} : vector<4x64xf32>, vector<64x256xf32>, vector<4x256xf32> -> vector<4x256xf32>
    %187 = arith.addf %182, %186 : vector<4x256xf32>
    %c0_118 = arith.constant 0 : index
    %c0_119 = arith.constant 0 : index
    %188 = vector.load %arg6[%c0_118, %c0_119] : memref<1x256xf32, #tpu.memory_space<vmem>>, vector<1x256xf32>
    %189 = vector.broadcast %188 : vector<1x256xf32> to vector<4x256xf32>
    %190 = arith.addf %187, %189 : vector<4x256xf32>
    %191 = vector.extract_strided_slice %190 {offsets = [0, 0], sizes = [4, 128], strides = [1, 1]} : vector<4x256xf32> to vector<4x128xf32>
    %192 = vector.extract_strided_slice %190 {offsets = [0, 128], sizes = [4, 128], strides = [1, 1]} : vector<4x256xf32> to vector<4x128xf32>
    %193 = arith.negf %192 : vector<4x128xf32>
    %194 = math.exp %193 : vector<4x128xf32>
    %cst_120 = arith.constant 1.000000e+00 : f32
    %195 = vector.broadcast %cst_120 : f32 to vector<4x128xf32>
    %196 = arith.addf %195, %194 : vector<4x128xf32>
    %197 = arith.divf %195, %196 : vector<4x128xf32>
    %198 = arith.mulf %191, %197 : vector<4x128xf32>
    %c0_121 = arith.constant 0 : index
    %c0_122 = arith.constant 0 : index
    %199 = vector.load %arg7[%c0_121, %c0_122] : memref<1x128xf32, #tpu.memory_space<vmem>>, vector<1x128xf32>
    %c0_123 = arith.constant 0 : index
    %c0_124 = arith.constant 0 : index
    %200 = vector.load %arg8[%c0_123, %c0_124] : memref<1x128xf32, #tpu.memory_space<vmem>>, vector<1x128xf32>
    %cst_125 = arith.constant dense<0.000000e+00> : vector<4xf32>
    %201 = vector.multi_reduction <add>, %198, %cst_125 [1] : vector<4x128xf32> to vector<4xf32>
    %202 = vector.shape_cast %201 : vector<4xf32> to vector<4x1xf32>
    %cst_126 = arith.constant 7.812500e-03 : f32
    %203 = vector.broadcast %cst_126 : f32 to vector<4x1xf32>
    %204 = arith.mulf %202, %203 : vector<4x1xf32>
    %205 = vector.broadcast %204 : vector<4x1xf32> to vector<4x128xf32>
    %206 = arith.subf %198, %205 : vector<4x128xf32>
    %207 = arith.mulf %206, %206 : vector<4x128xf32>
    %cst_127 = arith.constant dense<0.000000e+00> : vector<4xf32>
    %208 = vector.multi_reduction <add>, %207, %cst_127 [1] : vector<4x128xf32> to vector<4xf32>
    %209 = vector.shape_cast %208 : vector<4xf32> to vector<4x1xf32>
    %cst_128 = arith.constant 7.812500e-03 : f32
    %210 = vector.broadcast %cst_128 : f32 to vector<4x1xf32>
    %211 = arith.mulf %209, %210 : vector<4x1xf32>
    %cst_129 = arith.constant 9.99999996E-13 : f32
    %212 = vector.broadcast %cst_129 : f32 to vector<4x1xf32>
    %213 = arith.addf %211, %212 : vector<4x1xf32>
    %214 = math.rsqrt %213 : vector<4x1xf32>
    %215 = vector.broadcast %214 : vector<4x1xf32> to vector<4x128xf32>
    %216 = arith.mulf %206, %215 : vector<4x128xf32>
    %217 = vector.broadcast %199 : vector<1x128xf32> to vector<4x128xf32>
    %218 = arith.mulf %216, %217 : vector<4x128xf32>
    %219 = vector.broadcast %200 : vector<1x128xf32> to vector<4x128xf32>
    %220 = arith.addf %218, %219 : vector<4x128xf32>
    %221 = vector.extract_strided_slice %220 {offsets = [0, 0], sizes = [1, 128], strides = [1, 1]} : vector<4x128xf32> to vector<1x128xf32>
    %c0_130 = arith.constant 0 : index
    %c0_131 = arith.constant 0 : index
    %c0_132 = arith.constant 0 : index
    %222 = vector.load %arg9[%c0_130, %c0_131, %c0_132] : memref<4x128x256xf32, #tpu.memory_space<vmem>>, vector<1x128x256xf32>
    %223 = vector.shape_cast %222 : vector<1x128x256xf32> to vector<128x256xf32>
    %cst_133 = arith.constant dense<0.000000e+00> : vector<1x256xf32>
    %224 = tpu.matmul %221, %223, %cst_133 {dimension_numbers = #tpu.dot_dimension_numbers<[1], [0], [0], [1], [0, 0, 1, 1], [], []>} : vector<1x128xf32>, vector<128x256xf32>, vector<1x256xf32> -> vector<1x256xf32>
    %225 = vector.extract_strided_slice %220 {offsets = [1, 0], sizes = [1, 128], strides = [1, 1]} : vector<4x128xf32> to vector<1x128xf32>
    %c1_134 = arith.constant 1 : index
    %c0_135 = arith.constant 0 : index
    %c0_136 = arith.constant 0 : index
    %226 = vector.load %arg9[%c1_134, %c0_135, %c0_136] : memref<4x128x256xf32, #tpu.memory_space<vmem>>, vector<1x128x256xf32>
    %227 = vector.shape_cast %226 : vector<1x128x256xf32> to vector<128x256xf32>
    %cst_137 = arith.constant dense<0.000000e+00> : vector<1x256xf32>
    %228 = tpu.matmul %225, %227, %cst_137 {dimension_numbers = #tpu.dot_dimension_numbers<[1], [0], [0], [1], [0, 0, 1, 1], [], []>} : vector<1x128xf32>, vector<128x256xf32>, vector<1x256xf32> -> vector<1x256xf32>
    %229 = arith.addf %224, %228 : vector<1x256xf32>
    %230 = vector.extract_strided_slice %220 {offsets = [2, 0], sizes = [1, 128], strides = [1, 1]} : vector<4x128xf32> to vector<1x128xf32>
    %c2_138 = arith.constant 2 : index
    %c0_139 = arith.constant 0 : index
    %c0_140 = arith.constant 0 : index
    %231 = vector.load %arg9[%c2_138, %c0_139, %c0_140] : memref<4x128x256xf32, #tpu.memory_space<vmem>>, vector<1x128x256xf32>
    %232 = vector.shape_cast %231 : vector<1x128x256xf32> to vector<128x256xf32>
    %cst_141 = arith.constant dense<0.000000e+00> : vector<1x256xf32>
    %233 = tpu.matmul %230, %232, %cst_141 {dimension_numbers = #tpu.dot_dimension_numbers<[1], [0], [0], [1], [0, 0, 1, 1], [], []>} : vector<1x128xf32>, vector<128x256xf32>, vector<1x256xf32> -> vector<1x256xf32>
    %234 = arith.addf %229, %233 : vector<1x256xf32>
    %235 = vector.extract_strided_slice %220 {offsets = [3, 0], sizes = [1, 128], strides = [1, 1]} : vector<4x128xf32> to vector<1x128xf32>
    %c3_142 = arith.constant 3 : index
    %c0_143 = arith.constant 0 : index
    %c0_144 = arith.constant 0 : index
    %236 = vector.load %arg9[%c3_142, %c0_143, %c0_144] : memref<4x128x256xf32, #tpu.memory_space<vmem>>, vector<1x128x256xf32>
    %237 = vector.shape_cast %236 : vector<1x128x256xf32> to vector<128x256xf32>
    %cst_145 = arith.constant dense<0.000000e+00> : vector<1x256xf32>
    %238 = tpu.matmul %235, %237, %cst_145 {dimension_numbers = #tpu.dot_dimension_numbers<[1], [0], [0], [1], [0, 0, 1, 1], [], []>} : vector<1x128xf32>, vector<128x256xf32>, vector<1x256xf32> -> vector<1x256xf32>
    %239 = arith.addf %234, %238 : vector<1x256xf32>
    %c0_146 = arith.constant 0 : index
    %c0_147 = arith.constant 0 : index
    %240 = vector.load %arg10[%c0_146, %c0_147] : memref<1x256xf32, #tpu.memory_space<vmem>>, vector<1x256xf32>
    %241 = arith.addf %239, %240 : vector<1x256xf32>
    %242 = vector.extract_strided_slice %241 {offsets = [0, 0], sizes = [1, 128], strides = [1, 1]} : vector<1x256xf32> to vector<1x128xf32>
    %243 = vector.extract_strided_slice %241 {offsets = [0, 128], sizes = [1, 128], strides = [1, 1]} : vector<1x256xf32> to vector<1x128xf32>
    %244 = arith.negf %243 : vector<1x128xf32>
    %245 = math.exp %244 : vector<1x128xf32>
    %cst_148 = arith.constant 1.000000e+00 : f32
    %246 = vector.broadcast %cst_148 : f32 to vector<1x128xf32>
    %247 = arith.addf %246, %245 : vector<1x128xf32>
    %248 = arith.divf %246, %247 : vector<1x128xf32>
    %249 = arith.mulf %242, %248 : vector<1x128xf32>
    %c0_149 = arith.constant 0 : index
    %c0_150 = arith.constant 0 : index
    %250 = vector.load %arg11[%c0_149, %c0_150] : memref<1x128xf32, #tpu.memory_space<vmem>>, vector<1x128xf32>
    %c0_151 = arith.constant 0 : index
    %c0_152 = arith.constant 0 : index
    %251 = vector.load %arg12[%c0_151, %c0_152] : memref<1x128xf32, #tpu.memory_space<vmem>>, vector<1x128xf32>
    %cst_153 = arith.constant dense<0.000000e+00> : vector<1xf32>
    %252 = vector.multi_reduction <add>, %249, %cst_153 [1] : vector<1x128xf32> to vector<1xf32>
    %253 = vector.shape_cast %252 : vector<1xf32> to vector<1x1xf32>
    %cst_154 = arith.constant 7.812500e-03 : f32
    %254 = vector.broadcast %cst_154 : f32 to vector<1x1xf32>
    %255 = arith.mulf %253, %254 : vector<1x1xf32>
    %256 = vector.broadcast %255 : vector<1x1xf32> to vector<1x128xf32>
    %257 = arith.subf %249, %256 : vector<1x128xf32>
    %258 = arith.mulf %257, %257 : vector<1x128xf32>
    %cst_155 = arith.constant dense<0.000000e+00> : vector<1xf32>
    %259 = vector.multi_reduction <add>, %258, %cst_155 [1] : vector<1x128xf32> to vector<1xf32>
    %260 = vector.shape_cast %259 : vector<1xf32> to vector<1x1xf32>
    %cst_156 = arith.constant 7.812500e-03 : f32
    %261 = vector.broadcast %cst_156 : f32 to vector<1x1xf32>
    %262 = arith.mulf %260, %261 : vector<1x1xf32>
    %cst_157 = arith.constant 9.99999996E-13 : f32
    %263 = vector.broadcast %cst_157 : f32 to vector<1x1xf32>
    %264 = arith.addf %262, %263 : vector<1x1xf32>
    %265 = math.rsqrt %264 : vector<1x1xf32>
    %266 = vector.broadcast %265 : vector<1x1xf32> to vector<1x128xf32>
    %267 = arith.mulf %257, %266 : vector<1x128xf32>
    %268 = arith.mulf %267, %250 : vector<1x128xf32>
    %269 = arith.addf %268, %251 : vector<1x128xf32>
    %c0_158 = arith.constant 0 : index
    %c0_159 = arith.constant 0 : index
    %270 = vector.load %arg13[%c0_158, %c0_159] : memref<128x128xf32, #tpu.memory_space<vmem>>, vector<128x128xf32>
    %cst_160 = arith.constant dense<0.000000e+00> : vector<1x128xf32>
    %271 = tpu.matmul %269, %270, %cst_160 {dimension_numbers = #tpu.dot_dimension_numbers<[1], [0], [0], [1], [0, 0, 1, 1], [], []>} : vector<1x128xf32>, vector<128x128xf32>, vector<1x128xf32> -> vector<1x128xf32>
    %c0_161 = arith.constant 0 : index
    %c0_162 = arith.constant 0 : index
    %272 = vector.load %arg14[%c0_161, %c0_162] : memref<1x128xf32, #tpu.memory_space<vmem>>, vector<1x128xf32>
    %273 = arith.addf %271, %272 : vector<1x128xf32>
    %cst_163 = arith.constant 0.000000e+00 : f32
    %274 = vector.broadcast %cst_163 : f32 to vector<1x128xf32>
    %275 = arith.maximumf %273, %274 : vector<1x128xf32>
    %c0_164 = arith.constant 0 : index
    %c0_165 = arith.constant 0 : index
    %276 = vector.load %arg15[%c0_164, %c0_165] : memref<128x16xf32, #tpu.memory_space<vmem>>, vector<128x16xf32>
    %cst_166 = arith.constant dense<0.000000e+00> : vector<1x16xf32>
    %277 = tpu.matmul %275, %276, %cst_166 {dimension_numbers = #tpu.dot_dimension_numbers<[1], [0], [0], [1], [0, 0, 1, 1], [], []>} : vector<1x128xf32>, vector<128x16xf32>, vector<1x16xf32> -> vector<1x16xf32>
    %c0_167 = arith.constant 0 : index
    %c0_168 = arith.constant 0 : index
    %278 = vector.load %arg16[%c0_167, %c0_168] : memref<1x16xf32, #tpu.memory_space<vmem>>, vector<1x16xf32>
    %279 = arith.addf %277, %278 : vector<1x16xf32>
    %280 = tpu.concatenate %139, %279 in 0 : vector<1x16xf32>, vector<1x16xf32> -> vector<2x16xf32>
    %c0_169 = arith.constant 0 : index
    %c0_170 = arith.constant 0 : index
    %281 = vector.load %arg17[%c0_169, %c0_170] : memref<2x16xf32, #tpu.memory_space<vmem>>, vector<2x16xf32>
    tpu.vector_store %arg17[%c0_169, %c0_170], %280 {strides = array<i32>} : memref<2x16xf32, #tpu.memory_space<vmem>>, vector<2x16xf32>,
    return
  }
}

</mosaic_0001>

<bundles_post_ra>
// kernel: tile.58
= control target key start
LH: loop header
LB: loop body
LE: loop exit
PB: predicated region body
PF: predicated region fallthrough
CT: control target
= control target key end

     0   :  { %s28_s0 = inlined_call_operand.vmem [shape: f32[4], index: 0, kind: input, shape index: {}]   ;;  %s29_s1 = inlined_call_operand.vmem [shape: f32[16,4], index: 1, kind: output, shape index: {}]  }
   0x1   :  { %v4_v0 = vld [vmem:[%s28_s0] ss:$0 sm:$0xff] }
   0x2   :  { %5 = vst [vmem:[%s29_s1] sm:$0xff] %v4_v0  ;;  %8 = vst [vmem:[%s29_s1 + $0x8] sm:$0xff] %v4_v0 }

// kernel: tile.59
= control target key start
LH: loop header
LB: loop body
LE: loop exit
PB: predicated region body
PF: predicated region fallthrough
CT: control target
= control target key end

     0   :  { %s133_s10 = smov 60   ;;  %s134_s11 = smov 52   ;;  %vm3_vm0 = vcmask 31744   ;;  %vm9_vm1 = vcmask 523744   ;;  %vm15_vm2 = vcmask 490944   ;;  %vm21_vm3 = vcmask 458144   ;;  %s209_s0 = inlined_call_operand.vmem [shape: f32[16,4], index: 0, kind: input, shape index: {}]   ;;  %s210_s1 = inlined_call_operand.vmem [shape: f32[64], index: 1, kind: output, shape index: {}]  }
   0x1   :  { %v103_v0 = vld [vmem:[%s209_s0 + $0xf] sm:$0x1]   ;;  %v105_v1 = vld [vmem:[%s209_s0 + $0xd] sm:$0x1]   ;;  %v104_v2 = vld [vmem:[%s209_s0 + $0xe] sm:$0x1]  }
   0x2   :  { %7 = vrot.lane.b32.xlu0 %v103_v0, %s133_s10  ;;  %19 = vrot.lane.b32.xlu1 %v105_v1, %s134_s11  ;;  %v106_v3 = vld [vmem:[%s209_s0 + $0xc] sm:$0x1]   ;;  %s135_s16 = smov 56   ;;  %s136_s17 = smov 48   ;;  %v107_v4 = vld [vmem:[%s209_s0 + $0xb] sm:$0x1]  }
   0x3   :  { %v108_v5 = vld [vmem:[%s209_s0 + $0xa] sm:$0x1]   ;;  %v2_v6 = vld [vmem:[%s209_s0] sm:$0x1]   ;;  %s137_s24 = smov 44   ;;  %s138_s25 = smov 40  }
   0x4   :  { %4 = vst.msk [vmem:[#allocation0] sm:$0x1] %vm3_vm0, %v2_v6   ;;  %v109_v7 = vld [vmem:[%s209_s0 + $0x9] sm:$0x1]   ;;  %v110_v8 = vld [vmem:[%s209_s0 + $0x8] sm:$0x1]  }
   0x5   :  { %s139_s30 = smov 36   ;;  %s140_s2 = smov 32   ;;  %v111_v9 = vld [vmem:[%s209_s0 + $0x7] sm:$0x1]   ;;  %v112_v10 = vld [vmem:[%s209_s0 + $0x6] sm:$0x1]  }
   0x6   :  { %13 = vrot.lane.b32.xlu0 %v104_v2, %s135_s16  ;;  %25 = vrot.lane.b32.xlu1 %v106_v3, %s136_s17  ;;  %s141_s7 = smov 28   ;;  %s142_s8 = smov 24   ;;  %v113_v11 = vld [vmem:[%s209_s0 + $0x5] sm:$0x1]   ;;  %v114_v12 = vld [vmem:[%s209_s0 + $0x4] sm:$0x1]  }
   0x7   :  { %s143_s13 = smov 20   ;;  %s144_s14 = smov 16   ;;  %v115_v13 = vld [vmem:[%s209_s0 + $0x3] sm:$0x1]   ;;  %v116_v14 = vld [vmem:[%s209_s0 + $0x2] sm:$0x1]  }
   0x8   :  { %s145_s19 = smov 12   ;;  %s146_s20 = smov 8   ;;  %v117_v15 = vld [vmem:[%s209_s0 + $0x1] sm:$0x1]   ;;  %vm27_vm4 = vcmask 425344   ;;  %vm33_vm5 = vcmask 392544  }
   0x9   :  { %s147_s0 = smov 4   ;;  %vm39_vm6 = vcmask 359744   ;;  %vm45_vm7 = vcmask 326944   ;;  %vm51_vm8 = vcmask 294144   ;;  %vm57_vm9 = vcmask 261344  }
   0xa   :  { %31 = vrot.lane.b32.xlu0 %v107_v4, %s137_s24  ;;  %37 = vrot.lane.b32.xlu1 %v108_v5, %s138_s25  ;;  %vm63_vm10 = vcmask 228544   ;;  %vm69_vm11 = vcmask 195744   ;;  %vm75_vm12 = vcmask 162944   ;;  %vm81_vm13 = vcmask 130144  }
   0xb   :  { %vm87_vm14 = vcmask 97344   ;;  %vm93_vm15 = vcmask 64544  }
   0xe   :  { %43 = vrot.lane.b32.xlu0 %v109_v7, %s139_s30  ;;  %49 = vrot.lane.b32.xlu1 %v110_v8, %s140_s2 }
  0x12   :  { %55 = vrot.lane.b32.xlu0 %v111_v9, %s141_s7  ;;  %61 = vrot.lane.b32.xlu1 %v112_v10, %s142_s8 }
  0x16   :  { %67 = vrot.lane.b32.xlu0 %v113_v11, %s143_s13  ;;  %73 = vrot.lane.b32.xlu1 %v114_v12, %s144_s14 }
  0x1a   :  { %79 = vrot.lane.b32.xlu0 %v115_v13, %s145_s19  ;;  %85 = vrot.lane.b32.xlu1 %v116_v14, %s146_s20 }
  0x1e   :  { %91 = vrot.lane.b32.xlu0 %v117_v15, %s147_s0 }
  0x74   :  { %v8_v16 = vpop.permute.xlu0 %7   ;;  %v20_v17 = vpop.permute.xlu1 %19  }
  0x75   :  { %10 = vst.msk [vmem:[#allocation0] sm:$0x1] %vm9_vm1, %v8_v16  }
  0x78   :  { %v14_v18 = vpop.permute.xlu0 %13   ;;  %v26_v19 = vpop.permute.xlu1 %25  }
  0x79   :  { %16 = vst.msk [vmem:[#allocation0] sm:$0x1] %vm15_vm2, %v14_v18  }
  0x7a   :  { %22 = vst.msk [vmem:[#allocation0] sm:$0x1] %vm21_vm3, %v20_v17  }
  0x7b   :  { %28 = vst.msk [vmem:[#allocation0] sm:$0x1] %vm27_vm4, %v26_v19  }
  0x7c   :  { %v32_v20 = vpop.permute.xlu0 %31   ;;  %v38_v21 = vpop.permute.xlu1 %37  }
  0x7d   :  { %34 = vst.msk [vmem:[#allocation0] sm:$0x1] %vm33_vm5, %v32_v20  }
  0x7e   :  { %40 = vst.msk [vmem:[#allocation0] sm:$0x1] %vm39_vm6, %v38_v21  }
  0x80   :  { %v44_v22 = vpop.permute.xlu0 %43   ;;  %v50_v23 = vpop.permute.xlu1 %49  }
  0x81   :  { %46 = vst.msk [vmem:[#allocation0] sm:$0x1] %vm45_vm7, %v44_v22  }
  0x82   :  { %52 = vst.msk [vmem:[#allocation0] sm:$0x1] %vm51_vm8, %v50_v23  }
  0x84   :  { %v56_v24 = vpop.permute.xlu0 %55   ;;  %v62_v25 = vpop.permute.xlu1 %61  }
  0x85   :  { %58 = vst.msk [vmem:[#allocation0] sm:$0x1] %vm57_vm9, %v56_v24  }
  0x86   :  { %64 = vst.msk [vmem:[#allocation0] sm:$0x1] %vm63_vm10, %v62_v25  }
  0x88   :  { %v68_v26 = vpop.permute.xlu0 %67   ;;  %v74_v27 = vpop.permute.xlu1 %73  }
  0x89   :  { %70 = vst.msk [vmem:[#allocation0] sm:$0x1] %vm69_vm11, %v68_v26  }
  0x8a   :  { %76 = vst.msk [vmem:[#allocation0] sm:$0x1] %vm75_vm12, %v74_v27  }
  0x8c   :  { %v80_v28 = vpop.permute.xlu0 %79   ;;  %v86_v29 = vpop.permute.xlu1 %85  }
  0x8d   :  { %82 = vst.msk [vmem:[#allocation0] sm:$0x1] %vm81_vm13, %v80_v28  }
  0x8e   :  { %88 = vst.msk [vmem:[#allocation0] sm:$0x1] %vm87_vm14, %v86_v29  }
  0x90   :  { %v92_v30 = vpop.permute.xlu0 %91  }
  0x91   :  { %94 = vst.msk [vmem:[#allocation0] sm:$0x1] %vm93_vm15, %v92_v30  }
  0x98   :  { %v99_v31 = vld [vmem:[#allocation0] sm:$0x1] }
  0x99   :  { %102 = vst [vmem:[%s210_s1] sm:$0x1] %v99_v31 }

// kernel: stgcn_forward.1
= control target key start
LH: loop header
LB: loop body
LE: loop exit
PB: predicated region body
PF: predicated region fallthrough
CT: control target
= control target key end

     0   :  { %s5276_s0 = inlined_call_operand.vmem [shape: f32[2,8,64], index: 0, kind: input, shape index: {}]   ;;  %s5277_s1 = inlined_call_operand.vmem [shape: f32[3,64,256], index: 1, kind: input, shape index: {}]   ;;  %s5278_s2 = inlined_call_operand.vmem [shape: f32[1,256], index: 2, kind: input, shape index: {}]   ;;  %s5279_s3 = inlined_call_operand.vmem [shape: f32[128,64], index: 3, kind: input, shape index: {}]   ;;  %s5280_s4 = inlined_call_operand.vmem [shape: f32[1,64], index: 4, kind: input, shape index: {}]   ;;  %s5281_s5 = inlined_call_operand.vmem [shape: f32[3,64,256], index: 5, kind: input, shape index: {}]   ;;  %s5282_s6 = inlined_call_operand.vmem [shape: f32[1,256], index: 6, kind: input, shape index: {}]   ;;  %s5283_s7 = inlined_call_operand.vmem [shape: f32[1,128], index: 7, kind: input, shape index: {}]   ;;  %s5284_s8 = inlined_call_operand.vmem [shape: f32[1,128], index: 8, kind: input, shape index: {}]   ;;  %s5285_s9 = inlined_call_operand.vmem [shape: f32[4,128,256], index: 9, kind: input, shape index: {}]   ;;  %s5286_s10 = inlined_call_operand.vmem [shape: f32[1,256], index: 10, kind: input, shape index: {}]   ;;  %s5287_s11 = inlined_call_operand.vmem [shape: f32[1,128], index: 11, kind: input, shape index: {}]   ;;  %s5288_s12 = inlined_call_operand.vmem [shape: f32[1,128], index: 12, kind: input, shape index: {}]   ;;  %s5289_s13 = inlined_call_operand.vmem [shape: f32[128,128], index: 13, kind: input, shape index: {}]   ;;  %s5290_s14 = inlined_call_operand.vmem [shape: f32[1,128], index: 14, kind: input, shape index: {}]   ;;  %s5291_s15 = inlined_call_operand.vmem [shape: f32[128,16], index: 15, kind: input, shape index: {}]   ;;  %s5292_s16 = inlined_call_operand.vmem [shape: f32[1,16], index: 16, kind: input, shape index: {}]   ;;  %s5293_s17 = inlined_call_operand.hbm [shape: f32[2,16], index: 17, kind: output, shape index: {}]  }
   0x1   :  { %5303 = sst [smem:[#allocation11_spill]] %s5276_s0 }
   0x2   :  { %5304 = sst [smem:[#allocation12_spill]] %s5277_s1 }
   0x3   :  { %s5305_s26 = sld [smem:[#allocation12_spill]]  ;;  %vm93_vm0 = vcmask 523264   ;;  %v5296_v34 = vmov 0.0  }
   0x4   :  { %s5306_s27 = sld [smem:[#allocation11_spill]]  ;;  %160 = vmatprep.mubr.f32.mxu0 %v5296_v34 }
   0x9   :  { %v2462_v0 = vld [vmem:[%s5305_s26 + $0xf8] sm:$0xff]  ;;  %v2461_v2 = vld [vmem:[%s5305_s26 + $0xf0] sm:$0xff]  ;;  %v2460_v4 = vld [vmem:[%s5305_s26 + $0xe8] sm:$0xff] }
   0xa   :  { %v73_v1 = vld [vmem:[%s5305_s26 + $0x78] sm:$0xff]  ;;  %112 = vmatprep.subr.mxu0 %v2462_v0  ;;  %v72_v3 = vld [vmem:[%s5305_s26 + $0x70] sm:$0xff]  ;;  %v71_v5 = vld [vmem:[%s5305_s26 + $0x68] sm:$0xff] }
   0xb   :  { %185 = vmatprep.subr.mxu1 %v73_v1  ;;  %113 = vmatpush1.msra.mxu0 %v2461_v2  ;;  %v2459_v6 = vld [vmem:[%s5305_s26 + $0xe0] sm:$0xff]  ;;  %v2458_v8 = vld [vmem:[%s5305_s26 + $0xd8] sm:$0xff]  ;;  %v2457_v10 = vld [vmem:[%s5305_s26 + $0xd0] sm:$0xff] }
   0xc   :  { %186 = vmatpush1.msra.mxu1 %v72_v3  ;;  %v70_v7 = vld [vmem:[%s5305_s26 + $0x60] sm:$0xff]  ;;  %114 = vmatprep.subr.mxu0 %v2460_v4  ;;  %v69_v9 = vld [vmem:[%s5305_s26 + $0x58] sm:$0xff]  ;;  %v68_v11 = vld [vmem:[%s5305_s26 + $0x50] sm:$0xff] }
   0xd   :  { %187 = vmatprep.subr.mxu1 %v71_v5  ;;  %115 = vmatpush1.msra.mxu0 %v2459_v6  ;;  %v2456_v12 = vld [vmem:[%s5305_s26 + $0xc8] sm:$0xff]  ;;  %v2455_v14 = vld [vmem:[%s5305_s26 + $0xc0] sm:$0xff]  ;;  %v2454_v16 = vld [vmem:[%s5305_s26 + $0xb8] sm:$0xff] }
   0xe   :  { %188 = vmatpush1.msra.mxu1 %v70_v7  ;;  %v67_v13 = vld [vmem:[%s5305_s26 + $0x48] sm:$0xff]  ;;  %116 = vmatprep.subr.mxu0 %v2458_v8  ;;  %v66_v15 = vld [vmem:[%s5305_s26 + $0x40] sm:$0xff]  ;;  %v65_v17 = vld [vmem:[%s5305_s26 + $0x38] sm:$0xff] }
   0xf   :  { %189 = vmatprep.subr.mxu1 %v69_v9  ;;  %117 = vmatpush1.msra.mxu0 %v2457_v10  ;;  %v2453_v18 = vld [vmem:[%s5305_s26 + $0xb0] sm:$0xff]  ;;  %v2452_v20 = vld [vmem:[%s5305_s26 + $0xa8] sm:$0xff]  ;;  %v2451_v22 = vld [vmem:[%s5305_s26 + $0xa0] sm:$0xff] }
  0x10   :  { %190 = vmatpush1.msra.mxu1 %v68_v11  ;;  %118 = vmatprep.subr.mxu0 %v2456_v12  ;;  %v64_v19 = vld [vmem:[%s5305_s26 + $0x30] sm:$0xff]  ;;  %v63_v21 = vld [vmem:[%s5305_s26 + $0x28] sm:$0xff]  ;;  %v62_v23 = vld [vmem:[%s5305_s26 + $0x20] sm:$0xff] }
  0x11   :  { %191 = vmatprep.subr.mxu1 %v67_v13  ;;  %119 = vmatpush1.msra.mxu0 %v2455_v14  ;;  %v2450_v24 = vld [vmem:[%s5305_s26 + $0x98] sm:$0xff]  ;;  %v2449_v26 = vld [vmem:[%s5305_s26 + $0x90] sm:$0xff]  ;;  %v57_v28 = vld [vmem:[%s5306_s27] sm:$0xff] }
  0x12   :  { %192 = vmatpush1.msra.mxu1 %v66_v15  ;;  %120 = vmatprep.subr.mxu0 %v2454_v16  ;;  %v61_v25 = vld [vmem:[%s5305_s26 + $0x18] sm:$0xff]  ;;  %v60_v27 = vld [vmem:[%s5305_s26 + $0x10] sm:$0xff]  ;;  %v2448_v29 = vld [vmem:[%s5305_s26 + $0x88] sm:$0xff]  ;;  %v92_v33 = vrot.slane %v57_v28, 1 }
  0x13   :  { %193 = vmatprep.subr.mxu1 %v65_v17  ;;  %121 = vmatpush1.msra.mxu0 %v2453_v18  ;;  %v59_v30 = vld [vmem:[%s5305_s26 + $0x8] sm:$0xff]  ;;  %v2447_v31 = vld [vmem:[%s5305_s26 + $0x80] sm:$0xff]  ;;  %v2480_v35 = vld [vmem:[%s5305_s26 + $0x178] sm:$0xff] }
  0x14   :  { %194 = vmatpush1.msra.mxu1 %v64_v19  ;;  %122 = vmatprep.subr.mxu0 %v2452_v20  ;;  %v58_v32 = vld [vmem:[%s5305_s26] sm:$0xff] }
  0x15   :  { %195 = vmatprep.subr.mxu1 %v63_v21  ;;  %123 = vmatpush1.msra.mxu0 %v2451_v22 }
  0x16   :  { %196 = vmatpush1.msra.mxu1 %v62_v23  ;;  %124 = vmatprep.subr.mxu0 %v2450_v24 }
  0x17   :  { %197 = vmatprep.subr.mxu1 %v61_v25  ;;  %125 = vmatpush1.msra.mxu0 %v2449_v26 }
  0x18   :  { %198 = vmatpush1.msra.mxu1 %v60_v27  ;;  %126 = vmatprep.subr.mxu0 %v2448_v29 }
  0x19   :  { %199 = vmatprep.subr.mxu1 %v59_v30  ;;  %127 = vmatpush1.msra.mxu0 %v2447_v31 }
  0x1a   :  { %22 = vsyncpa [#allocation3], 0  ;;  %200 = vmatpush1.msra.mxu1 %v58_v32  ;;  %233 = vmatprep.mubr.f32.mxu1 %v5296_v34  ;;  %v2479_v36 = vld [vmem:[%s5305_s26 + $0x170] sm:$0xff]  ;;  %v2478_v37 = vld [vmem:[%s5305_s26 + $0x168] sm:$0xff]  ;;  %v257_v51 = vrot.slane %v57_v28, 2  ;;  %vm3232_vm1 = vmmov 0   ;;  %v335_v15 = vlaneseq }
  0x1b   :  { %2463 = vmatmul.mubr.msk.f32.vlgmr.msra.gmra.mxu0 %vm93_vm0, %v92_v33  ;;  %2464 = vmatmul.mubr.msk.f32.vlgmr.msra.gmra.mxu1 %vm93_vm0, %v57_v28  ;;  %v2477_v38 = vld [vmem:[%s5305_s26 + $0x160] sm:$0xff]  ;;  %v2476_v39 = vld [vmem:[%s5305_s26 + $0x158] sm:$0xff]  ;;  %v2475_v40 = vld [vmem:[%s5305_s26 + $0x150] sm:$0xff]  ;;  %vm745_vm2 = vcmask 1043456   ;;  %vm1222_vm3 = vcmask 1040384   ;;  %s3233_s22 = smov [#allocation2]  }
  0x1c   :  { %276 = vmatprep.subr.mxu0 %v2480_v35  ;;  %324 = vmatprep.mubr.f32.mxu0 %v5296_v34  ;;  %v2474_v41 = vld [vmem:[%s5305_s26 + $0x148] sm:$0xff]  ;;  %v2473_v42 = vld [vmem:[%s5305_s26 + $0x140] sm:$0xff]  ;;  %v2472_v43 = vld [vmem:[%s5305_s26 + $0x138] sm:$0xff]  ;;  %v336_v18 = vshrl.u32 %v335_v15, 7  ;;  %s2439_s23 = sshll.u32 %s3233_s22, 4  ;;  %vm2431_vm4 = vcmask 123904   ;;  %s2440_s23 = int_to_ptr.vmem [resolvable:$true] %s2439_s23 }
  0x1d   :  { %277 = vmatpush1.msra.mxu0 %v2479_v36  ;;  %2731 = vmatprep.subr.mxu1 %v5296_v34  ;;  %v2471_v44 = vld [vmem:[%s5305_s26 + $0x130] sm:$0xff]  ;;  %v2470_v45 = vld [vmem:[%s5305_s26 + $0x128] sm:$0xff]  ;;  %v2469_v46 = vld [vmem:[%s5305_s26 + $0x120] sm:$0xff]  ;;  %s3209_s24 = scalar_lea.vmem %s2440_s23, 32  ;;  %p3214_p1 = scmp.lt.s32.totalorder %s2440_s23, %s2440_s23 }
  0x1e   :  { %278 = vmatprep.subr.mxu0 %v2478_v37  ;;  %v2468_v47 = vld [vmem:[%s5305_s26 + $0x118] sm:$0xff]  ;;  %v2467_v48 = vld [vmem:[%s5305_s26 + $0x110] sm:$0xff]  ;;  %v2466_v49 = vld [vmem:[%s5305_s26 + $0x108] sm:$0xff]  ;;  %2763 = vmatprep.mubr.msk.f32.mxu1 %vm3232_vm1, %v5296_v34  ;;  %v3577_v19 = vsub.s32 1, %v336_v18  ;;  %v3586_v32 = vsub.s32 0, %v336_v18  ;;  %p3210_p0 = scmp.ne.s32.totalorder %s2440_s23, %s3209_s24  ;;  %p3215_p2 = scmp.lt.s32.totalorder %s3209_s24, %s3209_s24 }
  0x1f   :  { %279 = vmatpush1.msra.mxu0 %v2477_v38  ;;  %v2465_v50 = vld [vmem:[%s5305_s26 + $0x100] sm:$0xff]  ;;  %v369_v52 = vld [vmem:[%s5279_s3 + $0x78] sm:$0xff]  ;;  %v368_v53 = vld [vmem:[%s5279_s3 + $0x70] sm:$0xff] }
  0x20   :  { %280 = vmatprep.subr.mxu0 %v2476_v39  ;;  %2732 = vmatpush3.msra.mxu1 %v369_v52  ;;  %v367_v54 = vld [vmem:[%s5279_s3 + $0x68] sm:$0xff]  ;;  %v366_v55 = vld [vmem:[%s5279_s3 + $0x60] sm:$0xff]  ;;  %v365_v56 = vld [vmem:[%s5279_s3 + $0x58] sm:$0xff]  ;;  %p3216_p3 = por %p3215_p2, %p3214_p1 }
  0x21   :  { %281 = vmatpush1.msra.mxu0 %v2475_v40  ;;  %2733 = vmatprep.subr.mxu1 %v5296_v34  ;;  %v364_v57 = vld [vmem:[%s5279_s3 + $0x50] sm:$0xff]  ;;  %v363_v58 = vld [vmem:[%s5279_s3 + $0x48] sm:$0xff]  ;;  %v362_v59 = vld [vmem:[%s5279_s3 + $0x40] sm:$0xff] }
  0x22   :  { %282 = vmatprep.subr.mxu0 %v2474_v41  ;;  %2734 = vmatpush3.msra.mxu1 %v368_v53  ;;  %v361_v60 = vld [vmem:[%s5279_s3 + $0x38] sm:$0xff]  ;;  %v360_v61 = vld [vmem:[%s5279_s3 + $0x30] sm:$0xff]  ;;  %v359_v62 = vld [vmem:[%s5279_s3 + $0x28] sm:$0xff]  ;;  %p3217_p4 = pnand %p3216_p3, %p3210_p0 }
  0x23   :  { %283 = vmatpush1.msra.mxu0 %v2473_v42  ;;  %2735 = vmatprep.subr.mxu1 %v5296_v34  ;;  %v358_v63 = vld [vmem:[%s5279_s3 + $0x20] sm:$0xff]  ;;  %v357_v0 = vld [vmem:[%s5279_s3 + $0x18] sm:$0xff]  ;;  %v356_v1 = vld [vmem:[%s5279_s3 + $0x10] sm:$0xff] }
  0x24   :  { %284 = vmatprep.subr.mxu0 %v2472_v43  ;;  %2736 = vmatpush3.msra.mxu1 %v367_v54  ;;  %v355_v2 = vld [vmem:[%s5279_s3 + $0x8] sm:$0xff]  ;;  %v354_v3 = vld [vmem:[%s5279_s3] sm:$0xff]  ;;  %v2499_v4 = vld [vmem:[%s5281_s5 + $0xf8] sm:$0xff] }
  0x25   :  { %285 = vmatpush1.msra.mxu0 %v2471_v44  ;;  %2737 = vmatprep.subr.mxu1 %v5296_v34  ;;  %v2498_v5 = vld [vmem:[%s5281_s5 + $0xf0] sm:$0xff]  ;;  %v2517_v6 = vld [vmem:[%s5281_s5 + $0x178] sm:$0xff]  ;;  %v2497_v7 = vld [vmem:[%s5281_s5 + $0xe8] sm:$0xff] }
  0x26   :  { %286 = vmatprep.subr.mxu0 %v2470_v45  ;;  %2738 = vmatpush3.msra.mxu1 %v366_v55  ;;  %v2496_v8 = vld [vmem:[%s5281_s5 + $0xe0] sm:$0xff]  ;;  %v2495_v9 = vld [vmem:[%s5281_s5 + $0xd8] sm:$0xff]  ;;  %v2494_v10 = vld [vmem:[%s5281_s5 + $0xd0] sm:$0xff] }
  0x27   :  { %287 = vmatpush1.msra.mxu0 %v2469_v46  ;;  %2739 = vmatprep.subr.mxu1 %v5296_v34  ;;  %v2493_v11 = vld [vmem:[%s5281_s5 + $0xc8] sm:$0xff]  ;;  %v2492_v12 = vld [vmem:[%s5281_s5 + $0xc0] sm:$0xff]  ;;  %v2491_v13 = vld [vmem:[%s5281_s5 + $0xb8] sm:$0xff] }
  0x28   :  { %288 = vmatprep.subr.mxu0 %v2468_v47  ;;  %2740 = vmatpush3.msra.mxu1 %v365_v56  ;;  %v2490_v14 = vld [vmem:[%s5281_s5 + $0xb0] sm:$0xff]  ;;  %v333_v23 = vld [vmem:[%s5278_s2] sm:$0x3]  ;;  %v2515_v41 = vld [vmem:[%s5281_s5 + $0x168] sm:$0xff] }
  0x29   :  { %289 = vmatpush1.msra.mxu0 %v2467_v48  ;;  %2741 = vmatprep.subr.mxu1 %v5296_v34  ;;  %v3583_v25 = vrot.slane %v333_v23, %v3577_v19  ;;  %v3589_v36 = vrot.slane %v333_v23, %v3586_v32  ;;  %v2516_v40 = vld [vmem:[%s5281_s5 + $0x170] sm:$0xff]  ;;  %v2514_v42 = vld [vmem:[%s5281_s5 + $0x160] sm:$0xff]  ;;  %v2513_v43 = vld [vmem:[%s5281_s5 + $0x158] sm:$0xff] }
  0x2a   :  { %290 = vmatprep.subr.mxu0 %v2466_v49  ;;  %2742 = vmatpush3.msra.mxu1 %v364_v57  ;;  %v2512_v44 = vld [vmem:[%s5281_s5 + $0x150] sm:$0xff]  ;;  %v2511_v45 = vld [vmem:[%s5281_s5 + $0x148] sm:$0xff]  ;;  %v2510_v46 = vld [vmem:[%s5281_s5 + $0x140] sm:$0xff] }
  0x2b   :  { %291 = vmatpush1.msra.mxu0 %v2465_v50  ;;  %2743 = vmatprep.subr.mxu1 %v5296_v34  ;;  %v2509_v47 = vld [vmem:[%s5281_s5 + $0x138] sm:$0xff]  ;;  %v2489_v48 = vld [vmem:[%s5281_s5 + $0xa8] sm:$0xff]  ;;  %v2508_v49 = vld [vmem:[%s5281_s5 + $0x130] sm:$0xff] }
  0x2c   :  { %2481 = vmatmul.mubr.msk.f32.vlgmr.msra.gmra.mxu0 %vm93_vm0, %v257_v51  ;;  %2744 = vmatpush3.msra.mxu1 %v363_v58  ;;  %v2488_v50 = vld [vmem:[%s5281_s5 + $0xa0] sm:$0xff]  ;;  %v2507_v51 = vld [vmem:[%s5281_s5 + $0x128] sm:$0xff]  ;;  %v2487_v52 = vld [vmem:[%s5281_s5 + $0x98] sm:$0xff] }
  0x2d   :  { %549 = vmatprep.mubr.f32.mxu0 %v5296_v34  ;;  %2745 = vmatprep.subr.mxu1 %v5296_v34  ;;  %v2506_v53 = vld [vmem:[%s5281_s5 + $0x120] sm:$0xff]  ;;  %v2486_v54 = vld [vmem:[%s5281_s5 + $0x90] sm:$0xff]  ;;  %v2505_v55 = vld [vmem:[%s5281_s5 + $0x118] sm:$0xff] }
  0x2e   :  { %2746 = vmatpush3.msra.mxu1 %v362_v59  ;;  %501 = vmatprep.subr.mxu0 %v2499_v4  ;;  %v2485_v56 = vld [vmem:[%s5281_s5 + $0x88] sm:$0xff]  ;;  %v2504_v57 = vld [vmem:[%s5281_s5 + $0x110] sm:$0xff]  ;;  %v2484_v58 = vld [vmem:[%s5281_s5 + $0x80] sm:$0xff] }
  0x2f   :  { %2747 = vmatprep.subr.mxu1 %v5296_v34  ;;  %502 = vmatpush1.msra.mxu0 %v2498_v5  ;;  %v2503_v59 = vld [vmem:[%s5281_s5 + $0x108] sm:$0xff]  ;;  %v462_v5 = vld [vmem:[%s5281_s5 + $0x70] sm:$0xff]  ;;  %v452_v15 = vld [vmem:[%s5281_s5 + $0x20] sm:$0xff] }
  0x30   :  { %2748 = vmatpush3.msra.mxu1 %v361_v60  ;;  %503 = vmatprep.subr.mxu0 %v2497_v7  ;;  %v463_v60 = vld [vmem:[%s5281_s5 + $0x78] sm:$0xff]  ;;  %v460_v7 = vld [vmem:[%s5281_s5 + $0x60] sm:$0xff]  ;;  %v449_v18 = vld [vmem:[%s5281_s5 + $0x8] sm:$0xff] }
  0x31   :  { %2749 = vmatprep.subr.mxu1 %v5296_v34  ;;  %504 = vmatpush1.msra.mxu0 %v2496_v8  ;;  %v459_v8 = vld [vmem:[%s5281_s5 + $0x58] sm:$0xff] }
  0x32   :  { %2750 = vmatpush3.msra.mxu1 %v360_v61  ;;  %505 = vmatprep.subr.mxu0 %v2495_v9  ;;  %v2502_v61 = vld [vmem:[%s5281_s5 + $0x100] sm:$0xff]  ;;  %v458_v9 = vld [vmem:[%s5281_s5 + $0x50] sm:$0xff] }
  0x33   :  { %2751 = vmatprep.subr.mxu1 %v5296_v34  ;;  %506 = vmatpush1.msra.mxu0 %v2494_v10  ;;  %v457_v10 = vld [vmem:[%s5281_s5 + $0x48] sm:$0xff] }
  0x34   :  { %2752 = vmatpush3.msra.mxu1 %v359_v62  ;;  %507 = vmatprep.subr.mxu0 %v2493_v11  ;;  %v2483_v62 = vld [vmem:[%s5280_s4] ss:$0 sm:$0xff] }
  0x35   :  { %2753 = vmatprep.subr.mxu1 %v5296_v34  ;;  %508 = vmatpush1.msra.mxu0 %v2492_v12  ;;  %v456_v11 = vld [vmem:[%s5281_s5 + $0x40] sm:$0xff]  ;;  %v455_v12 = vld [vmem:[%s5281_s5 + $0x38] sm:$0xff] }
  0x36   :  { %2754 = vmatpush3.msra.mxu1 %v358_v63  ;;  %509 = vmatprep.subr.mxu0 %v2491_v13  ;;  %v454_v13 = vld [vmem:[%s5281_s5 + $0x30] sm:$0xff] }
  0x37   :  { %2755 = vmatprep.subr.mxu1 %v5296_v34  ;;  %510 = vmatpush1.msra.mxu0 %v2490_v14  ;;  %v453_v14 = vld [vmem:[%s5281_s5 + $0x28] sm:$0xff] }
  0x38   :  { %2756 = vmatpush3.msra.mxu1 %v357_v0  ;;  %511 = vmatprep.subr.mxu0 %v2489_v48  ;;  %v2553_v48 = vld [vmem:[%s5285_s9 + $0x1f8] sm:$0xff] }
  0x39   :  { %2757 = vmatprep.subr.mxu1 %v5296_v34  ;;  %512 = vmatpush1.msra.mxu0 %v2488_v50  ;;  %v2552_v50 = vld [vmem:[%s5285_s9 + $0x1f0] sm:$0xff] }
  0x3a   :  { %2758 = vmatpush3.msra.mxu1 %v356_v1  ;;  %513 = vmatprep.subr.mxu0 %v2487_v52  ;;  %v2551_v52 = vld [vmem:[%s5285_s9 + $0x1e8] sm:$0xff] }
  0x3b   :  { %2759 = vmatprep.subr.mxu1 %v5296_v34  ;;  %514 = vmatpush1.msra.mxu0 %v2486_v54  ;;  %v2550_v54 = vld [vmem:[%s5285_s9 + $0x1e0] sm:$0xff] }
  0x3c   :  { %2760 = vmatpush3.msra.mxu1 %v355_v2  ;;  %515 = vmatprep.subr.mxu0 %v2485_v56  ;;  %v2549_v56 = vld [vmem:[%s5285_s9 + $0x1d8] sm:$0xff] }
  0x3d   :  { %2761 = vmatprep.subr.mxu1 %v5296_v34  ;;  %516 = vmatpush1.msra.mxu0 %v2484_v58  ;;  %v2548_v58 = vld [vmem:[%s5285_s9 + $0x1d0] sm:$0xff] }
  0x3e   :  { %2762 = vmatpush3.msra.mxu1 %v354_v3  ;;  %574 = vmatprep.subr.mxu0 %v463_v60  ;;  %v797_v60 = vld [vmem:[%s5285_s9 + $0xc0] sm:$0xff] }
  0x3f   :  { %665 = vmatprep.subr.mxu1 %v2517_v6  ;;  %v461_v6 = vld [vmem:[%s5281_s5 + $0x68] sm:$0xff] }
  0xdb   :  { %v162_v16 = vpop.f32.mrf.mxu0  ;;  %v235_v17 = vpop.f32.mrf.mxu1 }
  0xdc   :  { %v236_v33 = vadd.f32 %v235_v17, %v162_v16  ;;  %v451_v16 = vld [vmem:[%s5281_s5 + $0x18] sm:$0xff]  ;;  %v450_v17 = vld [vmem:[%s5281_s5 + $0x10] sm:$0xff] }
  0xdd   :  { %v164_v20 = vpop.f32.mrf.mxu0  ;;  %v237_v21 = vpop.f32.mrf.mxu1 }
  0xde   :  { %v238_v24 = vadd.f32 %v237_v21, %v164_v20  ;;  %v448_v20 = vld [vmem:[%s5281_s5] sm:$0xff] }
  0xec   :  { %v326_v22 = vpop.f32.mrf.mxu0 }
  0xed   :  { %v331_v35 = vadd.f32 %v326_v22, %v236_v33 }
  0xee   :  { %v328_v26 = vpop.f32.mrf.mxu0 }
  0xef   :  { %v332_v27 = vadd.f32 %v328_v26, %v238_v24  ;;  %v345_v37 = vadd.f32 %v3589_v36, %v331_v35 }
  0xf1   :  { %v346_v28 = vadd.f32 %v3583_v25, %v332_v27  ;;  %v722_v27 = vld [vmem:[%s5282_s6] sm:$0x3] }
  0xf3   :  { %v2482_v29 = vmul.f32 -1.442695, %v346_v28 }
  0xf5   :  { %2944 = vpow2.f32 %v2482_v29  ;;  %v3717_v29 = vrot.slane %v722_v27, %v3577_v19 }
 0x102   :  { %v2945_v30 = vpop.eup %2944 }
 0x103   :  { %v350_v31 = vadd.f32 1.0, %v2945_v30 }
 0x105   :  { %2946 = vrcp.f32 %v350_v31 }
 0x112   :  { %v2947_v38 = vpop.eup %2946 }
 0x113   :  { %v353_v39 = vmul.f32 %v2947_v38, %v345_v37 }
 0x115   :  { %2764 = vmatmul.mubr.f32.vlgmr.msra.gmra.mxu1 %v353_v39 }
 0x116   :  { %666 = vmatpush1.msra.mxu1 %v2516_v40  ;;  %713 = vmatprep.mubr.f32.mxu1 %v5296_v34 }
 0x117   :  { %667 = vmatprep.subr.mxu1 %v2515_v41  ;;  %v3721_v41 = vrot.slane %v722_v27, %v3586_v32  ;;  %v2535_v27 = vld [vmem:[%s5285_s9 + $0x168] sm:$0xff] }
 0x118   :  { %668 = vmatpush1.msra.mxu1 %v2514_v42 }
 0x119   :  { %669 = vmatprep.subr.mxu1 %v2513_v43 }
 0x11a   :  { %670 = vmatpush1.msra.mxu1 %v2512_v44 }
 0x11b   :  { %671 = vmatprep.subr.mxu1 %v2511_v45 }
 0x11c   :  { %672 = vmatpush1.msra.mxu1 %v2510_v46  ;;  %v804_v46 = vld [vmem:[%s5285_s9 + $0xf8] sm:$0xff] }
 0x11d   :  { %673 = vmatprep.subr.mxu1 %v2509_v47  ;;  %v803_v47 = vld [vmem:[%s5285_s9 + $0xf0] sm:$0xff] }
 0x11e   :  { %674 = vmatpush1.msra.mxu1 %v2508_v49  ;;  %v802_v49 = vld [vmem:[%s5285_s9 + $0xe8] sm:$0xff] }
 0x11f   :  { %675 = vmatprep.subr.mxu1 %v2507_v51  ;;  %v801_v51 = vld [vmem:[%s5285_s9 + $0xe0] sm:$0xff] }
 0x120   :  { %676 = vmatpush1.msra.mxu1 %v2506_v53  ;;  %v800_v53 = vld [vmem:[%s5285_s9 + $0xd8] sm:$0xff] }
 0x121   :  { %677 = vmatprep.subr.mxu1 %v2505_v55  ;;  %v799_v55 = vld [vmem:[%s5285_s9 + $0xd0] sm:$0xff] }
 0x122   :  { %678 = vmatpush1.msra.mxu1 %v2504_v57  ;;  %v798_v57 = vld [vmem:[%s5285_s9 + $0xc8] sm:$0xff] }
 0x123   :  { %679 = vmatprep.subr.mxu1 %v2503_v59  ;;  %v2547_v59 = vld [vmem:[%s5285_s9 + $0x1c8] sm:$0xff] }
 0x124   :  { %680 = vmatpush1.msra.mxu1 %v2502_v61  ;;  %v796_v61 = vld [vmem:[%s5285_s9 + $0xb8] sm:$0xff] }
 0x125   :  { %912 = vmatprep.subr.mxu1 %v804_v46  ;;  %v2528_v46 = vld [vmem:[%s5285_s9 + $0x130] sm:$0xff] }
 0x1d5   :  { %v443_v63 = vpop.f32.mrf.mxu1 }
 0x1d6   :  { %v444_v0 = vadd.f32 %v2483_v62, %v443_v63 }
 0x1d7   :  { %v2765_v1 = vpop.f32.mrf.mxu1 }
 0x1d8   :  { %v447_v2 = vmax.f32 %v444_v0, 0.0 }
 0x1da   :  { %v482_v3 = vrot.slane %v447_v2, 1  ;;  %v646_v4 = vrot.slane %v447_v2, 2 }
 0x1dc   :  { %2500 = vmatmul.mubr.msk.f32.vlgmr.msra.gmra.mxu0 %vm93_vm0, %v482_v3  ;;  %2518 = vmatmul.mubr.msk.f32.vlgmr.msra.gmra.mxu1 %vm93_vm0, %v646_v4  ;;  %v2546_v3 = vld [vmem:[%s5285_s9 + $0x1c0] sm:$0xff]  ;;  %v795_v4 = vld [vmem:[%s5285_s9 + $0xb0] sm:$0xff] }
 0x1dd   :  { %575 = vmatpush1.msra.mxu0 %v462_v5  ;;  %622 = vmatprep.mubr.f32.mxu0 %v5296_v34  ;;  %v2545_v5 = vld [vmem:[%s5285_s9 + $0x1b8] sm:$0xff] }
 0x1de   :  { %576 = vmatprep.subr.mxu0 %v461_v6  ;;  %976 = vmatprep.mubr.f32.mxu1 %v5296_v34  ;;  %v794_v6 = vld [vmem:[%s5285_s9 + $0xa8] sm:$0xff] }
 0x1df   :  { %577 = vmatpush1.msra.mxu0 %v460_v7  ;;  %913 = vmatpush1.msra.mxu1 %v803_v47  ;;  %v2544_v7 = vld [vmem:[%s5285_s9 + $0x1b0] sm:$0xff]  ;;  %v777_v47 = vld [vmem:[%s5285_s9 + $0x20] sm:$0xff] }
 0x1e0   :  { %578 = vmatprep.subr.mxu0 %v459_v8  ;;  %914 = vmatprep.subr.mxu1 %v802_v49  ;;  %v793_v8 = vld [vmem:[%s5285_s9 + $0xa0] sm:$0xff]  ;;  %v776_v49 = vld [vmem:[%s5285_s9 + $0x18] sm:$0xff] }
 0x1e1   :  { %579 = vmatpush1.msra.mxu0 %v458_v9  ;;  %915 = vmatpush1.msra.mxu1 %v801_v51  ;;  %v2543_v9 = vld [vmem:[%s5285_s9 + $0x1a8] sm:$0xff]  ;;  %v775_v51 = vld [vmem:[%s5285_s9 + $0x10] sm:$0xff] }
 0x1e2   :  { %580 = vmatprep.subr.mxu0 %v457_v10  ;;  %916 = vmatprep.subr.mxu1 %v800_v53  ;;  %v792_v10 = vld [vmem:[%s5285_s9 + $0x98] sm:$0xff]  ;;  %v774_v53 = vld [vmem:[%s5285_s9 + $0x8] sm:$0xff] }
 0x1e3   :  { %581 = vmatpush1.msra.mxu0 %v456_v11  ;;  %917 = vmatpush1.msra.mxu1 %v799_v55  ;;  %v2542_v11 = vld [vmem:[%s5285_s9 + $0x1a0] sm:$0xff] }
 0x1e4   :  { %582 = vmatprep.subr.mxu0 %v455_v12  ;;  %918 = vmatprep.subr.mxu1 %v798_v57  ;;  %v791_v12 = vld [vmem:[%s5285_s9 + $0x90] sm:$0xff]  ;;  %v773_v55 = vld [vmem:[%s5285_s9] sm:$0xff]  ;;  %v2617_v57 = vld [vmem:[%s5285_s9 + $0x3f8] sm:$0xff] }
 0x1e5   :  { %583 = vmatpush1.msra.mxu0 %v454_v13  ;;  %919 = vmatpush1.msra.mxu1 %v797_v60  ;;  %v2541_v13 = vld [vmem:[%s5285_s9 + $0x198] sm:$0xff] }
 0x1e6   :  { %584 = vmatprep.subr.mxu0 %v453_v14  ;;  %920 = vmatprep.subr.mxu1 %v796_v61  ;;  %v790_v14 = vld [vmem:[%s5285_s9 + $0x88] sm:$0xff] }
 0x1e7   :  { %585 = vmatpush1.msra.mxu0 %v452_v15  ;;  %921 = vmatpush1.msra.mxu1 %v795_v4  ;;  %v2540_v15 = vld [vmem:[%s5285_s9 + $0x190] sm:$0xff] }
 0x1e8   :  { %586 = vmatprep.subr.mxu0 %v451_v16  ;;  %922 = vmatprep.subr.mxu1 %v794_v6  ;;  %v789_v16 = vld [vmem:[%s5285_s9 + $0x80] sm:$0xff]  ;;  %v2616_v6 = vld [vmem:[%s5285_s9 + $0x3f0] sm:$0xff] }
 0x1e9   :  { %587 = vmatpush1.msra.mxu0 %v450_v17  ;;  %923 = vmatpush1.msra.mxu1 %v793_v8  ;;  %v2539_v17 = vld [vmem:[%s5285_s9 + $0x188] sm:$0xff] }
 0x1ea   :  { %588 = vmatprep.subr.mxu0 %v449_v18  ;;  %924 = vmatprep.subr.mxu1 %v792_v10  ;;  %v788_v18 = vld [vmem:[%s5285_s9 + $0x78] sm:$0xff]  ;;  %v2583_v10 = vld [vmem:[%s5285_s9 + $0x2e8] sm:$0xff] }
 0x1eb   :  { %589 = vmatpush1.msra.mxu0 %v448_v20  ;;  %925 = vmatpush1.msra.mxu1 %v791_v12  ;;  %v2538_v20 = vld [vmem:[%s5285_s9 + $0x180] sm:$0xff] }
 0x1ec   :  { %2501 = vmatmul.mubr.msk.f32.vlgmr.msra.gmra.mxu0 %vm93_vm0, %v447_v2  ;;  %841 = vmatprep.subr.mxu0 %v2553_v48  ;;  %v2527_v48 = vld [vmem:[%s5285_s9 + $0x128] sm:$0xff]  ;;  %v2582_v12 = vld [vmem:[%s5285_s9 + $0x2e0] sm:$0xff] }
 0x1ed   :  { %905 = vmatprep.mubr.f32.mxu0 %v5296_v34  ;;  %842 = vmatpush1.msra.mxu0 %v2552_v50  ;;  %v2526_v50 = vld [vmem:[%s5285_s9 + $0x120] sm:$0xff] }
 0x1ee   :  { %843 = vmatprep.subr.mxu0 %v2551_v52  ;;  %926 = vmatprep.subr.mxu1 %v790_v14  ;;  %v2525_v52 = vld [vmem:[%s5285_s9 + $0x118] sm:$0xff] }
 0x1ef   :  { %844 = vmatpush1.msra.mxu0 %v2550_v54  ;;  %927 = vmatpush1.msra.mxu1 %v789_v16  ;;  %v2524_v54 = vld [vmem:[%s5285_s9 + $0x110] sm:$0xff]  ;;  %v2581_v14 = vld [vmem:[%s5285_s9 + $0x2d8] sm:$0xff] }
 0x1f0   :  { %845 = vmatprep.subr.mxu0 %v2549_v56  ;;  %928 = vmatprep.subr.mxu1 %v788_v18  ;;  %v2523_v56 = vld [vmem:[%s5285_s9 + $0x108] sm:$0xff]  ;;  %v2580_v16 = vld [vmem:[%s5285_s9 + $0x2d0] sm:$0xff] }
 0x1f1   :  { %846 = vmatpush1.msra.mxu0 %v2548_v58  ;;  %v2522_v58 = vld [vmem:[%s5285_s9 + $0x100] sm:$0xff]  ;;  %v2579_v18 = vld [vmem:[%s5285_s9 + $0x2c8] sm:$0xff] }
 0x1f2   :  { %847 = vmatprep.subr.mxu0 %v2547_v59  ;;  %v2585_v59 = vld [vmem:[%s5285_s9 + $0x2f8] sm:$0xff] }
 0x1f3   :  { %848 = vmatpush1.msra.mxu0 %v2546_v3  ;;  %v2521_v3 = vld [vmem:[%s5284_s8] ss:$0 sm:$0xff] }
 0x1f4   :  { %849 = vmatprep.subr.mxu0 %v2545_v5 }
 0x1f5   :  { %850 = vmatpush1.msra.mxu0 %v2544_v7  ;;  %v2615_v7 = vld [vmem:[%s5285_s9 + $0x3e8] sm:$0xff] }
 0x1f6   :  { %851 = vmatprep.subr.mxu0 %v2543_v9  ;;  %v2614_v9 = vld [vmem:[%s5285_s9 + $0x3e0] sm:$0xff] }
 0x1f7   :  { %852 = vmatpush1.msra.mxu0 %v2542_v11  ;;  %v2613_v11 = vld [vmem:[%s5285_s9 + $0x3d8] sm:$0xff] }
 0x1f8   :  { %853 = vmatprep.subr.mxu0 %v2541_v13  ;;  %v2612_v13 = vld [vmem:[%s5285_s9 + $0x3d0] sm:$0xff] }
 0x1f9   :  { %854 = vmatpush1.msra.mxu0 %v2540_v15  ;;  %v2611_v15 = vld [vmem:[%s5285_s9 + $0x3c8] sm:$0xff] }
 0x1fa   :  { %855 = vmatprep.subr.mxu0 %v2539_v17  ;;  %v2610_v17 = vld [vmem:[%s5285_s9 + $0x3c0] sm:$0xff] }
 0x1fb   :  { %856 = vmatpush1.msra.mxu0 %v2538_v20  ;;  %v2609_v20 = vld [vmem:[%s5285_s9 + $0x3b8] sm:$0xff] }
 0x29c   :  { %v551_v21 = vpop.f32.mrf.mxu0  ;;  %v715_v23 = vpop.f32.mrf.mxu1 }
 0x29e   :  { %v553_v22 = vpop.f32.mrf.mxu0  ;;  %v717_v30 = vpop.f32.mrf.mxu1 }
 0x2ac   :  { %v624_v24 = vpop.f32.mrf.mxu0 }
 0x2ad   :  { %v625_v39 = vadd.f32 %v624_v24, %v551_v21  ;;  %v787_v21 = vld [vmem:[%s5285_s9 + $0x70] sm:$0xff] }
 0x2ae   :  { %v626_v26 = vpop.f32.mrf.mxu0  ;;  %v2536_v24 = vld [vmem:[%s5285_s9 + $0x170] sm:$0xff]  ;;  %929 = vmatpush1.msra.mxu1 %v787_v21  ;;  %v2578_v21 = vld [vmem:[%s5285_s9 + $0x2c0] sm:$0xff] }
 0x2af   :  { %v627_v28 = vadd.f32 %v626_v26, %v553_v22  ;;  %v720_v40 = vadd.f32 %v715_v23, %v625_v39  ;;  %v2537_v22 = vld [vmem:[%s5285_s9 + $0x178] sm:$0xff]  ;;  %v786_v23 = vld [vmem:[%s5285_s9 + $0x68] sm:$0xff]  ;;  %v785_v26 = vld [vmem:[%s5285_s9 + $0x60] sm:$0xff] }
 0x2b0   :  { %857 = vmatprep.subr.mxu0 %v2537_v22  ;;  %930 = vmatprep.subr.mxu1 %v786_v23  ;;  %v2531_v39 = vld [vmem:[%s5285_s9 + $0x148] sm:$0xff]  ;;  %v2608_v22 = vld [vmem:[%s5285_s9 + $0x3b0] sm:$0xff]  ;;  %v2577_v23 = vld [vmem:[%s5285_s9 + $0x2b8] sm:$0xff] }
 0x2b1   :  { %v721_v31 = vadd.f32 %v717_v30, %v627_v28  ;;  %v734_v42 = vadd.f32 %v3721_v41, %v720_v40  ;;  %v784_v28 = vld [vmem:[%s5285_s9 + $0x58] sm:$0xff]  ;;  %v2534_v30 = vld [vmem:[%s5285_s9 + $0x160] sm:$0xff]  ;;  %858 = vmatpush1.msra.mxu0 %v2536_v24  ;;  %931 = vmatpush1.msra.mxu1 %v785_v26  ;;  %v2607_v24 = vld [vmem:[%s5285_s9 + $0x3a8] sm:$0xff] }
 0x2b2   :  { %859 = vmatprep.subr.mxu0 %v2535_v27  ;;  %932 = vmatprep.subr.mxu1 %v784_v28  ;;  %v780_v40 = vld [vmem:[%s5285_s9 + $0x38] sm:$0xff]  ;;  %v2576_v26 = vld [vmem:[%s5285_s9 + $0x2b0] sm:$0xff]  ;;  %v2606_v27 = vld [vmem:[%s5285_s9 + $0x3a0] sm:$0xff] }
 0x2b3   :  { %v735_v33 = vadd.f32 %v3717_v29, %v721_v31  ;;  %v783_v31 = vld [vmem:[%s5285_s9 + $0x50] sm:$0xff]  ;;  %860 = vmatpush1.msra.mxu0 %v2534_v30  ;;  %v2575_v28 = vld [vmem:[%s5285_s9 + $0x2a8] sm:$0xff]  ;;  %v2605_v30 = vld [vmem:[%s5285_s9 + $0x398] sm:$0xff] }
 0x2b4   :  { %933 = vmatpush1.msra.mxu1 %v783_v31  ;;  %v2574_v31 = vld [vmem:[%s5285_s9 + $0x2a0] sm:$0xff] }
 0x2b5   :  { %v2519_v35 = vmul.f32 -1.442695, %v735_v33  ;;  %v2533_v33 = vld [vmem:[%s5285_s9 + $0x158] sm:$0xff] }
 0x2b6   :  { %861 = vmatprep.subr.mxu0 %v2533_v33  ;;  %v2604_v33 = vld [vmem:[%s5285_s9 + $0x390] sm:$0xff] }
 0x2b7   :  { %2948 = vpow2.f32 %v2519_v35  ;;  %v782_v35 = vld [vmem:[%s5285_s9 + $0x48] sm:$0xff] }
 0x2b8   :  { %934 = vmatprep.subr.mxu1 %v782_v35  ;;  %v2573_v35 = vld [vmem:[%s5285_s9 + $0x298] sm:$0xff] }
 0x2c4   :  { %v2949_v37 = vpop.eup %2948 }
 0x2c5   :  { %v739_v38 = vadd.f32 1.0, %v2949_v37  ;;  %v2532_v37 = vld [vmem:[%s5285_s9 + $0x150] sm:$0xff] }
 0x2c6   :  { %862 = vmatpush1.msra.mxu0 %v2532_v37  ;;  %v2603_v37 = vld [vmem:[%s5285_s9 + $0x388] sm:$0xff] }
 0x2c7   :  { %2950 = vrcp.f32 %v739_v38  ;;  %v781_v38 = vld [vmem:[%s5285_s9 + $0x40] sm:$0xff]  ;;  %863 = vmatprep.subr.mxu0 %v2531_v39 }
 0x2c8   :  { %935 = vmatpush1.msra.mxu1 %v781_v38  ;;  %v2572_v38 = vld [vmem:[%s5285_s9 + $0x290] sm:$0xff]  ;;  %v2602_v39 = vld [vmem:[%s5285_s9 + $0x380] sm:$0xff] }
 0x2c9   :  { %936 = vmatprep.subr.mxu1 %v780_v40  ;;  %v2571_v40 = vld [vmem:[%s5285_s9 + $0x288] sm:$0xff] }
 0x2d4   :  { %v2951_v43 = vpop.eup %2950 }
 0x2d5   :  { %v742_v44 = vmul.f32 %v2951_v43, %v734_v42  ;;  %v2530_v42 = vld [vmem:[%s5285_s9 + $0x140] sm:$0xff]  ;;  %v779_v43 = vld [vmem:[%s5285_s9 + $0x30] sm:$0xff] }
 0x2d6   :  { %864 = vmatpush1.msra.mxu0 %v2530_v42  ;;  %937 = vmatpush1.msra.mxu1 %v779_v43  ;;  %v2601_v42 = vld [vmem:[%s5285_s9 + $0x378] sm:$0xff]  ;;  %v2570_v43 = vld [vmem:[%s5285_s9 + $0x280] sm:$0xff] }
 0x2d7   :  { %v746_v45 = vsel %vm745_vm2, %v742_v44, 0.0 }
 0x2d8   :  { %747 = vadd.xlane.f32.xlu0 %v746_v45  ;;  %v778_v45 = vld [vmem:[%s5285_s9 + $0x28] sm:$0xff] }
 0x2d9   :  { %938 = vmatprep.subr.mxu1 %v778_v45  ;;  %v2569_v45 = vld [vmem:[%s5285_s9 + $0x278] sm:$0xff] }
 0x2da   :  { %939 = vmatpush1.msra.mxu1 %v777_v47  ;;  %v2568_v47 = vld [vmem:[%s5285_s9 + $0x270] sm:$0xff] }
 0x2db   :  { %940 = vmatprep.subr.mxu1 %v776_v49  ;;  %v2567_v49 = vld [vmem:[%s5285_s9 + $0x268] sm:$0xff] }
 0x2dc   :  { %941 = vmatpush1.msra.mxu1 %v775_v51  ;;  %v2566_v51 = vld [vmem:[%s5285_s9 + $0x260] sm:$0xff] }
 0x2dd   :  { %942 = vmatprep.subr.mxu1 %v774_v53  ;;  %v2565_v53 = vld [vmem:[%s5285_s9 + $0x258] sm:$0xff] }
 0x2de   :  { %943 = vmatpush1.msra.mxu1 %v773_v55  ;;  %v2564_v55 = vld [vmem:[%s5285_s9 + $0x250] sm:$0xff] }
 0x2df   :  { %1126 = vmatprep.subr.mxu1 %v2617_v57  ;;  %v2563_v57 = vld [vmem:[%s5285_s9 + $0x248] sm:$0xff] }
 0x361   :  { %v748_v62 = vpop.xlane.xlu0 %747 }
 0x362   :  { %v749_v63 = vmul.f32 0.0078125, %v748_v62 }
 0x364   :  { %v3773_v0 = vsub.f32 %v742_v44, %v749_v63  ;;  %v2529_v44 = vld [vmem:[%s5285_s9 + $0x138] sm:$0xff] }
 0x365   :  { %865 = vmatprep.subr.mxu0 %v2529_v44  ;;  %v2600_v44 = vld [vmem:[%s5285_s9 + $0x370] sm:$0xff] }
 0x366   :  { %v751_v1 = vmul.f32 %v3773_v0, %v3773_v0  ;;  %866 = vmatpush1.msra.mxu0 %v2528_v46  ;;  %v2599_v46 = vld [vmem:[%s5285_s9 + $0x368] sm:$0xff] }
 0x367   :  { %867 = vmatprep.subr.mxu0 %v2527_v48  ;;  %v2598_v48 = vld [vmem:[%s5285_s9 + $0x360] sm:$0xff] }
 0x368   :  { %v752_v2 = vsel %vm745_vm2, %v751_v1, 0.0  ;;  %868 = vmatpush1.msra.mxu0 %v2526_v50  ;;  %v2520_v1 = vld [vmem:[%s5283_s7] ss:$0 sm:$0xff]  ;;  %v2597_v50 = vld [vmem:[%s5285_s9 + $0x358] sm:$0xff] }
 0x369   :  { %753 = vadd.xlane.f32.xlu0 %v752_v2  ;;  %869 = vmatprep.subr.mxu0 %v2525_v52  ;;  %v2596_v52 = vld [vmem:[%s5285_s9 + $0x350] sm:$0xff] }
 0x36a   :  { %870 = vmatpush1.msra.mxu0 %v2524_v54  ;;  %v2595_v54 = vld [vmem:[%s5285_s9 + $0x348] sm:$0xff] }
 0x36b   :  { %871 = vmatprep.subr.mxu0 %v2523_v56  ;;  %v2594_v56 = vld [vmem:[%s5285_s9 + $0x340] sm:$0xff] }
 0x36c   :  { %872 = vmatpush1.msra.mxu0 %v2522_v58  ;;  %v2593_v58 = vld [vmem:[%s5285_s9 + $0x338] sm:$0xff] }
 0x36d   :  { %1018 = vmatprep.subr.mxu0 %v2585_v59  ;;  %v2562_v59 = vld [vmem:[%s5285_s9 + $0x240] sm:$0xff] }
 0x3f2   :  { %v754_v60 = vpop.xlane.xlu0 %753 }
 0x3f3   :  { %v755_v61 = vmul.f32 0.0078125, %v754_v60  ;;  %v2592_v60 = vld [vmem:[%s5285_s9 + $0x330] sm:$0xff] }
 0x3f5   :  { %v756_v62 = vadd.f32 1e-12, %v755_v61  ;;  %v2561_v61 = vld [vmem:[%s5285_s9 + $0x238] sm:$0xff] }
 0x3f7   :  { %2952 = vrsqrt.f32 %v756_v62  ;;  %v2591_v62 = vld [vmem:[%s5285_s9 + $0x328] sm:$0xff] }
 0x404   :  { %v2953_v63 = vpop.eup %2952 }
 0x405   :  { %v758_v2 = vmul.f32 %v2953_v63, %v3773_v0  ;;  %v2584_v0 = vld [vmem:[%s5285_s9 + $0x2f0] sm:$0xff] }
 0x406   :  { %v2560_v63 = vld [vmem:[%s5285_s9 + $0x230] sm:$0xff] }
 0x407   :  { %v765_v4 = vmul.f32 %v2520_v1, %v758_v2  ;;  %v2590_v1 = vld [vmem:[%s5285_s9 + $0x320] sm:$0xff]  ;;  %v4099_v2 = vld [vmem:[%s5285_s9 + $0x228] sm:$0xff] }
 0x409   :  { %v3935_v5 = vadd.f32 %v2521_v3, %v765_v4  ;;  %v4104_v3 = vld [vmem:[%s5285_s9 + $0x318] sm:$0xff]  ;;  %v4109_v4 = vld [vmem:[%s5285_s9 + $0x220] sm:$0xff] }
 0x40b   :  { %977 = vmatmul.mubr.f32.vlgmr.msra.gmra.mxu1 %v3935_v5  ;;  %v839_v8 = vrot.slane %v3935_v5, 1 }
 0x40c   :  { %1127 = vmatpush1.msra.mxu1 %v2616_v6  ;;  %1190 = vmatprep.mubr.f32.mxu1 %v5296_v34  ;;  %v4114_v6 = vld [vmem:[%s5285_s9 + $0x310] sm:$0xff] }
 0x40d   :  { %1128 = vmatprep.subr.mxu1 %v2615_v7  ;;  %906 = vmatmul.mubr.f32.vlgmr.msra.gmra.mxu0 %v839_v8  ;;  %v4119_v7 = vld [vmem:[%s5285_s9 + $0x218] sm:$0xff]  ;;  %v4124_v8 = vld [vmem:[%s5285_s9 + $0x308] sm:$0xff] }
 0x40e   :  { %1019 = vmatpush1.msra.mxu0 %v2584_v0  ;;  %1129 = vmatpush1.msra.mxu1 %v2614_v9  ;;  %v4131_v0 = vld [vmem:[%s5285_s9 + $0x210] sm:$0xff]  ;;  %v4136_v9 = vld [vmem:[%s5285_s9 + $0x300] sm:$0xff] }
 0x40f   :  { %1020 = vmatprep.subr.mxu0 %v2583_v10  ;;  %1130 = vmatprep.subr.mxu1 %v2613_v11  ;;  %v4143_v10 = vld [vmem:[%s5285_s9 + $0x208] sm:$0xff]  ;;  %v1124_v11 = vrot.slane %v3935_v5, 3 }
 0x410   :  { %1021 = vmatpush1.msra.mxu0 %v2582_v12  ;;  %1131 = vmatpush1.msra.mxu1 %v2612_v13  ;;  %v4151_v12 = vld [vmem:[%s5285_s9 + $0x200] sm:$0xff]  ;;  %v1016_v13 = vrot.slane %v3935_v5, 2 }
 0x411   :  { %1022 = vmatprep.subr.mxu0 %v2581_v14  ;;  %1132 = vmatprep.subr.mxu1 %v2611_v15 }
 0x412   :  { %1023 = vmatpush1.msra.mxu0 %v2580_v16  ;;  %1133 = vmatpush1.msra.mxu1 %v2610_v17 }
 0x413   :  { %1024 = vmatprep.subr.mxu0 %v2579_v18  ;;  %1134 = vmatprep.subr.mxu1 %v2609_v20 }
 0x414   :  { %1025 = vmatpush1.msra.mxu0 %v2578_v21  ;;  %1135 = vmatpush1.msra.mxu1 %v2608_v22  ;;  %v1199_v22 = vld [vmem:[%s5286_s10] sm:$0x3] }
 0x415   :  { %1026 = vmatprep.subr.mxu0 %v2577_v23  ;;  %1136 = vmatprep.subr.mxu1 %v2607_v24  ;;  %v4169_v24 = vrot.slane %v1199_v22, %v3577_v19 }
 0x416   :  { %1027 = vmatpush1.msra.mxu0 %v2576_v26  ;;  %1137 = vmatpush1.msra.mxu1 %v2606_v27 }
 0x417   :  { %1028 = vmatprep.subr.mxu0 %v2575_v28  ;;  %1138 = vmatprep.subr.mxu1 %v2605_v30  ;;  %5307 = vst [vmem:[#allocation5_spill] sm:$0xff] %v4169_v24 }
 0x418   :  { %1029 = vmatpush1.msra.mxu0 %v2574_v31  ;;  %1139 = vmatpush1.msra.mxu1 %v2604_v33 }
 0x419   :  { %1030 = vmatprep.subr.mxu0 %v2573_v35  ;;  %1140 = vmatprep.subr.mxu1 %v2603_v37 }
 0x41a   :  { %1031 = vmatpush1.msra.mxu0 %v2572_v38  ;;  %1141 = vmatpush1.msra.mxu1 %v2602_v39  ;;  %v4173_v39 = vrot.slane %v1199_v22, %v3586_v32  ;;  %v4192_v32 = vld [vmem:[%s5289_s13 + $0x68] sm:$0xff] }
 0x41b   :  { %1032 = vmatprep.subr.mxu0 %v2571_v40  ;;  %1142 = vmatprep.subr.mxu1 %v2601_v42  ;;  %v4367_v22 = vld [vmem:[%s5291_s15 + $0x28] sm:$0xff] }
 0x41c   :  { %1033 = vmatpush1.msra.mxu0 %v2570_v43  ;;  %1143 = vmatpush1.msra.mxu1 %v2600_v44  ;;  %5308 = vst [vmem:[#allocation6_spill] sm:$0xff] %v4173_v39  ;;  %v4180_v44 = vld [vmem:[%s5289_s13 + $0x78] sm:$0xff] }
 0x41d   :  { %1034 = vmatprep.subr.mxu0 %v2569_v45  ;;  %1144 = vmatprep.subr.mxu1 %v2599_v46  ;;  %v4185_v45 = vld [vmem:[%s5289_s13 + $0x70] sm:$0xff]  ;;  %v4199_v46 = vld [vmem:[%s5289_s13 + $0x60] sm:$0xff] }
 0x41e   :  { %1035 = vmatpush1.msra.mxu0 %v2568_v47  ;;  %1145 = vmatpush1.msra.mxu1 %v2598_v48 }
 0x41f   :  { %1036 = vmatprep.subr.mxu0 %v2567_v49  ;;  %1146 = vmatprep.subr.mxu1 %v2597_v50 }
 0x420   :  { %1037 = vmatpush1.msra.mxu0 %v2566_v51  ;;  %1147 = vmatpush1.msra.mxu1 %v2596_v52  ;;  %v4213_v52 = vld [vmem:[%s5289_s13 + $0x58] sm:$0xff] }
 0x421   :  { %1038 = vmatprep.subr.mxu0 %v2565_v53  ;;  %1148 = vmatprep.subr.mxu1 %v2595_v54  ;;  %v4220_v53 = vld [vmem:[%s5289_s13 + $0x50] sm:$0xff]  ;;  %v4227_v54 = vld [vmem:[%s5289_s13 + $0x48] sm:$0xff] }
 0x422   :  { %1039 = vmatpush1.msra.mxu0 %v2564_v55  ;;  %1149 = vmatpush1.msra.mxu1 %v2594_v56  ;;  %v4232_v55 = vld [vmem:[%s5289_s13 + $0x40] sm:$0xff]  ;;  %v4239_v56 = vld [vmem:[%s5289_s13 + $0x38] sm:$0xff] }
 0x423   :  { %1040 = vmatprep.subr.mxu0 %v2563_v57  ;;  %1150 = vmatprep.subr.mxu1 %v2593_v58  ;;  %v4246_v57 = vld [vmem:[%s5289_s13 + $0x30] sm:$0xff]  ;;  %v4253_v58 = vld [vmem:[%s5289_s13 + $0x28] sm:$0xff] }
 0x424   :  { %1041 = vmatpush1.msra.mxu0 %v2562_v59  ;;  %1151 = vmatpush1.msra.mxu1 %v2592_v60  ;;  %v4260_v59 = vld [vmem:[%s5289_s13 + $0x20] sm:$0xff]  ;;  %v4267_v60 = vld [vmem:[%s5289_s13 + $0x18] sm:$0xff] }
 0x425   :  { %1042 = vmatprep.subr.mxu0 %v2561_v61  ;;  %1152 = vmatprep.subr.mxu1 %v2591_v62  ;;  %v4274_v61 = vld [vmem:[%s5289_s13 + $0x10] sm:$0xff]  ;;  %v4281_v62 = vld [vmem:[%s5289_s13 + $0x8] sm:$0xff] }
 0x426   :  { %1043 = vmatpush1.msra.mxu0 %v2560_v63  ;;  %1153 = vmatpush1.msra.mxu1 %v2590_v1  ;;  %v4288_v63 = vld [vmem:[%s5289_s13] sm:$0xff]  ;;  %v4296_v1 = vld [vmem:[%s5291_s15 + $0x78] sm:$0xff] }
 0x427   :  { %1044 = vmatprep.subr.mxu0 %v4099_v2  ;;  %1154 = vmatprep.subr.mxu1 %v4104_v3 }
 0x428   :  { %1045 = vmatpush1.msra.mxu0 %v4109_v4  ;;  %1155 = vmatpush1.msra.mxu1 %v4114_v6 }
 0x429   :  { %1046 = vmatprep.subr.mxu0 %v4119_v7  ;;  %1156 = vmatprep.subr.mxu1 %v4124_v8 }
 0x42a   :  { %1047 = vmatpush1.msra.mxu0 %v4131_v0  ;;  %1157 = vmatpush1.msra.mxu1 %v4136_v9 }
 0x42b   :  { %1048 = vmatprep.subr.mxu0 %v4143_v10  ;;  %1191 = vmatmul.mubr.f32.vlgmr.msra.gmra.mxu1 %v1124_v11  ;;  %v4301_v11 = vld [vmem:[%s5291_s15 + $0x70] sm:$0xff] }
 0x42c   :  { %1049 = vmatpush1.msra.mxu0 %v4151_v12  ;;  %1082 = vmatprep.mubr.f32.mxu0 %v5296_v34 }
 0x42d   :  { %1083 = vmatmul.mubr.f32.vlgmr.msra.gmra.mxu0 %v1016_v13  ;;  %2766 = vmatprep.subr.mxu0 %v5296_v34  ;;  %v2976_v13 = vld [vmem:[%s5305_s26 + $0xf8] sm:$0xff] }
 0x42e   :  { %2798 = vmatprep.mubr.msk.f32.mxu0 %vm3232_vm1, %v5296_v34  ;;  %2801 = vmatprep.subr.mxu1 %v5296_v34 }
 0x42f   :  { %2833 = vmatprep.mubr.msk.f32.mxu1 %vm3232_vm1, %v5296_v34  ;;  %2767 = vmatpush3.msra.mxu0 %v4180_v44 }
 0x430   :  { %2768 = vmatprep.subr.mxu0 %v5296_v34  ;;  %2802 = vmatpush3.msra.mxu1 %v4296_v1 }
 0x431   :  { %2769 = vmatpush3.msra.mxu0 %v4185_v45  ;;  %2803 = vmatprep.subr.mxu1 %v5296_v34 }
 0x432   :  { %2770 = vmatprep.subr.mxu0 %v5296_v34  ;;  %2804 = vmatpush3.msra.mxu1 %v4301_v11 }
 0x433   :  { %2771 = vmatpush3.msra.mxu0 %v4192_v32  ;;  %2805 = vmatprep.subr.mxu1 %v5296_v34 }
 0x434   :  { %2772 = vmatprep.subr.mxu0 %v5296_v34 }
 0x435   :  { %2773 = vmatpush3.msra.mxu0 %v4199_v46 }
 0x436   :  { %2774 = vmatprep.subr.mxu0 %v5296_v34 }
 0x437   :  { %2775 = vmatpush3.msra.mxu0 %v4213_v52 }
 0x438   :  { %2776 = vmatprep.subr.mxu0 %v5296_v34 }
 0x439   :  { %2777 = vmatpush3.msra.mxu0 %v4220_v53 }
 0x43a   :  { %2778 = vmatprep.subr.mxu0 %v5296_v34 }
 0x43b   :  { %2779 = vmatpush3.msra.mxu0 %v4227_v54 }
 0x43c   :  { %2780 = vmatprep.subr.mxu0 %v5296_v34 }
 0x43d   :  { %2781 = vmatpush3.msra.mxu0 %v4232_v55 }
 0x43e   :  { %2782 = vmatprep.subr.mxu0 %v5296_v34 }
 0x43f   :  { %2783 = vmatpush3.msra.mxu0 %v4239_v56 }
 0x440   :  { %2784 = vmatprep.subr.mxu0 %v5296_v34 }
 0x441   :  { %2785 = vmatpush3.msra.mxu0 %v4246_v57 }
 0x442   :  { %2786 = vmatprep.subr.mxu0 %v5296_v34 }
 0x443   :  { %2787 = vmatpush3.msra.mxu0 %v4253_v58 }
 0x444   :  { %2788 = vmatprep.subr.mxu0 %v5296_v34 }
 0x445   :  { %2789 = vmatpush3.msra.mxu0 %v4260_v59 }
 0x446   :  { %2790 = vmatprep.subr.mxu0 %v5296_v34 }
 0x447   :  { %2791 = vmatpush3.msra.mxu0 %v4267_v60 }
 0x448   :  { %2792 = vmatprep.subr.mxu0 %v5296_v34 }
 0x449   :  { %2793 = vmatpush3.msra.mxu0 %v4274_v61 }
 0x44a   :  { %2794 = vmatprep.subr.mxu0 %v5296_v34 }
 0x44b   :  { %2795 = vmatpush3.msra.mxu0 %v4281_v62 }
 0x44c   :  { %2796 = vmatprep.subr.mxu0 %v5296_v34 }
 0x44d   :  { %2797 = vmatpush3.msra.mxu0 %v4288_v63 }
 0x44e   :  { %1435 = vmatprep.subr.mxu0 %v2976_v13  ;;  %v2984_v13 = vld [vmem:[%s5305_s26 + $0xb8] sm:$0xff] }
 0x4cb   :  { %v978_v14 = vpop.f32.mrf.mxu1 }
 0x4cd   :  { %v907_v15 = vpop.f32.mrf.mxu0  ;;  %v980_v16 = vpop.f32.mrf.mxu1 }
 0x4ce   :  { %v979_v35 = vadd.f32 %v978_v14, %v907_v15  ;;  %v4311_v14 = vld [vmem:[%s5291_s15 + $0x68] sm:$0xff]  ;;  %v4318_v15 = vld [vmem:[%s5291_s15 + $0x60] sm:$0xff] }
 0x4cf   :  { %v909_v17 = vpop.f32.mrf.mxu0  ;;  %2806 = vmatpush3.msra.mxu1 %v4311_v14 }
 0x4d0   :  { %v981_v20 = vadd.f32 %v980_v16, %v909_v17  ;;  %2807 = vmatprep.subr.mxu1 %v5296_v34  ;;  %v4325_v16 = vld [vmem:[%s5291_s15 + $0x58] sm:$0xff]  ;;  %v4332_v17 = vld [vmem:[%s5291_s15 + $0x50] sm:$0xff] }
 0x4d1   :  { %2808 = vmatpush3.msra.mxu1 %v4318_v15 }
 0x4d2   :  { %2809 = vmatprep.subr.mxu1 %v5296_v34 }
 0x4d3   :  { %2810 = vmatpush3.msra.mxu1 %v4325_v16 }
 0x4d4   :  { %2811 = vmatprep.subr.mxu1 %v5296_v34 }
 0x4d5   :  { %2812 = vmatpush3.msra.mxu1 %v4332_v17 }
 0x4d6   :  { %2813 = vmatprep.subr.mxu1 %v5296_v34 }
 0x4eb   :  { %v1192_v5 = vpop.f32.mrf.mxu1 }
 0x4ed   :  { %v1084_v18 = vpop.f32.mrf.mxu0  ;;  %v1194_v26 = vpop.f32.mrf.mxu1 }
 0x4ee   :  { %v1089_v37 = vadd.f32 %v1084_v18, %v979_v35  ;;  %v4346_v18 = vld [vmem:[%s5291_s15 + $0x40] sm:$0xff] }
 0x4ef   :  { %v1086_v21 = vpop.f32.mrf.mxu0  ;;  %v4397_v35 = vld [vmem:[%s5287_s11] sm:$0x1] }
 0x4f0   :  { %v1090_v23 = vadd.f32 %v1086_v21, %v981_v20  ;;  %v1197_v38 = vadd.f32 %v1192_v5, %v1089_v37  ;;  %v4339_v5 = vld [vmem:[%s5291_s15 + $0x48] sm:$0xff]  ;;  %v4353_v20 = vld [vmem:[%s5291_s15 + $0x38] sm:$0xff]  ;;  %v4360_v21 = vld [vmem:[%s5291_s15 + $0x30] sm:$0xff]  ;;  %5309 = vst [vmem:[#allocation7_spill] sm:$0xff] %v4397_v35 }
 0x4f1   :  { %2814 = vmatpush3.msra.mxu1 %v4339_v5 }
 0x4f2   :  { %v1198_v27 = vadd.f32 %v1194_v26, %v1090_v23  ;;  %v1211_v40 = vadd.f32 %v4173_v39, %v1197_v38  ;;  %2815 = vmatprep.subr.mxu1 %v5296_v34  ;;  %v4374_v23 = vld [vmem:[%s5291_s15 + $0x20] sm:$0xff]  ;;  %v4381_v26 = vld [vmem:[%s5291_s15 + $0x18] sm:$0xff] }
 0x4f3   :  { %2816 = vmatpush3.msra.mxu1 %v4346_v18  ;;  %v4403_v38 = vld [vmem:[%s5288_s12] sm:$0x1] }
 0x4f4   :  { %v1212_v28 = vadd.f32 %v4169_v24, %v1198_v27  ;;  %2817 = vmatprep.subr.mxu1 %v5296_v34  ;;  %v4388_v27 = vld [vmem:[%s5291_s15 + $0x10] sm:$0xff]  ;;  %5310 = vst [vmem:[#allocation8_spill] sm:$0xff] %v4403_v38 }
 0x4f5   :  { %2818 = vmatpush3.msra.mxu1 %v4353_v20 }
 0x4f6   :  { %v2618_v30 = vmul.f32 -1.442695, %v1212_v28  ;;  %2819 = vmatprep.subr.mxu1 %v5296_v34 }
 0x4f7   :  { %2820 = vmatpush3.msra.mxu1 %v4360_v21 }
 0x4f8   :  { %2954 = vpow2.f32 %v2618_v30  ;;  %2821 = vmatprep.subr.mxu1 %v5296_v34 }
 0x4f9   :  { %2822 = vmatpush3.msra.mxu1 %v4367_v22 }
 0x4fa   :  { %2823 = vmatprep.subr.mxu1 %v5296_v34 }
 0x4fb   :  { %2824 = vmatpush3.msra.mxu1 %v4374_v23 }
 0x4fc   :  { %2825 = vmatprep.subr.mxu1 %v5296_v34 }
 0x4fd   :  { %2826 = vmatpush3.msra.mxu1 %v4381_v26 }
 0x4fe   :  { %2827 = vmatprep.subr.mxu1 %v5296_v34 }
 0x4ff   :  { %2828 = vmatpush3.msra.mxu1 %v4388_v27 }
 0x500   :  { %2829 = vmatprep.subr.mxu1 %v5296_v34 }
 0x505   :  { %v2955_v31 = vpop.eup %2954 }
 0x506   :  { %v1216_v33 = vadd.f32 1.0, %v2955_v31 }
 0x508   :  { %2956 = vrcp.f32 %v1216_v33 }
 0x515   :  { %v2957_v42 = vpop.eup %2956 }
 0x516   :  { %v1219_v19 = vmul.f32 %v2957_v42, %v1211_v40 }
 0x518   :  { %v1223_v43 = vsel %vm1222_vm3, %v1219_v19, 0.0 }
 0x519   :  { %1224 = vadd.xlane.f32.xlu1 %v1223_v43  ;;  %v2978_v43 = vld [vmem:[%s5305_s26 + $0xe8] sm:$0xff] }
 0x5a2   :  { %v1225_v47 = vpop.xlane.xlu1 %1224 }
 0x5a3   :  { %v1226_v48 = vmul.f32 0.0078125, %v1225_v47  ;;  %v2979_v47 = vld [vmem:[%s5305_s26 + $0xe0] sm:$0xff] }
 0x5a5   :  { %v4205_v49 = vsub.f32 %v1219_v19, %v1226_v48  ;;  %v2977_v19 = vld [vmem:[%s5305_s26 + $0xf0] sm:$0xff]  ;;  %v2980_v48 = vld [vmem:[%s5305_s26 + $0xd8] sm:$0xff] }
 0x5a7   :  { %v1228_v50 = vmul.f32 %v4205_v49, %v4205_v49 }
 0x5a9   :  { %v1229_v51 = vsel %vm1222_vm3, %v1228_v50, 0.0  ;;  %v2982_v50 = vld [vmem:[%s5305_s26 + $0xc8] sm:$0xff] }
 0x5aa   :  { %1230 = vadd.xlane.f32.xlu1 %v1229_v51  ;;  %v2983_v51 = vld [vmem:[%s5305_s26 + $0xc0] sm:$0xff] }
 0x633   :  { %v1231_v28 = vpop.xlane.xlu1 %1230 }
 0x634   :  { %v1232_v30 = vmul.f32 0.0078125, %v1231_v28  ;;  %v2985_v28 = vld [vmem:[%s5305_s26 + $0xb0] sm:$0xff] }
 0x636   :  { %v1233_v31 = vadd.f32 1e-12, %v1232_v30  ;;  %v2986_v30 = vld [vmem:[%s5305_s26 + $0xa8] sm:$0xff] }
 0x638   :  { %2958 = vrsqrt.f32 %v1233_v31  ;;  %v2987_v31 = vld [vmem:[%s5305_s26 + $0xa0] sm:$0xff] }
 0x645   :  { %v2959_v33 = vpop.eup %2958 }
 0x646   :  { %v1235_v37 = vmul.f32 %v2959_v33, %v4205_v49  ;;  %v2981_v49 = vld [vmem:[%s5305_s26 + $0xd0] sm:$0xff]  ;;  %v2988_v33 = vld [vmem:[%s5305_s26 + $0x98] sm:$0xff] }
 0x648   :  { %v1236_v40 = vmul.f32 %v1235_v37, %v4397_v35  ;;  %v2989_v37 = vld [vmem:[%s5305_s26 + $0x90] sm:$0xff] }
 0x64a   :  { %v1237_v42 = vadd.f32 %v1236_v40, %v4403_v38  ;;  %v2990_v40 = vld [vmem:[%s5305_s26 + $0x88] sm:$0xff] }
 0x64c   :  { %2799 = vmatmul.mubr.f32.vlgmr.msra.gmra.mxu0 %v1237_v42  ;;  %v2991_v42 = vld [vmem:[%s5305_s26 + $0x80] sm:$0xff] }
 0x64d   :  { %1436 = vmatpush1.msra.mxu0 %v2977_v19  ;;  %1483 = vmatprep.mubr.f32.mxu0 %v5296_v34  ;;  %v2992_v19 = vld [vmem:[%s5305_s26 + $0x178] sm:$0xff] }
 0x64e   :  { %1437 = vmatprep.subr.mxu0 %v2978_v43  ;;  %v4459_v43 = vld [vmem:[%s5291_s15 + $0x8] sm:$0xff] }
 0x64f   :  { %1438 = vmatpush1.msra.mxu0 %v2979_v47  ;;  %2830 = vmatpush3.msra.mxu1 %v4459_v43  ;;  %v4466_v47 = vld [vmem:[%s5291_s15] sm:$0xff] }
 0x650   :  { %1439 = vmatprep.subr.mxu0 %v2980_v48  ;;  %2831 = vmatprep.subr.mxu1 %v5296_v34  ;;  %v4471_v48 = vld [vmem:[%s5306_s27 + $0x8] sm:$0xff] }
 0x651   :  { %1440 = vmatpush1.msra.mxu0 %v2981_v49  ;;  %2832 = vmatpush3.msra.mxu1 %v4466_v47  ;;  %v1416_v49 = vrot.slane %v4471_v48, 1 }
 0x652   :  { %1441 = vmatprep.subr.mxu0 %v2982_v50  ;;  %v2993_v50 = vld [vmem:[%s5305_s26 + $0x78] sm:$0xff] }
 0x653   :  { %1442 = vmatpush1.msra.mxu0 %v2983_v51  ;;  %1508 = vmatprep.subr.mxu1 %v2993_v50  ;;  %v2994_v51 = vld [vmem:[%s5305_s26 + $0x170] sm:$0xff]  ;;  %v3005_v50 = vld [vmem:[%s5305_s26 + $0x118] sm:$0xff] }
 0x654   :  { %1443 = vmatprep.subr.mxu0 %v2984_v13  ;;  %v2995_v13 = vld [vmem:[%s5305_s26 + $0x168] sm:$0xff] }
 0x655   :  { %1444 = vmatpush1.msra.mxu0 %v2985_v28  ;;  %v2996_v28 = vld [vmem:[%s5305_s26 + $0x160] sm:$0xff] }
 0x656   :  { %1445 = vmatprep.subr.mxu0 %v2986_v30  ;;  %v2997_v30 = vld [vmem:[%s5305_s26 + $0x158] sm:$0xff] }
 0x657   :  { %1446 = vmatpush1.msra.mxu0 %v2987_v31  ;;  %v2998_v31 = vld [vmem:[%s5305_s26 + $0x150] sm:$0xff] }
 0x658   :  { %1447 = vmatprep.subr.mxu0 %v2988_v33  ;;  %v2999_v33 = vld [vmem:[%s5305_s26 + $0x148] sm:$0xff] }
 0x659   :  { %1448 = vmatpush1.msra.mxu0 %v2989_v37  ;;  %v3000_v37 = vld [vmem:[%s5305_s26 + $0x140] sm:$0xff] }
 0x65a   :  { %1449 = vmatprep.subr.mxu0 %v2990_v40  ;;  %v3001_v40 = vld [vmem:[%s5305_s26 + $0x138] sm:$0xff] }
 0x65b   :  { %1450 = vmatpush1.msra.mxu0 %v2991_v42  ;;  %v3002_v42 = vld [vmem:[%s5305_s26 + $0x130] sm:$0xff] }
 0x65c   :  { %1582 = vmatprep.subr.mxu0 %v2992_v19  ;;  %2620 = vmatmul.mubr.msk.f32.vlgmr.msra.gmra.mxu0 %vm93_vm0, %v1416_v49  ;;  %v3003_v19 = vld [vmem:[%s5305_s26 + $0x128] sm:$0xff]  ;;  %v3004_v49 = vld [vmem:[%s5305_s26 + $0x120] sm:$0xff] }
 0x65d   :  { %1583 = vmatpush1.msra.mxu0 %v2994_v51  ;;  %1630 = vmatprep.mubr.f32.mxu0 %v5296_v34  ;;  %v3006_v51 = vld [vmem:[%s5305_s26 + $0x110] sm:$0xff] }
 0x65e   :  { %1584 = vmatprep.subr.mxu0 %v2995_v13  ;;  %v3007_v13 = vld [vmem:[%s5305_s26 + $0x108] sm:$0xff] }
 0x65f   :  { %1585 = vmatpush1.msra.mxu0 %v2996_v28  ;;  %v1563_v28 = vrot.slane %v4471_v48, 2 }
 0x660   :  { %1586 = vmatprep.subr.mxu0 %v2997_v30  ;;  %v3008_v30 = vld [vmem:[%s5305_s26 + $0x100] sm:$0xff] }
 0x661   :  { %1587 = vmatpush1.msra.mxu0 %v2998_v31  ;;  %v3009_v31 = vld [vmem:[%s5281_s5 + $0xf8] sm:$0xff] }
 0x662   :  { %1588 = vmatprep.subr.mxu0 %v2999_v33  ;;  %v3010_v33 = vld [vmem:[%s5281_s5 + $0xf0] sm:$0xff] }
 0x663   :  { %1589 = vmatpush1.msra.mxu0 %v3000_v37  ;;  %v3011_v37 = vld [vmem:[%s5281_s5 + $0xe8] sm:$0xff] }
 0x664   :  { %1590 = vmatprep.subr.mxu0 %v3001_v40  ;;  %v3012_v40 = vld [vmem:[%s5281_s5 + $0xe0] sm:$0xff] }
 0x665   :  { %1591 = vmatpush1.msra.mxu0 %v3002_v42  ;;  %v3013_v42 = vld [vmem:[%s5281_s5 + $0xd8] sm:$0xff] }
 0x666   :  { %1592 = vmatprep.subr.mxu0 %v3003_v19  ;;  %v3014_v19 = vld [vmem:[%s5281_s5 + $0xd0] sm:$0xff] }
 0x667   :  { %1593 = vmatpush1.msra.mxu0 %v3004_v49  ;;  %v3015_v49 = vld [vmem:[%s5281_s5 + $0xc8] sm:$0xff] }
 0x668   :  { %1594 = vmatprep.subr.mxu0 %v3005_v50  ;;  %v3016_v50 = vld [vmem:[%s5281_s5 + $0xc0] sm:$0xff] }
 0x669   :  { %1595 = vmatpush1.msra.mxu0 %v3006_v51  ;;  %v3017_v51 = vld [vmem:[%s5281_s5 + $0xb8] sm:$0xff] }
 0x66a   :  { %1596 = vmatprep.subr.mxu0 %v3007_v13  ;;  %v3018_v13 = vld [vmem:[%s5281_s5 + $0xb0] sm:$0xff] }
 0x66b   :  { %1597 = vmatpush1.msra.mxu0 %v3008_v30  ;;  %v3020_v30 = vld [vmem:[%s5281_s5 + $0xa0] sm:$0xff] }
 0x66c   :  { %2622 = vmatmul.mubr.msk.f32.vlgmr.msra.gmra.mxu0 %vm93_vm0, %v1563_v28  ;;  %1739 = vmatprep.subr.mxu0 %v3009_v31  ;;  %v3019_v28 = vld [vmem:[%s5281_s5 + $0xa8] sm:$0xff]  ;;  %v3021_v31 = vld [vmem:[%s5281_s5 + $0x98] sm:$0xff] }
 0x66d   :  { %1740 = vmatpush1.msra.mxu0 %v3010_v33  ;;  %1787 = vmatprep.mubr.f32.mxu0 %v5296_v34  ;;  %v3022_v33 = vld [vmem:[%s5281_s5 + $0x90] sm:$0xff] }
 0x66e   :  { %1741 = vmatprep.subr.mxu0 %v3011_v37  ;;  %v3023_v37 = vld [vmem:[%s5281_s5 + $0x88] sm:$0xff] }
 0x66f   :  { %1742 = vmatpush1.msra.mxu0 %v3012_v40  ;;  %v3024_v40 = vld [vmem:[%s5281_s5 + $0x80] sm:$0xff] }
 0x670   :  { %1743 = vmatprep.subr.mxu0 %v3013_v42  ;;  %v3025_v42 = vld [vmem:[%s5281_s5 + $0x78] sm:$0xff] }
 0x671   :  { %1744 = vmatpush1.msra.mxu0 %v3014_v19  ;;  %v4582_v19 = vld [vmem:[%s5290_s14] sm:$0x1] }
 0x672   :  { %1745 = vmatprep.subr.mxu0 %v3015_v49  ;;  %5311 = vst [vmem:[#allocation9_spill] sm:$0xff] %v4582_v19 }
 0x673   :  { %1746 = vmatpush1.msra.mxu0 %v3016_v50 }
 0x674   :  { %1747 = vmatprep.subr.mxu0 %v3017_v51 }
 0x675   :  { %1748 = vmatpush1.msra.mxu0 %v3018_v13 }
 0x676   :  { %1749 = vmatprep.subr.mxu0 %v3019_v28  ;;  %v3026_v28 = vld [vmem:[%s5305_s26 + $0x70] sm:$0xff] }
 0x677   :  { %1750 = vmatpush1.msra.mxu0 %v3020_v30  ;;  %v3027_v30 = vld [vmem:[%s5305_s26 + $0x68] sm:$0xff] }
 0x678   :  { %1751 = vmatprep.subr.mxu0 %v3021_v31  ;;  %v3028_v31 = vld [vmem:[%s5305_s26 + $0x60] sm:$0xff] }
 0x679   :  { %1752 = vmatpush1.msra.mxu0 %v3022_v33  ;;  %v3029_v33 = vld [vmem:[%s5305_s26 + $0x58] sm:$0xff] }
 0x67a   :  { %1753 = vmatprep.subr.mxu0 %v3023_v37  ;;  %v3030_v37 = vld [vmem:[%s5305_s26 + $0x50] sm:$0xff] }
 0x67b   :  { %1754 = vmatpush1.msra.mxu0 %v3024_v40  ;;  %v3031_v40 = vld [vmem:[%s5305_s26 + $0x48] sm:$0xff] }
 0x67c   :  { %1812 = vmatprep.subr.mxu0 %v3025_v42  ;;  %v3032_v42 = vld [vmem:[%s5305_s26 + $0x40] sm:$0xff] }
 0x70c   :  { %v1321_v49 = vpop.f32.mrf.mxu0 }
 0x70d   :  { %v1322_v50 = vadd.f32 %v1321_v49, %v4582_v19  ;;  %v3033_v49 = vld [vmem:[%s5305_s26 + $0x38] sm:$0xff] }
 0x70e   :  { %v2800_v51 = vpop.f32.mrf.mxu0 }
 0x70f   :  { %v1325_v13 = vmax.f32 %v1322_v50, 0.0  ;;  %v3034_v50 = vld [vmem:[%s5305_s26 + $0x30] sm:$0xff]  ;;  %v3035_v51 = vld [vmem:[%s5305_s26 + $0x28] sm:$0xff] }
 0x711   :  { %2834 = vmatmul.mubr.f32.vlgmr.msra.gmra.mxu1 %v1325_v13  ;;  %v3036_v13 = vld [vmem:[%s5305_s26 + $0x20] sm:$0xff] }
 0x712   :  { %1509 = vmatpush1.msra.mxu1 %v3026_v28  ;;  %1556 = vmatprep.mubr.f32.mxu1 %v5296_v34  ;;  %v3037_v28 = vld [vmem:[%s5305_s26 + $0x18] sm:$0xff] }
 0x713   :  { %1510 = vmatprep.subr.mxu1 %v3027_v30  ;;  %v3038_v30 = vld [vmem:[%s5305_s26 + $0x10] sm:$0xff] }
 0x714   :  { %1511 = vmatpush1.msra.mxu1 %v3028_v31  ;;  %v3039_v31 = vld [vmem:[%s5305_s26 + $0x8] sm:$0xff] }
 0x715   :  { %1512 = vmatprep.subr.mxu1 %v3029_v33  ;;  %v3040_v33 = vld [vmem:[%s5305_s26] sm:$0xff] }
 0x716   :  { %1513 = vmatpush1.msra.mxu1 %v3030_v37  ;;  %v3041_v37 = vld [vmem:[%s5279_s3 + $0x78] sm:$0xff] }
 0x717   :  { %1514 = vmatprep.subr.mxu1 %v3031_v40  ;;  %v3042_v40 = vld [vmem:[%s5279_s3 + $0x70] sm:$0xff] }
 0x718   :  { %1515 = vmatpush1.msra.mxu1 %v3032_v42  ;;  %v3044_v42 = vld [vmem:[%s5279_s3 + $0x60] sm:$0xff] }
 0x719   :  { %1516 = vmatprep.subr.mxu1 %v3033_v49  ;;  %v3045_v49 = vld [vmem:[%s5279_s3 + $0x58] sm:$0xff] }
 0x71a   :  { %1517 = vmatpush1.msra.mxu1 %v3034_v50  ;;  %v3046_v50 = vld [vmem:[%s5279_s3 + $0x50] sm:$0xff] }
 0x71b   :  { %1518 = vmatprep.subr.mxu1 %v3035_v51  ;;  %v3047_v51 = vld [vmem:[%s5279_s3 + $0x48] sm:$0xff] }
 0x71c   :  { %1519 = vmatpush1.msra.mxu1 %v3036_v13  ;;  %v3048_v13 = vld [vmem:[%s5279_s3 + $0x40] sm:$0xff] }
 0x71d   :  { %1520 = vmatprep.subr.mxu1 %v3037_v28  ;;  %v3049_v28 = vld [vmem:[%s5279_s3 + $0x38] sm:$0xff] }
 0x71e   :  { %1521 = vmatpush1.msra.mxu1 %v3038_v30  ;;  %v3050_v30 = vld [vmem:[%s5279_s3 + $0x30] sm:$0xff] }
 0x71f   :  { %1522 = vmatprep.subr.mxu1 %v3039_v31  ;;  %v3051_v31 = vld [vmem:[%s5279_s3 + $0x28] sm:$0xff] }
 0x720   :  { %1523 = vmatpush1.msra.mxu1 %v3040_v33  ;;  %v3052_v33 = vld [vmem:[%s5279_s3 + $0x20] sm:$0xff] }
 0x721   :  { %2621 = vmatmul.mubr.msk.f32.vlgmr.msra.gmra.mxu1 %vm93_vm0, %v4471_v48  ;;  %2836 = vmatprep.subr.mxu1 %v5296_v34  ;;  %v3043_v48 = vld [vmem:[%s5279_s3 + $0x68] sm:$0xff] }
 0x722   :  { %2837 = vmatpush3.msra.mxu1 %v3041_v37  ;;  %2868 = vmatprep.mubr.msk.f32.mxu1 %vm3232_vm1, %v5296_v34  ;;  %v3053_v37 = vld [vmem:[%s5279_s3 + $0x18] sm:$0xff] }
 0x723   :  { %2838 = vmatprep.subr.mxu1 %v5296_v34 }
 0x724   :  { %2839 = vmatpush3.msra.mxu1 %v3042_v40  ;;  %v3054_v40 = vld [vmem:[%s5279_s3 + $0x10] sm:$0xff] }
 0x725   :  { %2840 = vmatprep.subr.mxu1 %v5296_v34 }
 0x726   :  { %2841 = vmatpush3.msra.mxu1 %v3043_v48  ;;  %v3055_v48 = vld [vmem:[%s5279_s3 + $0x8] sm:$0xff] }
 0x727   :  { %2842 = vmatprep.subr.mxu1 %v5296_v34 }
 0x728   :  { %2843 = vmatpush3.msra.mxu1 %v3044_v42  ;;  %v3056_v42 = vld [vmem:[%s5279_s3] sm:$0xff] }
 0x729   :  { %2844 = vmatprep.subr.mxu1 %v5296_v34 }
 0x72a   :  { %2845 = vmatpush3.msra.mxu1 %v3045_v49  ;;  %v3057_v49 = vld [vmem:[%s5281_s5 + $0x178] sm:$0xff] }
 0x72b   :  { %2846 = vmatprep.subr.mxu1 %v5296_v34 }
 0x72c   :  { %2847 = vmatpush3.msra.mxu1 %v3046_v50 }
 0x72d   :  { %2848 = vmatprep.subr.mxu1 %v5296_v34 }
 0x72e   :  { %2849 = vmatpush3.msra.mxu1 %v3047_v51 }
 0x72f   :  { %2850 = vmatprep.subr.mxu1 %v5296_v34 }
 0x730   :  { %2851 = vmatpush3.msra.mxu1 %v3048_v13  ;;  %v1485_v13 = vpop.f32.mrf.mxu0 }
 0x731   :  { %2852 = vmatprep.subr.mxu1 %v5296_v34 }
 0x732   :  { %2853 = vmatpush3.msra.mxu1 %v3049_v28  ;;  %v1487_v28 = vpop.f32.mrf.mxu0 }
 0x733   :  { %2854 = vmatprep.subr.mxu1 %v5296_v34 }
 0x734   :  { %2855 = vmatpush3.msra.mxu1 %v3050_v30 }
 0x735   :  { %2856 = vmatprep.subr.mxu1 %v5296_v34 }
 0x736   :  { %2857 = vmatpush3.msra.mxu1 %v3051_v31  ;;  %v1632_v31 = vpop.f32.mrf.mxu0 }
 0x737   :  { %2858 = vmatprep.subr.mxu1 %v5296_v34 }
 0x738   :  { %2859 = vmatpush3.msra.mxu1 %v3052_v33 }
 0x739   :  { %2860 = vmatprep.subr.mxu1 %v5296_v34 }
 0x73a   :  { %2861 = vmatpush3.msra.mxu1 %v3053_v37 }
 0x73b   :  { %2862 = vmatprep.subr.mxu1 %v5296_v34 }
 0x73c   :  { %2863 = vmatpush3.msra.mxu1 %v3054_v40  ;;  %v1634_v40 = vpop.f32.mrf.mxu0 }
 0x73d   :  { %2864 = vmatprep.subr.mxu1 %v5296_v34 }
 0x73e   :  { %2865 = vmatpush3.msra.mxu1 %v3055_v48 }
 0x73f   :  { %2866 = vmatprep.subr.mxu1 %v5296_v34 }
 0x740   :  { %2867 = vmatpush3.msra.mxu1 %v3056_v42 }
 0x741   :  { %1886 = vmatprep.subr.mxu1 %v3057_v49 }
 0x7d1   :  { %v4702_v50 = vpop.f32.mrf.mxu1 }
 0x7d2   :  { %5312 = vst [vmem:[#allocation10_spill] sm:$0xff] %v4702_v50 }
 0x7d3   :  { %v2835_v51 = vpop.f32.mrf.mxu1 }
 0x7e1   :  { %v1558_v30 = vpop.f32.mrf.mxu1 }
 0x7e2   :  { %v1559_v35 = vadd.f32 %v1558_v30, %v1485_v13  ;;  %v3067_v13 = vld [vmem:[%s5281_s5 + $0x128] sm:$0xff]  ;;  %v3068_v30 = vld [vmem:[%s5281_s5 + $0x120] sm:$0xff] }
 0x7e3   :  { %v1560_v33 = vpop.f32.mrf.mxu1 }
 0x7e4   :  { %v1561_v37 = vadd.f32 %v1560_v33, %v1487_v28  ;;  %v1637_v49 = vadd.f32 %v1632_v31, %v1559_v35  ;;  %v3058_v28 = vld [vmem:[%s5281_s5 + $0x170] sm:$0xff]  ;;  %v5313_v33 = vmov 0.0   ;;  %v3063_v35 = vld [vmem:[%s5281_s5 + $0x148] sm:$0xff]  ;;  %v3069_v31 = vld [vmem:[%s5281_s5 + $0x118] sm:$0xff] }
 0x7e6   :  { %v1638_v48 = vadd.f32 %v1634_v40, %v1561_v37  ;;  %v1639_v50 = vadd.f32 %v1637_v49, %v3589_v36  ;;  %v3061_v36 = vld [vmem:[%s5281_s5 + $0x158] sm:$0xff]  ;;  %v3070_v37 = vld [vmem:[%s5281_s5 + $0x110] sm:$0xff]  ;;  %v3071_v40 = vld [vmem:[%s5281_s5 + $0x108] sm:$0xff] }
 0x7e8   :  { %v1640_v34 = vadd.f32 %v1638_v48, %v3583_v25  ;;  %v3060_v25 = vld [vmem:[%s5281_s5 + $0x160] sm:$0xff] }
 0x7e9   :  { %v3072_v48 = vld [vmem:[%s5281_s5 + $0x100] sm:$0xff] }
 0x7ea   :  { %v2623_v19 = vmul.f32 -1.442695, %v1640_v34  ;;  %v3059_v34 = vld [vmem:[%s5281_s5 + $0x168] sm:$0xff] }
 0x7ec   :  { %2960 = vpow2.f32 %v2623_v19  ;;  %v3065_v19 = vld [vmem:[%s5281_s5 + $0x138] sm:$0xff] }
 0x7f9   :  { %v2961_v42 = vpop.eup %2960 }
 0x7fa   :  { %v1644_v38 = vadd.f32 1.0, %v2961_v42  ;;  %v3073_v42 = vld [vmem:[%s5285_s9 + $0xf8] sm:$0xff] }
 0x7fc   :  { %2962 = vrcp.f32 %v1644_v38  ;;  %v3064_v38 = vld [vmem:[%s5281_s5 + $0x140] sm:$0xff] }
 0x809   :  { %v2963_v51 = vpop.eup %2962 }
 0x80a   :  { %v1647_v39 = vmul.f32 %v2963_v51, %v1639_v50  ;;  %v3066_v50 = vld [vmem:[%s5281_s5 + $0x130] sm:$0xff]  ;;  %v3074_v51 = vld [vmem:[%s5280_s4] ss:$0 sm:$0xff] }
 0x80c   :  { %2869 = vmatmul.mubr.f32.vlgmr.msra.gmra.mxu1 %v1647_v39  ;;  %v3062_v39 = vld [vmem:[%s5281_s5 + $0x150] sm:$0xff] }
 0x80d   :  { %1887 = vmatpush1.msra.mxu1 %v3058_v28  ;;  %1934 = vmatprep.mubr.f32.mxu1 %v5313_v33 }
 0x80e   :  { %1888 = vmatprep.subr.mxu1 %v3059_v34 }
 0x80f   :  { %1889 = vmatpush1.msra.mxu1 %v3060_v25 }
 0x810   :  { %1890 = vmatprep.subr.mxu1 %v3061_v36 }
 0x811   :  { %1891 = vmatpush1.msra.mxu1 %v3062_v39 }
 0x812   :  { %1892 = vmatprep.subr.mxu1 %v3063_v35  ;;  %v3075_v35 = vld [vmem:[%s5281_s5 + $0x70] sm:$0xff] }
 0x813   :  { %1893 = vmatpush1.msra.mxu1 %v3064_v38  ;;  %v3076_v38 = vld [vmem:[%s5281_s5 + $0x68] sm:$0xff] }
 0x814   :  { %1894 = vmatprep.subr.mxu1 %v3065_v19  ;;  %v3077_v19 = vld [vmem:[%s5285_s9 + $0xf0] sm:$0xff] }
 0x815   :  { %1895 = vmatpush1.msra.mxu1 %v3066_v50  ;;  %v3078_v50 = vld [vmem:[%s5281_s5 + $0x60] sm:$0xff] }
 0x816   :  { %1896 = vmatprep.subr.mxu1 %v3067_v13  ;;  %v3079_v13 = vld [vmem:[%s5285_s9 + $0xe8] sm:$0xff] }
 0x817   :  { %1897 = vmatpush1.msra.mxu1 %v3068_v30  ;;  %v3080_v30 = vld [vmem:[%s5281_s5 + $0x58] sm:$0xff] }
 0x818   :  { %1898 = vmatprep.subr.mxu1 %v3069_v31  ;;  %v3081_v31 = vld [vmem:[%s5285_s9 + $0xe0] sm:$0xff] }
 0x819   :  { %1899 = vmatpush1.msra.mxu1 %v3070_v37  ;;  %v3082_v37 = vld [vmem:[%s5281_s5 + $0x50] sm:$0xff] }
 0x81a   :  { %1900 = vmatprep.subr.mxu1 %v3071_v40  ;;  %v3083_v40 = vld [vmem:[%s5285_s9 + $0xd8] sm:$0xff] }
 0x81b   :  { %1901 = vmatpush1.msra.mxu1 %v3072_v48  ;;  %v3084_v48 = vld [vmem:[%s5281_s5 + $0x48] sm:$0xff] }
 0x81c   :  { %2041 = vmatprep.subr.mxu1 %v3073_v42  ;;  %v3085_v42 = vld [vmem:[%s5285_s9 + $0xd0] sm:$0xff] }
 0x8cc   :  { %v1714_v49 = vpop.f32.mrf.mxu1 }
 0x8cd   :  { %v1715_v28 = vadd.f32 %v3074_v51, %v1714_v49  ;;  %v3086_v49 = vld [vmem:[%s5281_s5 + $0x40] sm:$0xff]  ;;  %v3087_v51 = vld [vmem:[%s5285_s9 + $0xc8] sm:$0xff] }
 0x8ce   :  { %v2870_v34 = vpop.f32.mrf.mxu1 }
 0x8cf   :  { %v4758_v25 = vmax.f32 %v1715_v28, 0.0  ;;  %v3088_v28 = vld [vmem:[%s5281_s5 + $0x38] sm:$0xff]  ;;  %v3089_v34 = vld [vmem:[%s5285_s9 + $0xc0] sm:$0xff] }
 0x8d1   :  { %v1720_v36 = vrot.slane %v4758_v25, 1  ;;  %v1867_v39 = vrot.slane %v4758_v25, 2 }
 0x8d3   :  { %2624 = vmatmul.mubr.msk.f32.vlgmr.msra.gmra.mxu0 %vm93_vm0, %v1720_v36  ;;  %2626 = vmatmul.mubr.msk.f32.vlgmr.msra.gmra.mxu1 %vm93_vm0, %v1867_v39  ;;  %v3090_v36 = vld [vmem:[%s5281_s5 + $0x30] sm:$0xff]  ;;  %v3091_v39 = vld [vmem:[%s5285_s9 + $0xb8] sm:$0xff] }
 0x8d4   :  { %1813 = vmatpush1.msra.mxu0 %v3075_v35  ;;  %1860 = vmatprep.mubr.f32.mxu0 %v5313_v33  ;;  %v3092_v35 = vld [vmem:[%s5281_s5 + $0x28] sm:$0xff] }
 0x8d5   :  { %1814 = vmatprep.subr.mxu0 %v3076_v38  ;;  %2042 = vmatpush1.msra.mxu1 %v3077_v19  ;;  %v3093_v38 = vld [vmem:[%s5285_s9 + $0xb0] sm:$0xff]  ;;  %v3094_v19 = vld [vmem:[%s5281_s5 + $0x20] sm:$0xff] }
 0x8d6   :  { %1815 = vmatpush1.msra.mxu0 %v3078_v50  ;;  %2043 = vmatprep.subr.mxu1 %v3079_v13  ;;  %v3095_v50 = vld [vmem:[%s5285_s9 + $0xa8] sm:$0xff]  ;;  %v3096_v13 = vld [vmem:[%s5281_s5 + $0x18] sm:$0xff] }
 0x8d7   :  { %1816 = vmatprep.subr.mxu0 %v3080_v30  ;;  %2044 = vmatpush1.msra.mxu1 %v3081_v31  ;;  %v3097_v30 = vld [vmem:[%s5285_s9 + $0xa0] sm:$0xff]  ;;  %v3098_v31 = vld [vmem:[%s5281_s5 + $0x10] sm:$0xff] }
 0x8d8   :  { %1817 = vmatpush1.msra.mxu0 %v3082_v37  ;;  %2045 = vmatprep.subr.mxu1 %v3083_v40  ;;  %v3099_v37 = vld [vmem:[%s5285_s9 + $0x98] sm:$0xff]  ;;  %v3100_v40 = vld [vmem:[%s5281_s5 + $0x8] sm:$0xff] }
 0x8d9   :  { %1818 = vmatprep.subr.mxu0 %v3084_v48  ;;  %2046 = vmatpush1.msra.mxu1 %v3085_v42  ;;  %v3101_v48 = vld [vmem:[%s5285_s9 + $0x90] sm:$0xff]  ;;  %v3102_v42 = vld [vmem:[%s5281_s5] sm:$0xff] }
 0x8da   :  { %1819 = vmatpush1.msra.mxu0 %v3086_v49  ;;  %2047 = vmatprep.subr.mxu1 %v3087_v51  ;;  %v3103_v49 = vld [vmem:[%s5285_s9 + $0x88] sm:$0xff]  ;;  %v3104_v51 = vld [vmem:[%s5285_s9 + $0x1f8] sm:$0xff] }
 0x8db   :  { %1820 = vmatprep.subr.mxu0 %v3088_v28  ;;  %2048 = vmatpush1.msra.mxu1 %v3089_v34  ;;  %v3105_v28 = vld [vmem:[%s5285_s9 + $0x1f0] sm:$0xff]  ;;  %v3106_v34 = vld [vmem:[%s5285_s9 + $0x80] sm:$0xff] }
 0x8dc   :  { %1821 = vmatpush1.msra.mxu0 %v3090_v36  ;;  %2049 = vmatprep.subr.mxu1 %v3091_v39  ;;  %v3107_v36 = vld [vmem:[%s5285_s9 + $0x1e8] sm:$0xff]  ;;  %v3109_v39 = vld [vmem:[%s5285_s9 + $0x1e0] sm:$0xff] }
 0x8dd   :  { %1822 = vmatprep.subr.mxu0 %v3092_v35  ;;  %2050 = vmatpush1.msra.mxu1 %v3093_v38  ;;  %v3110_v35 = vld [vmem:[%s5285_s9 + $0x70] sm:$0xff]  ;;  %v3111_v38 = vld [vmem:[%s5285_s9 + $0x1d8] sm:$0xff] }
 0x8de   :  { %1823 = vmatpush1.msra.mxu0 %v3094_v19  ;;  %2051 = vmatprep.subr.mxu1 %v3095_v50  ;;  %v3112_v19 = vld [vmem:[%s5285_s9 + $0x68] sm:$0xff]  ;;  %v3113_v50 = vld [vmem:[%s5285_s9 + $0x1d0] sm:$0xff] }
 0x8df   :  { %1824 = vmatprep.subr.mxu0 %v3096_v13  ;;  %2052 = vmatpush1.msra.mxu1 %v3097_v30  ;;  %v3114_v13 = vld [vmem:[%s5285_s9 + $0x60] sm:$0xff]  ;;  %v3115_v30 = vld [vmem:[%s5285_s9 + $0x1c8] sm:$0xff] }
 0x8e0   :  { %1825 = vmatpush1.msra.mxu0 %v3098_v31  ;;  %2053 = vmatprep.subr.mxu1 %v3099_v37  ;;  %v3116_v31 = vld [vmem:[%s5285_s9 + $0x58] sm:$0xff]  ;;  %v3117_v37 = vld [vmem:[%s5285_s9 + $0x1c0] sm:$0xff] }
 0x8e1   :  { %1826 = vmatprep.subr.mxu0 %v3100_v40  ;;  %2054 = vmatpush1.msra.mxu1 %v3101_v48  ;;  %v3118_v40 = vld [vmem:[%s5285_s9 + $0x50] sm:$0xff]  ;;  %v3119_v48 = vld [vmem:[%s5285_s9 + $0x1b8] sm:$0xff] }
 0x8e2   :  { %1827 = vmatpush1.msra.mxu0 %v3102_v42  ;;  %2055 = vmatprep.subr.mxu1 %v3103_v49  ;;  %v3120_v42 = vld [vmem:[%s5285_s9 + $0x48] sm:$0xff]  ;;  %v3121_v49 = vld [vmem:[%s5285_s9 + $0x1b0] sm:$0xff] }
 0x8e3   :  { %2625 = vmatmul.mubr.msk.f32.vlgmr.msra.gmra.mxu0 %vm93_vm0, %v4758_v25  ;;  %1970 = vmatprep.subr.mxu0 %v3104_v51  ;;  %v3108_v25 = vld [vmem:[%s5285_s9 + $0x78] sm:$0xff]  ;;  %v3122_v51 = vld [vmem:[%s5285_s9 + $0x40] sm:$0xff] }
 0x8e4   :  { %1971 = vmatpush1.msra.mxu0 %v3105_v28  ;;  %2056 = vmatpush1.msra.mxu1 %v3106_v34  ;;  %v3123_v28 = vld [vmem:[%s5285_s9 + $0x1a8] sm:$0xff]  ;;  %v3124_v34 = vld [vmem:[%s5285_s9 + $0x38] sm:$0xff] }
 0x8e5   :  { %1972 = vmatprep.subr.mxu0 %v3107_v36  ;;  %2057 = vmatprep.subr.mxu1 %v3108_v25  ;;  %v3125_v36 = vld [vmem:[%s5285_s9 + $0x1a0] sm:$0xff]  ;;  %v3126_v25 = vld [vmem:[%s5285_s9 + $0x30] sm:$0xff] }
 0x8e6   :  { %1973 = vmatpush1.msra.mxu0 %v3109_v39  ;;  %2058 = vmatpush1.msra.mxu1 %v3110_v35  ;;  %v3127_v39 = vld [vmem:[%s5285_s9 + $0x198] sm:$0xff]  ;;  %v3128_v35 = vld [vmem:[%s5285_s9 + $0x28] sm:$0xff] }
 0x8e7   :  { %1974 = vmatprep.subr.mxu0 %v3111_v38  ;;  %2059 = vmatprep.subr.mxu1 %v3112_v19  ;;  %v3129_v38 = vld [vmem:[%s5285_s9 + $0x190] sm:$0xff]  ;;  %v3130_v19 = vld [vmem:[%s5285_s9 + $0x20] sm:$0xff] }
 0x8e8   :  { %1975 = vmatpush1.msra.mxu0 %v3113_v50  ;;  %2060 = vmatpush1.msra.mxu1 %v3114_v13  ;;  %v3131_v50 = vld [vmem:[%s5285_s9 + $0x188] sm:$0xff]  ;;  %v3132_v13 = vld [vmem:[%s5285_s9 + $0x18] sm:$0xff] }
 0x8e9   :  { %1976 = vmatprep.subr.mxu0 %v3115_v30  ;;  %2061 = vmatprep.subr.mxu1 %v3116_v31  ;;  %v3133_v30 = vld [vmem:[%s5285_s9 + $0x180] sm:$0xff]  ;;  %v3134_v31 = vld [vmem:[%s5285_s9 + $0x10] sm:$0xff] }
 0x8ea   :  { %1977 = vmatpush1.msra.mxu0 %v3117_v37  ;;  %2062 = vmatpush1.msra.mxu1 %v3118_v40  ;;  %v3135_v37 = vld [vmem:[%s5285_s9 + $0x178] sm:$0xff]  ;;  %v3136_v40 = vld [vmem:[%s5285_s9 + $0x8] sm:$0xff] }
 0x8eb   :  { %1978 = vmatprep.subr.mxu0 %v3119_v48  ;;  %2063 = vmatprep.subr.mxu1 %v3120_v42  ;;  %v3137_v48 = vld [vmem:[%s5285_s9 + $0x170] sm:$0xff]  ;;  %v3138_v42 = vld [vmem:[%s5285_s9] sm:$0xff] }
 0x8ec   :  { %1979 = vmatpush1.msra.mxu0 %v3121_v49  ;;  %2064 = vmatpush1.msra.mxu1 %v3122_v51  ;;  %v3139_v49 = vld [vmem:[%s5285_s9 + $0x168] sm:$0xff]  ;;  %v3140_v51 = vld [vmem:[%s5285_s9 + $0x160] sm:$0xff] }
 0x8ed   :  { %1980 = vmatprep.subr.mxu0 %v3123_v28  ;;  %2065 = vmatprep.subr.mxu1 %v3124_v34  ;;  %v3141_v28 = vld [vmem:[%s5285_s9 + $0x3f8] sm:$0xff] }
 0x8ee   :  { %1981 = vmatpush1.msra.mxu0 %v3125_v36  ;;  %2066 = vmatpush1.msra.mxu1 %v3126_v25  ;;  %v3142_v34 = vld [vmem:[%s5285_s9 + $0x158] sm:$0xff]  ;;  %v3143_v36 = vld [vmem:[%s5285_s9 + $0x150] sm:$0xff]  ;;  %v3144_v25 = vld [vmem:[%s5285_s9 + $0x148] sm:$0xff] }
 0x8ef   :  { %1982 = vmatprep.subr.mxu0 %v3127_v39  ;;  %2067 = vmatprep.subr.mxu1 %v3128_v35  ;;  %v3145_v39 = vld [vmem:[%s5285_s9 + $0x140] sm:$0xff]  ;;  %v3146_v35 = vld [vmem:[%s5285_s9 + $0x138] sm:$0xff] }
 0x8f0   :  { %1983 = vmatpush1.msra.mxu0 %v3129_v38  ;;  %2068 = vmatpush1.msra.mxu1 %v3130_v19  ;;  %v3147_v38 = vld [vmem:[%s5285_s9 + $0x130] sm:$0xff]  ;;  %v3148_v19 = vld [vmem:[%s5285_s9 + $0x128] sm:$0xff] }
 0x8f1   :  { %1984 = vmatprep.subr.mxu0 %v3131_v50  ;;  %2069 = vmatprep.subr.mxu1 %v3132_v13  ;;  %v3149_v50 = vld [vmem:[%s5285_s9 + $0x120] sm:$0xff]  ;;  %v3150_v13 = vld [vmem:[%s5285_s9 + $0x118] sm:$0xff] }
 0x8f2   :  { %1985 = vmatpush1.msra.mxu0 %v3133_v30  ;;  %2070 = vmatpush1.msra.mxu1 %v3134_v31  ;;  %v3151_v30 = vld [vmem:[%s5285_s9 + $0x110] sm:$0xff]  ;;  %v3152_v31 = vld [vmem:[%s5285_s9 + $0x108] sm:$0xff] }
 0x8f3   :  { %1986 = vmatprep.subr.mxu0 %v3135_v37  ;;  %2071 = vmatprep.subr.mxu1 %v3136_v40  ;;  %v3153_v37 = vld [vmem:[%s5285_s9 + $0x100] sm:$0xff]  ;;  %v3154_v40 = vld [vmem:[%s5285_s9 + $0x2f8] sm:$0xff] }
 0x8f4   :  { %1987 = vmatpush1.msra.mxu0 %v3137_v48  ;;  %2072 = vmatpush1.msra.mxu1 %v3138_v42 }
 0x8f5   :  { %1988 = vmatprep.subr.mxu0 %v3139_v49  ;;  %2105 = vmatprep.mubr.f32.mxu1 %v5313_v33 }
 0x8f6   :  { %1989 = vmatpush1.msra.mxu0 %v3140_v51  ;;  %2189 = vmatprep.subr.mxu1 %v3141_v28 }
 0x8f7   :  { %1990 = vmatprep.subr.mxu0 %v3142_v34  ;;  %2034 = vmatprep.mubr.f32.mxu0 %v5313_v33 }
 0x8f8   :  { %1991 = vmatpush1.msra.mxu0 %v3143_v36 }
 0x8f9   :  { %1992 = vmatprep.subr.mxu0 %v3144_v25 }
 0x8fa   :  { %1993 = vmatpush1.msra.mxu0 %v3145_v39 }
 0x8fb   :  { %1994 = vmatprep.subr.mxu0 %v3146_v35 }
 0x8fc   :  { %1995 = vmatpush1.msra.mxu0 %v3147_v38 }
 0x8fd   :  { %1996 = vmatprep.subr.mxu0 %v3148_v19 }
 0x8fe   :  { %1997 = vmatpush1.msra.mxu0 %v3149_v50 }
 0x8ff   :  { %1998 = vmatprep.subr.mxu0 %v3150_v13 }
 0x900   :  { %1999 = vmatpush1.msra.mxu0 %v3151_v30 }
 0x901   :  { %2000 = vmatprep.subr.mxu0 %v3152_v31 }
 0x902   :  { %2001 = vmatpush1.msra.mxu0 %v3153_v37 }
 0x903   :  { %2114 = vmatprep.subr.mxu0 %v3154_v40 }
 0x993   :  { %v1789_v48 = vpop.f32.mrf.mxu0  ;;  %v1936_v49 = vpop.f32.mrf.mxu1 }
 0x995   :  { %v1791_v42 = vpop.f32.mrf.mxu0  ;;  %v1938_v36 = vpop.f32.mrf.mxu1 }
 0x9a3   :  { %v1862_v51 = vpop.f32.mrf.mxu0 }
 0x9a4   :  { %v1863_v50 = vadd.f32 %v1862_v51, %v1789_v48 }
 0x9a5   :  { %v1864_v28 = vpop.f32.mrf.mxu0 }
 0x9a6   :  { %v1865_v34 = vadd.f32 %v1864_v28, %v1791_v42  ;;  %v1941_v13 = vadd.f32 %v1936_v49, %v1863_v50  ;;  %v3158_v50 = vld [vmem:[%s5285_s9 + $0x3e8] sm:$0xff] }
 0x9a8   :  { %v1942_v25 = vadd.f32 %v1938_v36, %v1865_v34  ;;  %v1943_v30 = vadd.f32 %v1941_v13, %v3721_v41  ;;  %v3155_v41 = vld [vmem:[%s5283_s7] ss:$0 sm:$0xff]  ;;  %v3159_v13 = vld [vmem:[%s5285_s9 + $0x2f0] sm:$0xff] }
 0x9aa   :  { %v1944_v39 = vadd.f32 %v1942_v25, %v3717_v29 }
 0x9ac   :  { %v2627_v35 = vmul.f32 -1.442695, %v1944_v39 }
 0x9ae   :  { %2964 = vpow2.f32 %v2627_v35 }
 0x9bb   :  { %v2965_v38 = vpop.eup %2964 }
 0x9bc   :  { %v1948_v19 = vadd.f32 1.0, %v2965_v38 }
 0x9be   :  { %2966 = vrcp.f32 %v1948_v19  ;;  %v3157_v19 = vld [vmem:[%s5285_s9 + $0x3f0] sm:$0xff] }
 0x9cb   :  { %v2967_v31 = vpop.eup %2966 }
 0x9cc   :  { %v1951_v37 = vmul.f32 %v2967_v31, %v1943_v30  ;;  %v3160_v30 = vld [vmem:[%s5285_s9 + $0x3e0] sm:$0xff]  ;;  %v3161_v31 = vld [vmem:[%s5285_s9 + $0x2e8] sm:$0xff] }
 0x9ce   :  { %v1952_v40 = vsel %vm745_vm2, %v1951_v37, 0.0 }
 0x9cf   :  { %1953 = vadd.xlane.f32.xlu0 %v1952_v40  ;;  %v3163_v40 = vld [vmem:[%s5285_s9 + $0x2e0] sm:$0xff] }
 0xa58   :  { %v1954_v24 = vpop.xlane.xlu0 %1953 }
 0xa59   :  { %v1955_v42 = vmul.f32 0.0078125, %v1954_v24  ;;  %v3156_v24 = vld [vmem:[%s5284_s8] ss:$0 sm:$0xff] }
 0xa5b   :  { %v1956_v28 = vsub.f32 %v1951_v37, %v1955_v42  ;;  %v3162_v37 = vld [vmem:[%s5285_s9 + $0x3d8] sm:$0xff]  ;;  %v3164_v42 = vld [vmem:[%s5285_s9 + $0x3d0] sm:$0xff] }
 0xa5d   :  { %v1957_v34 = vmul.f32 %v1956_v28, %v1956_v28 }
 0xa5f   :  { %v1958_v29 = vsel %vm745_vm2, %v1957_v34, 0.0  ;;  %v3166_v34 = vld [vmem:[%s5285_s9 + $0x3c8] sm:$0xff] }
 0xa60   :  { %1959 = vadd.xlane.f32.xlu1 %v1958_v29  ;;  %v3167_v29 = vld [vmem:[%s5285_s9 + $0x2d0] sm:$0xff] }
 0xae9   :  { %v1960_v36 = vpop.xlane.xlu1 %1959 }
 0xaea   :  { %v1961_v25 = vmul.f32 0.0078125, %v1960_v36  ;;  %v3168_v36 = vld [vmem:[%s5285_s9 + $0x3c0] sm:$0xff] }
 0xaec   :  { %v1962_v39 = vadd.f32 1e-12, %v1961_v25  ;;  %v3169_v25 = vld [vmem:[%s5285_s9 + $0x2c8] sm:$0xff] }
 0xaee   :  { %2968 = vrsqrt.f32 %v1962_v39  ;;  %v3170_v39 = vld [vmem:[%s5285_s9 + $0x3b8] sm:$0xff] }
 0xafb   :  { %v2969_v48 = vpop.eup %2968 }
 0xafc   :  { %v1964_v49 = vmul.f32 %v2969_v48, %v1956_v28  ;;  %v3165_v28 = vld [vmem:[%s5285_s9 + $0x2d8] sm:$0xff]  ;;  %v3171_v48 = vld [vmem:[%s5285_s9 + $0x2c0] sm:$0xff] }
 0xafe   :  { %v1965_v51 = vmul.f32 %v3155_v41, %v1964_v49  ;;  %v3172_v49 = vld [vmem:[%s5285_s9 + $0x3b0] sm:$0xff]  ;;  %v3173_v41 = vld [vmem:[%s5285_s9 + $0x2b8] sm:$0xff] }
 0xb00   :  { %v5019_v35 = vadd.f32 %v3156_v24, %v1965_v51  ;;  %v3174_v51 = vld [vmem:[%s5285_s9 + $0x3a8] sm:$0xff]  ;;  %v3175_v24 = vld [vmem:[%s5285_s9 + $0x2b0] sm:$0xff] }
 0xb02   :  { %2106 = vmatmul.mubr.f32.vlgmr.msra.gmra.mxu1 %v5019_v35  ;;  %v1968_v38 = vrot.slane %v5019_v35, 1 }
 0xb03   :  { %2190 = vmatpush1.msra.mxu1 %v3157_v19  ;;  %2253 = vmatprep.mubr.f32.mxu1 %v5313_v33  ;;  %v3177_v19 = vld [vmem:[%s5285_s9 + $0x2a8] sm:$0xff] }
 0xb04   :  { %2191 = vmatprep.subr.mxu1 %v3158_v50  ;;  %2035 = vmatmul.mubr.f32.vlgmr.msra.gmra.mxu0 %v1968_v38  ;;  %v3176_v38 = vld [vmem:[%s5285_s9 + $0x3a0] sm:$0xff]  ;;  %v3178_v50 = vld [vmem:[%s5285_s9 + $0x398] sm:$0xff] }
 0xb05   :  { %2115 = vmatpush1.msra.mxu0 %v3159_v13  ;;  %2192 = vmatpush1.msra.mxu1 %v3160_v30  ;;  %v3179_v13 = vld [vmem:[%s5285_s9 + $0x2a0] sm:$0xff]  ;;  %v3180_v30 = vld [vmem:[%s5285_s9 + $0x390] sm:$0xff] }
 0xb06   :  { %2116 = vmatprep.subr.mxu0 %v3161_v31  ;;  %2193 = vmatprep.subr.mxu1 %v3162_v37  ;;  %v3181_v31 = vld [vmem:[%s5285_s9 + $0x298] sm:$0xff]  ;;  %v3182_v37 = vld [vmem:[%s5285_s9 + $0x388] sm:$0xff] }
 0xb07   :  { %2117 = vmatpush1.msra.mxu0 %v3163_v40  ;;  %2194 = vmatpush1.msra.mxu1 %v3164_v42  ;;  %v3183_v40 = vld [vmem:[%s5285_s9 + $0x290] sm:$0xff]  ;;  %v3184_v42 = vld [vmem:[%s5285_s9 + $0x380] sm:$0xff] }
 0xb08   :  { %2118 = vmatprep.subr.mxu0 %v3165_v28  ;;  %2195 = vmatprep.subr.mxu1 %v3166_v34  ;;  %v3185_v28 = vld [vmem:[%s5285_s9 + $0x288] sm:$0xff]  ;;  %v3186_v34 = vld [vmem:[%s5285_s9 + $0x378] sm:$0xff] }
 0xb09   :  { %2119 = vmatpush1.msra.mxu0 %v3167_v29  ;;  %2196 = vmatpush1.msra.mxu1 %v3168_v36  ;;  %v3187_v29 = vld [vmem:[%s5285_s9 + $0x280] sm:$0xff]  ;;  %v3188_v36 = vld [vmem:[%s5285_s9 + $0x370] sm:$0xff] }
 0xb0a   :  { %2120 = vmatprep.subr.mxu0 %v3169_v25  ;;  %2197 = vmatprep.subr.mxu1 %v3170_v39  ;;  %v3189_v25 = vld [vmem:[%s5285_s9 + $0x278] sm:$0xff]  ;;  %v3190_v39 = vld [vmem:[%s5285_s9 + $0x368] sm:$0xff] }
 0xb0b   :  { %2121 = vmatpush1.msra.mxu0 %v3171_v48  ;;  %2198 = vmatpush1.msra.mxu1 %v3172_v49  ;;  %v3191_v48 = vld [vmem:[%s5285_s9 + $0x270] sm:$0xff]  ;;  %v3192_v49 = vld [vmem:[%s5285_s9 + $0x360] sm:$0xff] }
 0xb0c   :  { %2122 = vmatprep.subr.mxu0 %v3173_v41  ;;  %2199 = vmatprep.subr.mxu1 %v3174_v51  ;;  %v3193_v41 = vld [vmem:[%s5285_s9 + $0x268] sm:$0xff]  ;;  %v3194_v51 = vld [vmem:[%s5285_s9 + $0x358] sm:$0xff] }
 0xb0d   :  { %2123 = vmatpush1.msra.mxu0 %v3175_v24  ;;  %2200 = vmatpush1.msra.mxu1 %v3176_v38  ;;  %v3195_v24 = vld [vmem:[%s5285_s9 + $0x260] sm:$0xff]  ;;  %v3196_v38 = vld [vmem:[%s5285_s9 + $0x350] sm:$0xff] }
 0xb0e   :  { %2124 = vmatprep.subr.mxu0 %v3177_v19  ;;  %2201 = vmatprep.subr.mxu1 %v3178_v50  ;;  %v3197_v19 = vld [vmem:[%s5285_s9 + $0x258] sm:$0xff]  ;;  %v3198_v50 = vld [vmem:[%s5285_s9 + $0x348] sm:$0xff] }
 0xb0f   :  { %2125 = vmatpush1.msra.mxu0 %v3179_v13  ;;  %2202 = vmatpush1.msra.mxu1 %v3180_v30  ;;  %v3199_v13 = vld [vmem:[%s5285_s9 + $0x250] sm:$0xff]  ;;  %v3200_v30 = vld [vmem:[%s5285_s9 + $0x340] sm:$0xff] }
 0xb10   :  { %2126 = vmatprep.subr.mxu0 %v3181_v31  ;;  %2203 = vmatprep.subr.mxu1 %v3182_v37  ;;  %v3201_v31 = vld [vmem:[%s5285_s9 + $0x248] sm:$0xff]  ;;  %v3202_v37 = vld [vmem:[%s5285_s9 + $0x338] sm:$0xff] }
 0xb11   :  { %2127 = vmatpush1.msra.mxu0 %v3183_v40  ;;  %2204 = vmatpush1.msra.mxu1 %v3184_v42  ;;  %v3203_v40 = vld [vmem:[%s5285_s9 + $0x240] sm:$0xff]  ;;  %v3204_v42 = vld [vmem:[%s5285_s9 + $0x330] sm:$0xff] }
 0xb12   :  { %2128 = vmatprep.subr.mxu0 %v3185_v28  ;;  %2205 = vmatprep.subr.mxu1 %v3186_v34  ;;  %v3205_v28 = vld [vmem:[%s5285_s9 + $0x238] sm:$0xff]  ;;  %v3206_v34 = vld [vmem:[%s5285_s9 + $0x328] sm:$0xff] }
 0xb13   :  { %2129 = vmatpush1.msra.mxu0 %v3187_v29  ;;  %2206 = vmatpush1.msra.mxu1 %v3188_v36  ;;  %v3207_v29 = vld [vmem:[%s5285_s9 + $0x230] sm:$0xff]  ;;  %v3208_v36 = vld [vmem:[%s5285_s9 + $0x320] sm:$0xff] }
 0xb14   :  { %2130 = vmatprep.subr.mxu0 %v3189_v25  ;;  %2207 = vmatprep.subr.mxu1 %v3190_v39  ;;  %v2187_v25 = vrot.slane %v5019_v35, 3  ;;  %v1342_v39 = vld [vmem:[%s5292_s16] sm:$0x1] }
 0xb15   :  { %2131 = vmatpush1.msra.mxu0 %v3191_v48  ;;  %2208 = vmatpush1.msra.mxu1 %v3192_v49 }
 0xb16   :  { %2132 = vmatprep.subr.mxu0 %v3193_v41  ;;  %2209 = vmatprep.subr.mxu1 %v3194_v51  ;;  %v5319_v51 = vld [vmem:[#allocation10_spill] sm:$0xff] }
 0xb17   :  { %2133 = vmatpush1.msra.mxu0 %v3195_v24  ;;  %2210 = vmatpush1.msra.mxu1 %v3196_v38  ;;  %v1410_v24 = vadd.f32 %v5319_v51, %v1342_v39 }
 0xb18   :  { %2134 = vmatprep.subr.mxu0 %v3197_v19  ;;  %2211 = vmatprep.subr.mxu1 %v3198_v50 }
 0xb19   :  { %2135 = vmatpush1.msra.mxu0 %v3199_v13  ;;  %2212 = vmatpush1.msra.mxu1 %v3200_v30 }
 0xb1a   :  { %2136 = vmatprep.subr.mxu0 %v3201_v31  ;;  %2213 = vmatprep.subr.mxu1 %v3202_v37 }
 0xb1b   :  { %2137 = vmatpush1.msra.mxu0 %v3203_v40  ;;  %2214 = vmatpush1.msra.mxu1 %v3204_v42 }
 0xb1c   :  { %2138 = vmatprep.subr.mxu0 %v3205_v28  ;;  %2215 = vmatprep.subr.mxu1 %v3206_v34 }
 0xb1d   :  { %2139 = vmatpush1.msra.mxu0 %v3207_v29  ;;  %2216 = vmatpush1.msra.mxu1 %v3208_v36 }
 0xb1e   :  { %2140 = vmatprep.subr.mxu0 %v4099_v2  ;;  %2217 = vmatprep.subr.mxu1 %v4104_v3  ;;  %v2112_v2 = vrot.slane %v5019_v35, 2 }
 0xb1f   :  { %2141 = vmatpush1.msra.mxu0 %v4109_v4  ;;  %2218 = vmatpush1.msra.mxu1 %v4114_v6 }
 0xb20   :  { %2142 = vmatprep.subr.mxu0 %v4119_v7  ;;  %2219 = vmatprep.subr.mxu1 %v4124_v8 }
 0xb21   :  { %2143 = vmatpush1.msra.mxu0 %v4131_v0  ;;  %2220 = vmatpush1.msra.mxu1 %v4136_v9 }
 0xb22   :  { %2144 = vmatprep.subr.mxu0 %v4143_v10  ;;  %2254 = vmatmul.mubr.f32.vlgmr.msra.gmra.mxu1 %v2187_v25 }
 0xb23   :  { %2145 = vmatpush1.msra.mxu0 %v4151_v12  ;;  %2178 = vmatprep.mubr.f32.mxu0 %v5313_v33 }
 0xb24   :  { %2179 = vmatmul.mubr.f32.vlgmr.msra.gmra.mxu0 %v2112_v2  ;;  %2871 = vmatprep.subr.mxu0 %v5313_v33 }
 0xb25   :  { %2872 = vmatpush3.msra.mxu0 %v4180_v44  ;;  %2903 = vmatprep.mubr.msk.f32.mxu0 %vm3232_vm1, %v5313_v33 }
 0xb26   :  { %2873 = vmatprep.subr.mxu0 %v5313_v33  ;;  %2906 = vmatprep.subr.mxu1 %v5313_v33 }
 0xb27   :  { %2874 = vmatpush3.msra.mxu0 %v4185_v45  ;;  %2907 = vmatpush3.msra.mxu1 %v4296_v1 }
 0xb28   :  { %2875 = vmatprep.subr.mxu0 %v5313_v33  ;;  %2908 = vmatprep.subr.mxu1 %v5313_v33 }
 0xb29   :  { %2876 = vmatpush3.msra.mxu0 %v4192_v32  ;;  %2909 = vmatpush3.msra.mxu1 %v4301_v11  ;;  %v5314_v32 = vld [vmem:[#allocation5_spill] sm:$0xff] }
 0xb2a   :  { %2877 = vmatprep.subr.mxu0 %v5313_v33  ;;  %2910 = vmatprep.subr.mxu1 %v5313_v33 }
 0xb2b   :  { %2878 = vmatpush3.msra.mxu0 %v4199_v46  ;;  %2911 = vmatpush3.msra.mxu1 %v4311_v14 }
 0xb2c   :  { %2879 = vmatprep.subr.mxu0 %v5313_v33  ;;  %2912 = vmatprep.subr.mxu1 %v5313_v33 }
 0xb2d   :  { %2880 = vmatpush3.msra.mxu0 %v4213_v52  ;;  %2913 = vmatpush3.msra.mxu1 %v4318_v15 }
 0xb2e   :  { %2881 = vmatprep.subr.mxu0 %v5313_v33  ;;  %2914 = vmatprep.subr.mxu1 %v5313_v33 }
 0xb2f   :  { %2882 = vmatpush3.msra.mxu0 %v4220_v53  ;;  %2915 = vmatpush3.msra.mxu1 %v4325_v16 }
 0xb30   :  { %2883 = vmatprep.subr.mxu0 %v5313_v33  ;;  %2916 = vmatprep.subr.mxu1 %v5313_v33 }
 0xb31   :  { %2884 = vmatpush3.msra.mxu0 %v4227_v54  ;;  %2917 = vmatpush3.msra.mxu1 %v4332_v17 }
 0xb32   :  { %2885 = vmatprep.subr.mxu0 %v5313_v33  ;;  %2918 = vmatprep.subr.mxu1 %v5313_v33 }
 0xb33   :  { %2886 = vmatpush3.msra.mxu0 %v4232_v55  ;;  %2919 = vmatpush3.msra.mxu1 %v4339_v5 }
 0xb34   :  { %2887 = vmatprep.subr.mxu0 %v5313_v33  ;;  %2920 = vmatprep.subr.mxu1 %v5313_v33 }
 0xb35   :  { %2888 = vmatpush3.msra.mxu0 %v4239_v56  ;;  %2921 = vmatpush3.msra.mxu1 %v4346_v18 }
 0xb36   :  { %2889 = vmatprep.subr.mxu0 %v5313_v33  ;;  %2922 = vmatprep.subr.mxu1 %v5313_v33 }
 0xb37   :  { %2890 = vmatpush3.msra.mxu0 %v4246_v57  ;;  %2923 = vmatpush3.msra.mxu1 %v4353_v20 }
 0xb38   :  { %2891 = vmatprep.subr.mxu0 %v5313_v33  ;;  %2924 = vmatprep.subr.mxu1 %v5313_v33 }
 0xb39   :  { %2892 = vmatpush3.msra.mxu0 %v4253_v58  ;;  %2925 = vmatpush3.msra.mxu1 %v4360_v21  ;;  %v5315_v58 = vld [vmem:[#allocation6_spill] sm:$0xff]  ;;  %v5316_v21 = vld [vmem:[#allocation7_spill] sm:$0xff] }
 0xb3a   :  { %2893 = vmatprep.subr.mxu0 %v5313_v33  ;;  %2926 = vmatprep.subr.mxu1 %v5313_v33 }
 0xb3b   :  { %2894 = vmatpush3.msra.mxu0 %v4260_v59  ;;  %2927 = vmatpush3.msra.mxu1 %v4367_v22 }
 0xb3c   :  { %2895 = vmatprep.subr.mxu0 %v5313_v33  ;;  %2928 = vmatprep.subr.mxu1 %v5313_v33 }
 0xb3d   :  { %2896 = vmatpush3.msra.mxu0 %v4267_v60  ;;  %2929 = vmatpush3.msra.mxu1 %v4374_v23  ;;  %v5317_v23 = vld [vmem:[#allocation8_spill] sm:$0xff] }
 0xb3e   :  { %2897 = vmatprep.subr.mxu0 %v5313_v33  ;;  %2930 = vmatprep.subr.mxu1 %v5313_v33 }
 0xb3f   :  { %2898 = vmatpush3.msra.mxu0 %v4274_v61  ;;  %2931 = vmatpush3.msra.mxu1 %v4381_v26 }
 0xb40   :  { %2899 = vmatprep.subr.mxu0 %v5313_v33  ;;  %2932 = vmatprep.subr.mxu1 %v5313_v33 }
 0xb41   :  { %2900 = vmatpush3.msra.mxu0 %v4281_v62  ;;  %2933 = vmatpush3.msra.mxu1 %v4388_v27 }
 0xb42   :  { %2901 = vmatprep.subr.mxu0 %v5313_v33  ;;  %2934 = vmatprep.subr.mxu1 %v5313_v33 }
 0xb43   :  { %2902 = vmatpush3.msra.mxu0 %v4288_v63  ;;  %2935 = vmatpush3.msra.mxu1 %v4459_v43  ;;  %v5318_v43 = vld [vmem:[#allocation9_spill] sm:$0xff] }
 0xb44   :  { %2936 = vmatprep.subr.mxu1 %v5313_v33  ;;  %2938 = vmatprep.mubr.msk.f32.mxu1 %vm3232_vm1, %v5313_v33 }
 0xb45   :  { %2937 = vmatpush3.msra.mxu1 %v4466_v47 }
 0xbc2   :  { %v2107_v3 = vpop.f32.mrf.mxu1 }
 0xbc4   :  { %v2036_v4 = vpop.f32.mrf.mxu0  ;;  %v2109_v6 = vpop.f32.mrf.mxu1 }
 0xbc5   :  { %v2108_v55 = vadd.f32 %v2107_v3, %v2036_v4 }
 0xbc6   :  { %v2038_v7 = vpop.f32.mrf.mxu0 }
 0xbc7   :  { %v2110_v9 = vadd.f32 %v2109_v6, %v2038_v7 }
 0xbe2   :  { %v2255_v8 = vpop.f32.mrf.mxu1 }
 0xbe4   :  { %v2180_v0 = vpop.f32.mrf.mxu0  ;;  %v2257_v44 = vpop.f32.mrf.mxu1 }
 0xbe5   :  { %v2185_v56 = vadd.f32 %v2180_v0, %v2108_v55 }
 0xbe6   :  { %v2182_v10 = vpop.f32.mrf.mxu0 }
 0xbe7   :  { %v2186_v12 = vadd.f32 %v2182_v10, %v2110_v9  ;;  %v2260_v57 = vadd.f32 %v2255_v8, %v2185_v56 }
 0xbe9   :  { %v2261_v45 = vadd.f32 %v2257_v44, %v2186_v12  ;;  %v2262_v59 = vadd.f32 %v2260_v57, %v5315_v58 }
 0xbeb   :  { %v2263_v46 = vadd.f32 %v2261_v45, %v5314_v32 }
 0xbed   :  { %v2628_v52 = vmul.f32 -1.442695, %v2263_v46 }
 0xbef   :  { %2970 = vpow2.f32 %v2628_v52 }
 0xbfc   :  { %v2971_v53 = vpop.eup %2970 }
 0xbfd   :  { %v2267_v54 = vadd.f32 1.0, %v2971_v53 }
 0xbff   :  { %2972 = vrcp.f32 %v2267_v54 }
 0xc0c   :  { %v2973_v60 = vpop.eup %2972 }
 0xc0d   :  { %v2270_v61 = vmul.f32 %v2973_v60, %v2262_v59 }
 0xc0f   :  { %v2271_v62 = vsel %vm1222_vm3, %v2270_v61, 0.0 }
 0xc10   :  { %2272 = vadd.xlane.f32.xlu0 %v2271_v62 }
 0xc99   :  { %v2273_v63 = vpop.xlane.xlu0 %2272 }
 0xc9a   :  { %v2274_v1 = vmul.f32 0.0078125, %v2273_v63 }
 0xc9c   :  { %v2275_v11 = vsub.f32 %v2270_v61, %v2274_v1 }
 0xc9e   :  { %v2276_v14 = vmul.f32 %v2275_v11, %v2275_v11 }
 0xca0   :  { %v2277_v15 = vsel %vm1222_vm3, %v2276_v14, 0.0 }
 0xca1   :  { %2278 = vadd.xlane.f32.xlu1 %v2277_v15 }
 0xd2a   :  { %v2279_v16 = vpop.xlane.xlu1 %2278 }
 0xd2b   :  { %v2280_v17 = vmul.f32 0.0078125, %v2279_v16 }
 0xd2d   :  { %v2281_v5 = vadd.f32 1e-12, %v2280_v17 }
 0xd2f   :  { %2974 = vrsqrt.f32 %v2281_v5 }
 0xd3c   :  { %v2975_v18 = vpop.eup %2974 }
 0xd3d   :  { %v2283_v20 = vmul.f32 %v2975_v18, %v2275_v11 }
 0xd3f   :  { %v2284_v22 = vmul.f32 %v2283_v20, %v5316_v21 }
 0xd41   :  { %v2285_v26 = vadd.f32 %v2284_v22, %v5317_v23 }
 0xd43   :  { %2904 = vmatmul.mubr.f32.vlgmr.msra.gmra.mxu0 %v2285_v26 }
 0xe03   :  { %v2352_v27 = vpop.f32.mrf.mxu0 }
 0xe04   :  { %v2353_v47 = vadd.f32 %v2352_v27, %v5318_v43 }
 0xe05   :  { %v2905_v33 = vpop.f32.mrf.mxu0 }
 0xe06   :  { %v2356_v35 = vmax.f32 %v2353_v47, 0.0 }
 0xe08   :  { %2939 = vmatmul.mubr.f32.vlgmr.msra.gmra.mxu1 %v2356_v35 }
 0xec8   :  { %v2423_v48 = vpop.f32.mrf.mxu1 }
 0xec9   :  { %v2424_v49 = vadd.f32 %v2423_v48, %v1342_v39 }
 0xeca   :  { %v2940_v41 = vpop.f32.mrf.mxu1 }
 0xecb   :  { %v2428_v38 = vrot.slane %v2424_v49, 7 }
 0xecd   :  { %v2430_v19 = vsel %vm1222_vm3, %v1410_v24, %v2428_v38 }
 0xece   :  { %2432 = vst.msk [vmem:[#allocation2] sm:$0x3] %vm2431_vm4, %v2430_v19 }
 0xecf   :  { %3220 = shalt.err (!%p3217_p4)
}
 0xed0   :  { %2442 = dma.vmem_to_hbm [thread:$0]  %s2440_s23, 32, %s5293_s17, [#allocation3]  }
 0xed1   :  { %3229 = dma.done.wait [#allocation3], 32  }
 0xed2   :  { %3230 = vsyncadd [#allocation3], 4294967264 }
 0xed3   :  { %2446 = vsyncpa [#allocation3], 1 }

</bundles_post_ra>
